<compile_context>
chip_gen: v7x
topology: tpu7x:2x2x1
jax: 0.10.0
libtpu: 0.0.40
codegen_flags: <defaults>
</compile_context>

<pallas_src>
import functools

import jax
import jax.numpy as jnp
from jax import lax
from jax.experimental import pallas as pl
from jax.experimental.pallas import tpu as pltpu

BN_EPS = 1e-5
LANE = 128
_VMEM_LIMIT = 32 * 1024 * 1024


def _round_up(x, m):
    return (x + m - 1) // m * m


def _choose_tile_h(H, W, max_c):
    """Largest even divisor of H (capped) whose double-buffered halo'd input
    tile stays under a modest VMEM budget.  Forces >= 2 row tiles when H >= 4
    so the accumulator / prefetch paths are exercised."""
    cap = max(2, min(64, H // 2)) if H >= 4 else H
    best = 2 if H % 2 == 0 else 1
    for th in range(2, cap + 1, 2):
        if H % th:
            continue
        in_bytes = 2 * (th + 2) * (W + 2) * max_c * 4  # double-buffered input tile
        if in_bytes <= (8 << 20):
            best = th
    return best


# ---------------------------------------------------------------------------
# Pallas kernels
# ---------------------------------------------------------------------------
def _conv_stats_kernel(TH, W, CIP, COP, fuse_input_bn_relu,
                       x_hbm, w_ref, b_ref, in_scale_ref, in_shift_ref,
                       y_ref, sums_ref, ssq_ref,
                       xbuf, sem):
    """One (n, ht) grid step: 3x3 'same' conv (+bias) on a halo'd row tile.

    x_hbm:  (N, H+2, W+2, CIP) zero-spatial-padded activations in HBM (pl.ANY).
    w_ref:  (9, CIP, COP) resident VMEM weights (tap index = dy*3 + dx).
    b_ref:  (1, COP) bias.
    in_scale_ref / in_shift_ref: (1, CIP) affine BN of the *input* (used only
        when fuse_input_bn_relu is True, i.e. for the second conv).
    y_ref:  (TH, W, COP) pre-BN conv output tile.
    sums_ref / ssq_ref: (1, COP) per-image channel sum / sum-of-squares
        accumulated across the arbitrary row-tile axis (BatchNorm pass 1).
    xbuf:   (2, TH+2, W+2, CIP) double-buffered VMEM input tiles.
    sem:    (2,) DMA semaphores.
    """
    n = pl.program_id(0)
    ht = pl.program_id(1)
    n_ht = pl.num_programs(1)
    slot = lax.rem(ht, 2)

    def start_fetch(row_tile, slot_):
        r0 = pl.multiple_of(row_tile * TH, TH)
        pltpu.make_async_copy(
            x_hbm.at[n, pl.ds(r0, TH + 2)], xbuf.at[slot_], sem.at[slot_]
        ).start()

    # Prime the pipeline at the start of this image's row sweep.
    @pl.when(ht == 0)
    def _():
        start_fetch(ht, slot)          # ht == 0, slot == 0 here

    # Wait for the current row tile (shape-only descriptor, same sem slot).
    pltpu.make_async_copy(
        x_hbm.at[n, pl.ds(0, TH + 2)], xbuf.at[slot], sem.at[slot]
    ).wait()

    # Prefetch the next row tile of this image while the MXU works on this one.
    @pl.when(ht + 1 < n_ht)
    def _():
        start_fetch(ht + 1, 1 - slot)

    if fuse_input_bn_relu:
        # Apply BN (affine) + ReLU of the previous stage directly on the halo'd
        # VMEM tile, then re-zero the "same"-padding border (which the affine
        # would otherwise turn into max(shift, 0)).
        xb = jnp.maximum(
            xbuf[slot] * in_scale_ref[...] + in_shift_ref[...], 0.0)
        rows = lax.broadcasted_iota(jnp.int32, (TH + 2, W + 2, 1), 0)
        cols = lax.broadcasted_iota(jnp.int32, (TH + 2, W + 2, 1), 1)
        row_lo = jnp.where(ht == 0, 1, 0)
        row_hi = jnp.where(ht == n_ht - 1, TH + 1, TH + 2)
        valid = ((rows >= row_lo) & (rows < row_hi)
                 & (cols >= 1) & (cols <= W))
        xbuf[slot] = jnp.where(valid, xb, 0.0)

    # In-kernel im2col: 9 shifted matmuls accumulated in f32.
    acc = jnp.zeros((TH * W, COP), dtype=jnp.float32)
    for dy in range(3):
        for dx in range(3):
            xs = xbuf[slot, dy:dy + TH, dx:dx + W, :]          # (TH, W, CIP)
            acc = acc + jnp.dot(xs.reshape(TH * W, CIP),
                                w_ref[dy * 3 + dx],
                                preferred_element_type=jnp.float32)
    y = acc + b_ref[...]                                        # (TH*W, COP)
    y_ref[...] = y.reshape(TH, W, COP)

    # BatchNorm pass 1: per-channel partial sums (accumulator pattern).
    @pl.when(ht == 0)
    def _():
        sums_ref[...] = jnp.zeros_like(sums_ref)
        ssq_ref[...] = jnp.zeros_like(ssq_ref)

    sums_ref[...] += jnp.sum(y, axis=0, keepdims=True)
    ssq_ref[...] += jnp.sum(y * y, axis=0, keepdims=True)


def _bn_relu_pool_kernel(TH, W, COP, y_ref, scale_ref, shift_ref,
                         skip_ref, pool_ref):
    """BN pass 2 (affine) + ReLU with the 2x2 max-pool fused into the epilogue."""
    h = jnp.maximum(y_ref[...] * scale_ref[...] + shift_ref[...], 0.0)
    skip_ref[...] = h                                           # (TH, W, COP)
    thh, wh = TH // 2, W // 2
    # Column pairs via lane-dense strided reads from the skip tile, then row
    # pairs via a leading-dim reshape + max.
    cmax = jnp.maximum(skip_ref[:, pl.ds(0, wh, 2), :],
                       skip_ref[:, pl.ds(1, wh, 2), :])          # (TH, W/2, COP)
    pool_ref[...] = jnp.max(cmax.reshape(thh, 2, wh, COP), axis=1)


# ---------------------------------------------------------------------------
# Pallas wrappers
# ---------------------------------------------------------------------------
def _conv3x3_bn_stats(x_pad, w9, b, in_scale, in_shift, tile_h,
                      fuse_input_bn_relu):
    N, Hp, Wp, CIP = x_pad.shape
    H, W = Hp - 2, Wp - 2
    COP = w9.shape[-1]
    n_ht = H // tile_h
    kern = functools.partial(_conv_stats_kernel, tile_h, W, CIP, COP,
                             fuse_input_bn_relu)
    return pl.pallas_call(
        kern,
        out_shape=(jax.ShapeDtypeStruct((N, H, W, COP), jnp.float32),
                   jax.ShapeDtypeStruct((N, 1, COP), jnp.float32),
                   jax.ShapeDtypeStruct((N, 1, COP), jnp.float32)),
        grid=(N, n_ht),
        in_specs=[pl.BlockSpec(memory_space=pl.ANY),            # activations stay in HBM
                  pl.BlockSpec((9, CIP, COP), lambda n, h: (0, 0, 0)),
                  pl.BlockSpec((1, COP), lambda n, h: (0, 0)),
                  pl.BlockSpec((1, CIP), lambda n, h: (0, 0)),
                  pl.BlockSpec((1, CIP), lambda n, h: (0, 0))],
        out_specs=(pl.BlockSpec((None, tile_h, W, COP), lambda n, h: (n, h, 0, 0)),
                   pl.BlockSpec((None, 1, COP), lambda n, h: (n, 0, 0)),
                   pl.BlockSpec((None, 1, COP), lambda n, h: (n, 0, 0))),
        scratch_shapes=[pltpu.VMEM((2, tile_h + 2, Wp, CIP), jnp.float32),
                        pltpu.SemaphoreType.DMA((2,))],
        compiler_params=pltpu.CompilerParams(
            dimension_semantics=("parallel", "arbitrary"),
            vmem_limit_bytes=_VMEM_LIMIT),
    )(x_pad, w9, b, in_scale, in_shift)


def _bn_relu_pool(y, scale, shift, tile_h):
    N, H, W, COP = y.shape
    thh, wh = tile_h // 2, W // 2
    kern = functools.partial(_bn_relu_pool_kernel, tile_h, W, COP)
    return pl.pallas_call(
        kern,
        out_shape=(jax.ShapeDtypeStruct((N, H, W, COP), jnp.float32),
                   jax.ShapeDtypeStruct((N, H // 2, W // 2, COP), jnp.float32)),
        grid=(N, H // tile_h),
        in_specs=[pl.BlockSpec((None, tile_h, W, COP), lambda n, h: (n, h, 0, 0)),
                  pl.BlockSpec((1, COP), lambda n, h: (0, 0)),
                  pl.BlockSpec((1, COP), lambda n, h: (0, 0))],
        out_specs=(pl.BlockSpec((None, tile_h, W, COP), lambda n, h: (n, h, 0, 0)),
                   pl.BlockSpec((None, thh, wh, COP), lambda n, h: (n, h, 0, 0))),
        compiler_params=pltpu.CompilerParams(
            dimension_semantics=("parallel", "parallel"),
            vmem_limit_bytes=_VMEM_LIMIT),
    )(y, scale, shift)


# ---------------------------------------------------------------------------
# Parameters & forward
# ---------------------------------------------------------------------------
def init_down_block_params(key, in_ch, out_ch):
    """Deterministic parameter init (PyTorch-style uniform bounds, same shapes)."""
    k1, k2, k3, k4 = jax.random.split(key, 4)
    bound1 = 1.0 / jnp.sqrt(in_ch * 9.0)
    bound2 = 1.0 / jnp.sqrt(out_ch * 9.0)
    return {
        # Conv weights stored HWIO = (3, 3, Cin, Cout).
        "w1": jax.random.uniform(k1, (3, 3, in_ch, out_ch), jnp.float32, -bound1, bound1),
        "b1": jax.random.uniform(k2, (1, out_ch), jnp.float32, -bound1, bound1),
        "g1": jnp.ones((1, out_ch), jnp.float32),
        "beta1": jnp.zeros((1, out_ch), jnp.float32),
        "w2": jax.random.uniform(k3, (3, 3, out_ch, out_ch), jnp.float32, -bound2, bound2),
        "b2": jax.random.uniform(k4, (1, out_ch), jnp.float32, -bound2, bound2),
        "g2": jnp.ones((1, out_ch), jnp.float32),
        "beta2": jnp.zeros((1, out_ch), jnp.float32),
    }


def _pad_stage_params(w, b, g, beta, cin_p, cout_p):
    cin, cout = w.shape[2], w.shape[3]
    w9 = jnp.pad(w, ((0, 0), (0, 0), (0, cin_p - cin), (0, cout_p - cout)))
    w9 = w9.reshape(9, cin_p, cout_p)
    pad_c = ((0, 0), (0, cout_p - cout))
    return w9, jnp.pad(b, pad_c), jnp.pad(g, pad_c), jnp.pad(beta, pad_c)


def _bn_scale_shift(sums, ssq, gamma, beta, m_total):
    # Training-mode BatchNorm: batch mean / biased variance from the pass-1
    # accumulators, folded into a per-channel affine (scale, shift).
    mean = jnp.sum(sums, axis=0) / m_total                       # (1, COP)
    var = jnp.maximum(jnp.sum(ssq, axis=0) / m_total - mean * mean, 0.0)
    scale = gamma * lax.rsqrt(var + BN_EPS)
    shift = beta - scale * mean
    return scale, shift


@jax.jit
def down_block_forward(x_nchw, params):
    """Forward pass of DownBlock.  Returns (pooled, skip), both NCHW like PyTorch."""
    N, cin, H, W = x_nchw.shape
    assert H % 2 == 0 and W % 2 == 0, "MaxPool2d(2,2) tiling assumes even H, W"
    out_ch = params["b1"].shape[-1]
    cin_p = _round_up(cin, LANE)
    cout_p = _round_up(out_ch, LANE)
    tile_h = _choose_tile_h(H, W, max(cin_p, cout_p))
    m_total = float(N * H * W)

    # NCHW -> NHWC, pad channels to a lane multiple and add the 1-pixel spatial
    # zero border consumed by the in-kernel 3x3 halo tiles.
    x = jnp.transpose(x_nchw, (0, 2, 3, 1)).astype(jnp.float32)
    x = jnp.pad(x, ((0, 0), (1, 1), (1, 1), (0, cin_p - cin)))

    w1, b1, g1, be1 = _pad_stage_params(params["w1"], params["b1"],
                                        params["g1"], params["beta1"],
                                        cin_p, cout_p)
    w2, b2, g2, be2 = _pad_stage_params(params["w2"], params["b2"],
                                        params["g2"], params["beta2"],
                                        cout_p, cout_p)
    dummy = jnp.zeros((1, cin_p), jnp.float32)

    # ---- Pass 1: conv1 (+bias) + BN1 batch-stat partials ---------------------
    y1, s1, q1 = _conv3x3_bn_stats(x, w1, b1, dummy, dummy, tile_h,
                                   fuse_input_bn_relu=False)
    scale1, shift1 = _bn_scale_shift(s1, q1, g1, be1, m_total)

    # ---- Pass 2: conv2 with BN1+ReLU fused onto its input halo tiles ---------
    y1p = jnp.pad(y1, ((0, 0), (1, 1), (1, 1), (0, 0)))   # zero spatial border
    y2, s2, q2 = _conv3x3_bn_stats(y1p, w2, b2, scale1, shift1, tile_h,
                                   fuse_input_bn_relu=True)
    scale2, shift2 = _bn_scale_shift(s2, q2, g2, be2, m_total)

    # ---- Pass 3: BN2 + ReLU + fused 2x2 max-pool ------------------------------
    skip_p, pooled_p = _bn_relu_pool(y2, scale2, shift2, tile_h)

    skip = jnp.transpose(skip_p[..., :out_ch], (0, 3, 1, 2))      # NHWC -> NCHW
    pooled = jnp.transpose(pooled_p[..., :out_ch], (0, 3, 1, 2))  # NHWC -> NCHW
    return pooled, skip


# ---------------------------------------------------------------------------
# Pure-JAX reference (for correctness check)
# ---------------------------------------------------------------------------
def _ref_down_block(x_nchw, params):
    x = jnp.transpose(x_nchw, (0, 2, 3, 1)).astype(jnp.float32)

    def conv_bn_relu(h, w, b, g, beta):
        y = lax.conv_general_dilated(
            h, w, window_strides=(1, 1), padding="SAME",
            dimension_numbers=("NHWC", "HWIO", "NHWC"),
        ) + b.reshape(1, 1, 1, -1)
        m = jnp.mean(y, axis=(0, 1, 2), keepdims=True)
        v = jnp.mean(jnp.square(y - m), axis=(0, 1, 2), keepdims=True)
        yh = (y - m) / jnp.sqrt(v + BN_EPS)
        return jnp.maximum(yh * g.reshape(1, 1, 1, -1) + beta.reshape(1, 1, 1, -1), 0.0)

    h1 = conv_bn_relu(x, params["w1"], params["b1"], params["g1"], params["beta1"])
    skip = conv_bn_relu(h1, params["w2"], params["b2"], params["g2"], params["beta2"])
    N, H, W, C = skip.shape
    pooled = skip.reshape(N, H // 2, 2, W // 2, 2, C).max(axis=(2, 4))
    return (jnp.transpose(pooled, (0, 3, 1, 2)), jnp.transpose(skip, (0, 3, 1, 2)))


# ---------------------------------------------------------------------------
if __name__ == "__main__":
    key = jax.random.PRNGKey(0)
    k_x, k_p = jax.random.split(key)

    batch, in_ch, out_ch, H, W = 2, 4, 8, 16, 16
    x = jax.random.normal(k_x, (batch, in_ch, H, W), dtype=jnp.float32)
    params = init_down_block_params(k_p, in_ch, out_ch)

    pooled, skip = down_block_forward(x, params)
    jax.block_until_ready((pooled, skip))

    # sanity: shapes + numerics vs pure-JAX reference
    assert skip.shape == (batch, out_ch, H, W)
    assert pooled.shape == (batch, out_ch, H // 2, W // 2)
    ref_pooled, ref_skip = _ref_down_block(x, params)
    assert jnp.allclose(skip, ref_skip, atol=2e-3, rtol=2e-3), \
        float(jnp.max(jnp.abs(skip - ref_skip)))
    assert jnp.allclose(pooled, ref_pooled, atol=2e-3, rtol=2e-3), \
        float(jnp.max(jnp.abs(pooled - ref_pooled)))

    print("KERNEL_OK")
</pallas_src>

<mosaic_0001>
module attributes {stable_mosaic.version = 11 : i64} {
  func.func @_conv_stats_kernel(%arg0: i32, %arg1: i32, %arg2: memref<2x18x18x128xf32, #tpu.memory_space<any>>, %arg3: memref<9x128x128xf32, #tpu.memory_space<vmem>>, %arg4: memref<1x128xf32, #tpu.memory_space<vmem>>, %arg5: memref<1x128xf32, #tpu.memory_space<vmem>>, %arg6: memref<1x128xf32, #tpu.memory_space<vmem>>, %arg7: memref<1x8x16x128xf32, #tpu.memory_space<vmem>>, %arg8: memref<1x1x128xf32, #tpu.memory_space<vmem>>, %arg9: memref<1x1x128xf32, #tpu.memory_space<vmem>>, %arg10: memref<2x10x18x128xf32, #tpu.memory_space<vmem>>, %arg11: memref<2x!tpu.dma_semaphore, #tpu.memory_space<semaphore_mem>>) attributes {dimension_semantics = [#tpu.dimension_semantics<parallel>, #tpu.dimension_semantics<arbitrary>], iteration_bounds = array<i64: 2, 2>, scalar_prefetch = 0 : i64, scratch_operands = 2 : i64, tpu.core_type = #tpu.core_type<tc>, window_params = [{}, {pipeline_mode = #tpu.pipeline_mode<synchronous>, transform_indices = @transform_1, window_bounds = array<i64: 9, 128, 128>}, {pipeline_mode = #tpu.pipeline_mode<synchronous>, transform_indices = @transform_2, window_bounds = array<i64: 1, 128>}, {pipeline_mode = #tpu.pipeline_mode<synchronous>, transform_indices = @transform_3, window_bounds = array<i64: 1, 128>}, {pipeline_mode = #tpu.pipeline_mode<synchronous>, transform_indices = @transform_4, window_bounds = array<i64: 1, 128>}, {transform_indices = @transform_5, window_bounds = array<i64: 1, 8, 16, 128>}, {transform_indices = @transform_6, window_bounds = array<i64: 1, 1, 128>}, {transform_indices = @transform_7, window_bounds = array<i64: 1, 1, 128>}]} {
    %c2_i32 = arith.constant 2 : i32
    %0 = arith.remsi %arg1, %c2_i32 : i32
    %c0_i32 = arith.constant 0 : i32
    %1 = arith.cmpi eq, %arg1, %c0_i32 : i32
    %2 = arith.extui %1 : i1 to i32
    %c0_i32_0 = arith.constant 0 : i32
    %3 = arith.cmpi ne, %2, %c0_i32_0 : i32
    scf.if %3 {
      %c8_i32 = arith.constant 8 : i32
      %114 = arith.muli %arg1, %c8_i32 : i32
      %115 = tpu.assume_multiple %114, 8 : i32
      %c0_i32_85 = arith.constant 0 : i32
      %c0_i32_86 = arith.constant 0 : i32
      %116 = tpu.memref_slice %arg2[%arg0, %115, %c0_i32_85, %c0_i32_86] : memref<2x18x18x128xf32, #tpu.memory_space<any>> -> memref<1x10x18x128xf32, #tpu.memory_space<any>>
      %117 = tpu.memref_squeeze %116 : memref<1x10x18x128xf32, #tpu.memory_space<any>> -> memref<10x18x128xf32, #tpu.memory_space<any>>
      %c0_i32_87 = arith.constant 0 : i32
      %c0_i32_88 = arith.constant 0 : i32
      %c0_i32_89 = arith.constant 0 : i32
      %118 = tpu.memref_slice %arg10[%0, %c0_i32_87, %c0_i32_88, %c0_i32_89] : memref<2x10x18x128xf32, #tpu.memory_space<vmem>> -> memref<1x10x18x128xf32, #tpu.memory_space<vmem>>
      %119 = tpu.memref_squeeze %118 : memref<1x10x18x128xf32, #tpu.memory_space<vmem>> -> memref<10x18x128xf32, #tpu.memory_space<vmem>>
      %120 = tpu.memref_slice %arg11[%0] : memref<2x!tpu.dma_semaphore, #tpu.memory_space<semaphore_mem>> -> memref<1x!tpu.dma_semaphore, #tpu.memory_space<semaphore_mem>>
      %121 = tpu.memref_squeeze %120 : memref<1x!tpu.dma_semaphore, #tpu.memory_space<semaphore_mem>> -> memref<!tpu.dma_semaphore, #tpu.memory_space<semaphore_mem>>
      tpu.enqueue_dma source(%117 : memref<10x18x128xf32, #tpu.memory_space<any>>) target(%119 : memref<10x18x128xf32, #tpu.memory_space<vmem>>) target_semaphore(%121 : memref<!tpu.dma_semaphore, #tpu.memory_space<semaphore_mem>>)
    } else {
    }
    %c0_i32_1 = arith.constant 0 : i32
    %c0_i32_2 = arith.constant 0 : i32
    %c0_i32_3 = arith.constant 0 : i32
    %4 = tpu.memref_slice %arg2[%arg0, %c0_i32_1, %c0_i32_2, %c0_i32_3] : memref<2x18x18x128xf32, #tpu.memory_space<any>> -> memref<1x10x18x128xf32, #tpu.memory_space<any>>
    %5 = tpu.memref_squeeze %4 : memref<1x10x18x128xf32, #tpu.memory_space<any>> -> memref<10x18x128xf32, #tpu.memory_space<any>>
    %c0_i32_4 = arith.constant 0 : i32
    %c0_i32_5 = arith.constant 0 : i32
    %c0_i32_6 = arith.constant 0 : i32
    %6 = tpu.memref_slice %arg10[%0, %c0_i32_4, %c0_i32_5, %c0_i32_6] : memref<2x10x18x128xf32, #tpu.memory_space<vmem>> -> memref<1x10x18x128xf32, #tpu.memory_space<vmem>>
    %7 = tpu.memref_squeeze %6 : memref<1x10x18x128xf32, #tpu.memory_space<vmem>> -> memref<10x18x128xf32, #tpu.memory_space<vmem>>
    %8 = tpu.memref_slice %arg11[%0] : memref<2x!tpu.dma_semaphore, #tpu.memory_space<semaphore_mem>> -> memref<1x!tpu.dma_semaphore, #tpu.memory_space<semaphore_mem>>
    %9 = tpu.memref_squeeze %8 : memref<1x!tpu.dma_semaphore, #tpu.memory_space<semaphore_mem>> -> memref<!tpu.dma_semaphore, #tpu.memory_space<semaphore_mem>>
    tpu.wait_dma2 semaphore(%9 : memref<!tpu.dma_semaphore, #tpu.memory_space<semaphore_mem>>) src(%5 : memref<10x18x128xf32, #tpu.memory_space<any>>) dst(%7 : memref<10x18x128xf32, #tpu.memory_space<vmem>>)
    %c1_i32 = arith.constant 1 : i32
    %10 = arith.addi %arg1, %c1_i32 : i32
    %c2_i32_7 = arith.constant 2 : i32
    %11 = arith.cmpi slt, %10, %c2_i32_7 : i32
    %12 = arith.extui %11 : i1 to i32
    %c0_i32_8 = arith.constant 0 : i32
    %13 = arith.cmpi ne, %12, %c0_i32_8 : i32
    scf.if %13 {
      %c1_i32_85 = arith.constant 1 : i32
      %114 = arith.addi %arg1, %c1_i32_85 : i32
      %c1_i32_86 = arith.constant 1 : i32
      %115 = arith.subi %c1_i32_86, %0 : i32
      %c8_i32 = arith.constant 8 : i32
      %116 = arith.muli %114, %c8_i32 : i32
      %117 = tpu.assume_multiple %116, 8 : i32
      %c0_i32_87 = arith.constant 0 : i32
      %c0_i32_88 = arith.constant 0 : i32
      %118 = tpu.memref_slice %arg2[%arg0, %117, %c0_i32_87, %c0_i32_88] : memref<2x18x18x128xf32, #tpu.memory_space<any>> -> memref<1x10x18x128xf32, #tpu.memory_space<any>>
      %119 = tpu.memref_squeeze %118 : memref<1x10x18x128xf32, #tpu.memory_space<any>> -> memref<10x18x128xf32, #tpu.memory_space<any>>
      %c0_i32_89 = arith.constant 0 : i32
      %c0_i32_90 = arith.constant 0 : i32
      %c0_i32_91 = arith.constant 0 : i32
      %120 = tpu.memref_slice %arg10[%115, %c0_i32_89, %c0_i32_90, %c0_i32_91] : memref<2x10x18x128xf32, #tpu.memory_space<vmem>> -> memref<1x10x18x128xf32, #tpu.memory_space<vmem>>
      %121 = tpu.memref_squeeze %120 : memref<1x10x18x128xf32, #tpu.memory_space<vmem>> -> memref<10x18x128xf32, #tpu.memory_space<vmem>>
      %122 = tpu.memref_slice %arg11[%115] : memref<2x!tpu.dma_semaphore, #tpu.memory_space<semaphore_mem>> -> memref<1x!tpu.dma_semaphore, #tpu.memory_space<semaphore_mem>>
      %123 = tpu.memref_squeeze %122 : memref<1x!tpu.dma_semaphore, #tpu.memory_space<semaphore_mem>> -> memref<!tpu.dma_semaphore, #tpu.memory_space<semaphore_mem>>
      tpu.enqueue_dma source(%119 : memref<10x18x128xf32, #tpu.memory_space<any>>) target(%121 : memref<10x18x128xf32, #tpu.memory_space<vmem>>) target_semaphore(%123 : memref<!tpu.dma_semaphore, #tpu.memory_space<semaphore_mem>>)
    } else {
    }
    %cst = arith.constant 0.000000e+00 : f32
    %14 = vector.broadcast %cst : f32 to vector<128x128xf32>
    %15 = arith.index_cast %0 : i32 to index
    %c0 = arith.constant 0 : index
    %c0_9 = arith.constant 0 : index
    %c0_10 = arith.constant 0 : index
    %16 = vector.load %arg10[%15, %c0, %c0_9, %c0_10] : memref<2x10x18x128xf32, #tpu.memory_space<vmem>>, vector<1x8x16x128xf32>
    %17 = vector.shape_cast %16 : vector<1x8x16x128xf32> to vector<8x16x128xf32>
    %18 = vector.shape_cast %17 : vector<8x16x128xf32> to vector<128x128xf32>
    %c0_11 = arith.constant 0 : index
    %c0_12 = arith.constant 0 : index
    %c0_13 = arith.constant 0 : index
    %19 = vector.load %arg3[%c0_11, %c0_12, %c0_13] : memref<9x128x128xf32, #tpu.memory_space<vmem>>, vector<1x128x128xf32>
    %20 = vector.shape_cast %19 : vector<1x128x128xf32> to vector<128x128xf32>
    %cst_14 = arith.constant dense<0.000000e+00> : vector<128x128xf32>
    %21 = tpu.matmul %18, %20, %cst_14 {dimension_numbers = #tpu.dot_dimension_numbers<[1], [0], [0], [1], [0, 0, 1, 1], [], []>} : vector<128x128xf32>, vector<128x128xf32>, vector<128x128xf32> -> vector<128x128xf32>
    %22 = arith.addf %14, %21 : vector<128x128xf32>
    %23 = arith.index_cast %0 : i32 to index
    %c0_15 = arith.constant 0 : index
    %c1 = arith.constant 1 : index
    %c0_16 = arith.constant 0 : index
    %24 = vector.load %arg10[%23, %c0_15, %c1, %c0_16] : memref<2x10x18x128xf32, #tpu.memory_space<vmem>>, vector<1x8x16x128xf32>
    %25 = vector.shape_cast %24 : vector<1x8x16x128xf32> to vector<8x16x128xf32>
    %26 = vector.shape_cast %25 : vector<8x16x128xf32> to vector<128x128xf32>
    %c1_17 = arith.constant 1 : index
    %c0_18 = arith.constant 0 : index
    %c0_19 = arith.constant 0 : index
    %27 = vector.load %arg3[%c1_17, %c0_18, %c0_19] : memref<9x128x128xf32, #tpu.memory_space<vmem>>, vector<1x128x128xf32>
    %28 = vector.shape_cast %27 : vector<1x128x128xf32> to vector<128x128xf32>
    %cst_20 = arith.constant dense<0.000000e+00> : vector<128x128xf32>
    %29 = tpu.matmul %26, %28, %cst_20 {dimension_numbers = #tpu.dot_dimension_numbers<[1], [0], [0], [1], [0, 0, 1, 1], [], []>} : vector<128x128xf32>, vector<128x128xf32>, vector<128x128xf32> -> vector<128x128xf32>
    %30 = arith.addf %22, %29 : vector<128x128xf32>
    %31 = arith.index_cast %0 : i32 to index
    %c0_21 = arith.constant 0 : index
    %c2 = arith.constant 2 : index
    %c0_22 = arith.constant 0 : index
    %32 = vector.load %arg10[%31, %c0_21, %c2, %c0_22] : memref<2x10x18x128xf32, #tpu.memory_space<vmem>>, vector<1x8x16x128xf32>
    %33 = vector.shape_cast %32 : vector<1x8x16x128xf32> to vector<8x16x128xf32>
    %34 = vector.shape_cast %33 : vector<8x16x128xf32> to vector<128x128xf32>
    %c2_23 = arith.constant 2 : index
    %c0_24 = arith.constant 0 : index
    %c0_25 = arith.constant 0 : index
    %35 = vector.load %arg3[%c2_23, %c0_24, %c0_25] : memref<9x128x128xf32, #tpu.memory_space<vmem>>, vector<1x128x128xf32>
    %36 = vector.shape_cast %35 : vector<1x128x128xf32> to vector<128x128xf32>
    %cst_26 = arith.constant dense<0.000000e+00> : vector<128x128xf32>
    %37 = tpu.matmul %34, %36, %cst_26 {dimension_numbers = #tpu.dot_dimension_numbers<[1], [0], [0], [1], [0, 0, 1, 1], [], []>} : vector<128x128xf32>, vector<128x128xf32>, vector<128x128xf32> -> vector<128x128xf32>
    %38 = arith.addf %30, %37 : vector<128x128xf32>
    %39 = arith.index_cast %0 : i32 to index
    %c1_27 = arith.constant 1 : index
    %c0_28 = arith.constant 0 : index
    %c0_29 = arith.constant 0 : index
    %40 = vector.load %arg10[%39, %c1_27, %c0_28, %c0_29] : memref<2x10x18x128xf32, #tpu.memory_space<vmem>>, vector<1x8x16x128xf32>
    %41 = vector.shape_cast %40 : vector<1x8x16x128xf32> to vector<8x16x128xf32>
    %42 = vector.shape_cast %41 : vector<8x16x128xf32> to vector<128x128xf32>
    %c3 = arith.constant 3 : index
    %c0_30 = arith.constant 0 : index
    %c0_31 = arith.constant 0 : index
    %43 = vector.load %arg3[%c3, %c0_30, %c0_31] : memref<9x128x128xf32, #tpu.memory_space<vmem>>, vector<1x128x128xf32>
    %44 = vector.shape_cast %43 : vector<1x128x128xf32> to vector<128x128xf32>
    %cst_32 = arith.constant dense<0.000000e+00> : vector<128x128xf32>
    %45 = tpu.matmul %42, %44, %cst_32 {dimension_numbers = #tpu.dot_dimension_numbers<[1], [0], [0], [1], [0, 0, 1, 1], [], []>} : vector<128x128xf32>, vector<128x128xf32>, vector<128x128xf32> -> vector<128x128xf32>
    %46 = arith.addf %38, %45 : vector<128x128xf32>
    %47 = arith.index_cast %0 : i32 to index
    %c1_33 = arith.constant 1 : index
    %c1_34 = arith.constant 1 : index
    %c0_35 = arith.constant 0 : index
    %48 = vector.load %arg10[%47, %c1_33, %c1_34, %c0_35] : memref<2x10x18x128xf32, #tpu.memory_space<vmem>>, vector<1x8x16x128xf32>
    %49 = vector.shape_cast %48 : vector<1x8x16x128xf32> to vector<8x16x128xf32>
    %50 = vector.shape_cast %49 : vector<8x16x128xf32> to vector<128x128xf32>
    %c4 = arith.constant 4 : index
    %c0_36 = arith.constant 0 : index
    %c0_37 = arith.constant 0 : index
    %51 = vector.load %arg3[%c4, %c0_36, %c0_37] : memref<9x128x128xf32, #tpu.memory_space<vmem>>, vector<1x128x128xf32>
    %52 = vector.shape_cast %51 : vector<1x128x128xf32> to vector<128x128xf32>
    %cst_38 = arith.constant dense<0.000000e+00> : vector<128x128xf32>
    %53 = tpu.matmul %50, %52, %cst_38 {dimension_numbers = #tpu.dot_dimension_numbers<[1], [0], [0], [1], [0, 0, 1, 1], [], []>} : vector<128x128xf32>, vector<128x128xf32>, vector<128x128xf32> -> vector<128x128xf32>
    %54 = arith.addf %46, %53 : vector<128x128xf32>
    %55 = arith.index_cast %0 : i32 to index
    %c1_39 = arith.constant 1 : index
    %c2_40 = arith.constant 2 : index
    %c0_41 = arith.constant 0 : index
    %56 = vector.load %arg10[%55, %c1_39, %c2_40, %c0_41] : memref<2x10x18x128xf32, #tpu.memory_space<vmem>>, vector<1x8x16x128xf32>
    %57 = vector.shape_cast %56 : vector<1x8x16x128xf32> to vector<8x16x128xf32>
    %58 = vector.shape_cast %57 : vector<8x16x128xf32> to vector<128x128xf32>
    %c5 = arith.constant 5 : index
    %c0_42 = arith.constant 0 : index
    %c0_43 = arith.constant 0 : index
    %59 = vector.load %arg3[%c5, %c0_42, %c0_43] : memref<9x128x128xf32, #tpu.memory_space<vmem>>, vector<1x128x128xf32>
    %60 = vector.shape_cast %59 : vector<1x128x128xf32> to vector<128x128xf32>
    %cst_44 = arith.constant dense<0.000000e+00> : vector<128x128xf32>
    %61 = tpu.matmul %58, %60, %cst_44 {dimension_numbers = #tpu.dot_dimension_numbers<[1], [0], [0], [1], [0, 0, 1, 1], [], []>} : vector<128x128xf32>, vector<128x128xf32>, vector<128x128xf32> -> vector<128x128xf32>
    %62 = arith.addf %54, %61 : vector<128x128xf32>
    %63 = arith.index_cast %0 : i32 to index
    %c2_45 = arith.constant 2 : index
    %c0_46 = arith.constant 0 : index
    %c0_47 = arith.constant 0 : index
    %64 = vector.load %arg10[%63, %c2_45, %c0_46, %c0_47] : memref<2x10x18x128xf32, #tpu.memory_space<vmem>>, vector<1x8x16x128xf32>
    %65 = vector.shape_cast %64 : vector<1x8x16x128xf32> to vector<8x16x128xf32>
    %66 = vector.shape_cast %65 : vector<8x16x128xf32> to vector<128x128xf32>
    %c6 = arith.constant 6 : index
    %c0_48 = arith.constant 0 : index
    %c0_49 = arith.constant 0 : index
    %67 = vector.load %arg3[%c6, %c0_48, %c0_49] : memref<9x128x128xf32, #tpu.memory_space<vmem>>, vector<1x128x128xf32>
    %68 = vector.shape_cast %67 : vector<1x128x128xf32> to vector<128x128xf32>
    %cst_50 = arith.constant dense<0.000000e+00> : vector<128x128xf32>
    %69 = tpu.matmul %66, %68, %cst_50 {dimension_numbers = #tpu.dot_dimension_numbers<[1], [0], [0], [1], [0, 0, 1, 1], [], []>} : vector<128x128xf32>, vector<128x128xf32>, vector<128x128xf32> -> vector<128x128xf32>
    %70 = arith.addf %62, %69 : vector<128x128xf32>
    %71 = arith.index_cast %0 : i32 to index
    %c2_51 = arith.constant 2 : index
    %c1_52 = arith.constant 1 : index
    %c0_53 = arith.constant 0 : index
    %72 = vector.load %arg10[%71, %c2_51, %c1_52, %c0_53] : memref<2x10x18x128xf32, #tpu.memory_space<vmem>>, vector<1x8x16x128xf32>
    %73 = vector.shape_cast %72 : vector<1x8x16x128xf32> to vector<8x16x128xf32>
    %74 = vector.shape_cast %73 : vector<8x16x128xf32> to vector<128x128xf32>
    %c7 = arith.constant 7 : index
    %c0_54 = arith.constant 0 : index
    %c0_55 = arith.constant 0 : index
    %75 = vector.load %arg3[%c7, %c0_54, %c0_55] : memref<9x128x128xf32, #tpu.memory_space<vmem>>, vector<1x128x128xf32>
    %76 = vector.shape_cast %75 : vector<1x128x128xf32> to vector<128x128xf32>
    %cst_56 = arith.constant dense<0.000000e+00> : vector<128x128xf32>
    %77 = tpu.matmul %74, %76, %cst_56 {dimension_numbers = #tpu.dot_dimension_numbers<[1], [0], [0], [1], [0, 0, 1, 1], [], []>} : vector<128x128xf32>, vector<128x128xf32>, vector<128x128xf32> -> vector<128x128xf32>
    %78 = arith.addf %70, %77 : vector<128x128xf32>
    %79 = arith.index_cast %0 : i32 to index
    %c2_57 = arith.constant 2 : index
    %c2_58 = arith.constant 2 : index
    %c0_59 = arith.constant 0 : index
    %80 = vector.load %arg10[%79, %c2_57, %c2_58, %c0_59] : memref<2x10x18x128xf32, #tpu.memory_space<vmem>>, vector<1x8x16x128xf32>
    %81 = vector.shape_cast %80 : vector<1x8x16x128xf32> to vector<8x16x128xf32>
    %82 = vector.shape_cast %81 : vector<8x16x128xf32> to vector<128x128xf32>
    %c8 = arith.constant 8 : index
    %c0_60 = arith.constant 0 : index
    %c0_61 = arith.constant 0 : index
    %83 = vector.load %arg3[%c8, %c0_60, %c0_61] : memref<9x128x128xf32, #tpu.memory_space<vmem>>, vector<1x128x128xf32>
    %84 = vector.shape_cast %83 : vector<1x128x128xf32> to vector<128x128xf32>
    %cst_62 = arith.constant dense<0.000000e+00> : vector<128x128xf32>
    %85 = tpu.matmul %82, %84, %cst_62 {dimension_numbers = #tpu.dot_dimension_numbers<[1], [0], [0], [1], [0, 0, 1, 1], [], []>} : vector<128x128xf32>, vector<128x128xf32>, vector<128x128xf32> -> vector<128x128xf32>
    %86 = arith.addf %78, %85 : vector<128x128xf32>
    %c0_63 = arith.constant 0 : index
    %c0_64 = arith.constant 0 : index
    %87 = vector.load %arg4[%c0_63, %c0_64] : memref<1x128xf32, #tpu.memory_space<vmem>>, vector<1x128xf32>
    %88 = vector.broadcast %87 : vector<1x128xf32> to vector<128x128xf32>
    %89 = arith.addf %86, %88 : vector<128x128xf32>
    %90 = vector.shape_cast %89 : vector<128x128xf32> to vector<8x16x128xf32>
    %c0_65 = arith.constant 0 : index
    %c0_66 = arith.constant 0 : index
    %c0_67 = arith.constant 0 : index
    %c0_68 = arith.constant 0 : index
    %91 = vector.load %arg7[%c0_65, %c0_66, %c0_67, %c0_68] : memref<1x8x16x128xf32, #tpu.memory_space<vmem>>, vector<1x8x16x128xf32>
    %92 = vector.shape_cast %91 : vector<1x8x16x128xf32> to vector<8x16x128xf32>
    %93 = vector.shape_cast %90 : vector<8x16x128xf32> to vector<1x8x16x128xf32>
    tpu.vector_store %arg7[%c0_65, %c0_66, %c0_67, %c0_68], %93 {strides = array<i32>} : memref<1x8x16x128xf32, #tpu.memory_space<vmem>>, vector<1x8x16x128xf32>,
    %c0_i32_69 = arith.constant 0 : i32
    %94 = arith.cmpi eq, %arg1, %c0_i32_69 : i32
    %95 = arith.extui %94 : i1 to i32
    %c0_i32_70 = arith.constant 0 : i32
    %96 = arith.cmpi ne, %95, %c0_i32_70 : i32
    scf.if %96 {
      %cst_85 = arith.constant 0.000000e+00 : f32
      %114 = vector.broadcast %cst_85 : f32 to vector<1x128xf32>
      %c0_86 = arith.constant 0 : index
      %c0_87 = arith.constant 0 : index
      %c0_88 = arith.constant 0 : index
      %115 = vector.load %arg8[%c0_86, %c0_87, %c0_88] : memref<1x1x128xf32, #tpu.memory_space<vmem>>, vector<1x1x128xf32>
      %116 = vector.shape_cast %115 : vector<1x1x128xf32> to vector<1x128xf32>
      %117 = vector.shape_cast %114 : vector<1x128xf32> to vector<1x1x128xf32>
      tpu.vector_store %arg8[%c0_86, %c0_87, %c0_88], %117 {strides = array<i32>} : memref<1x1x128xf32, #tpu.memory_space<vmem>>, vector<1x1x128xf32>,
      %cst_89 = arith.constant 0.000000e+00 : f32
      %118 = vector.broadcast %cst_89 : f32 to vector<1x128xf32>
      %c0_90 = arith.constant 0 : index
      %c0_91 = arith.constant 0 : index
      %c0_92 = arith.constant 0 : index
      %119 = vector.load %arg9[%c0_90, %c0_91, %c0_92] : memref<1x1x128xf32, #tpu.memory_space<vmem>>, vector<1x1x128xf32>
      %120 = vector.shape_cast %119 : vector<1x1x128xf32> to vector<1x128xf32>
      %121 = vector.shape_cast %118 : vector<1x128xf32> to vector<1x1x128xf32>
      tpu.vector_store %arg9[%c0_90, %c0_91, %c0_92], %121 {strides = array<i32>} : memref<1x1x128xf32, #tpu.memory_space<vmem>>, vector<1x1x128xf32>,
    } else {
    }
    %c0_71 = arith.constant 0 : index
    %c0_72 = arith.constant 0 : index
    %c0_73 = arith.constant 0 : index
    %97 = vector.load %arg8[%c0_71, %c0_72, %c0_73] : memref<1x1x128xf32, #tpu.memory_space<vmem>>, vector<1x1x128xf32>
    %98 = vector.shape_cast %97 : vector<1x1x128xf32> to vector<1x128xf32>
    %cst_74 = arith.constant dense<0.000000e+00> : vector<128xf32>
    %99 = vector.multi_reduction <add>, %89, %cst_74 [0] : vector<128x128xf32> to vector<128xf32>
    %100 = vector.shape_cast %99 : vector<128xf32> to vector<1x128xf32>
    %101 = arith.addf %98, %100 : vector<1x128xf32>
    %c0_75 = arith.constant 0 : index
    %c0_76 = arith.constant 0 : index
    %c0_77 = arith.constant 0 : index
    %102 = vector.load %arg8[%c0_75, %c0_76, %c0_77] : memref<1x1x128xf32, #tpu.memory_space<vmem>>, vector<1x1x128xf32>
    %103 = vector.shape_cast %102 : vector<1x1x128xf32> to vector<1x128xf32>
    %104 = vector.shape_cast %101 : vector<1x128xf32> to vector<1x1x128xf32>
    tpu.vector_store %arg8[%c0_75, %c0_76, %c0_77], %104 {strides = array<i32>} : memref<1x1x128xf32, #tpu.memory_space<vmem>>, vector<1x1x128xf32>,
    %c0_78 = arith.constant 0 : index
    %c0_79 = arith.constant 0 : index
    %c0_80 = arith.constant 0 : index
    %105 = vector.load %arg9[%c0_78, %c0_79, %c0_80] : memref<1x1x128xf32, #tpu.memory_space<vmem>>, vector<1x1x128xf32>
    %106 = vector.shape_cast %105 : vector<1x1x128xf32> to vector<1x128xf32>
    %107 = arith.mulf %89, %89 : vector<128x128xf32>
    %cst_81 = arith.constant dense<0.000000e+00> : vector<128xf32>
    %108 = vector.multi_reduction <add>, %107, %cst_81 [0] : vector<128x128xf32> to vector<128xf32>
    %109 = vector.shape_cast %108 : vector<128xf32> to vector<1x128xf32>
    %110 = arith.addf %106, %109 : vector<1x128xf32>
    %c0_82 = arith.constant 0 : index
    %c0_83 = arith.constant 0 : index
    %c0_84 = arith.constant 0 : index
    %111 = vector.load %arg9[%c0_82, %c0_83, %c0_84] : memref<1x1x128xf32, #tpu.memory_space<vmem>>, vector<1x1x128xf32>
    %112 = vector.shape_cast %111 : vector<1x1x128xf32> to vector<1x128xf32>
    %113 = vector.shape_cast %110 : vector<1x128xf32> to vector<1x1x128xf32>
    tpu.vector_store %arg9[%c0_82, %c0_83, %c0_84], %113 {strides = array<i32>} : memref<1x1x128xf32, #tpu.memory_space<vmem>>, vector<1x1x128xf32>,
    return
  }
  func.func @transform_1(%arg0: i32, %arg1: i32) -> (i32, i32, i32) {
    %c0_i32 = arith.constant 0 : i32
    %c0_i32_0 = arith.constant 0 : i32
    %c0_i32_1 = arith.constant 0 : i32
    %c0_i32_2 = arith.constant 0 : i32
    return %c0_i32, %c0_i32_0, %c0_i32_1 : i32, i32, i32
  }
  func.func @transform_2(%arg0: i32, %arg1: i32) -> (i32, i32) {
    %c0_i32 = arith.constant 0 : i32
    %c0_i32_0 = arith.constant 0 : i32
    %c0_i32_1 = arith.constant 0 : i32
    return %c0_i32, %c0_i32_0 : i32, i32
  }
  func.func @transform_3(%arg0: i32, %arg1: i32) -> (i32, i32) {
    %c0_i32 = arith.constant 0 : i32
    %c0_i32_0 = arith.constant 0 : i32
    %c0_i32_1 = arith.constant 0 : i32
    return %c0_i32, %c0_i32_0 : i32, i32
  }
  func.func @transform_4(%arg0: i32, %arg1: i32) -> (i32, i32) {
    %c0_i32 = arith.constant 0 : i32
    %c0_i32_0 = arith.constant 0 : i32
    %c0_i32_1 = arith.constant 0 : i32
    return %c0_i32, %c0_i32_0 : i32, i32
  }
  func.func @transform_5(%arg0: i32, %arg1: i32) -> (i32, i32, i32, i32) {
    %c0_i32 = arith.constant 0 : i32
    %c0_i32_0 = arith.constant 0 : i32
    %c0_i32_1 = arith.constant 0 : i32
    return %arg0, %arg1, %c0_i32, %c0_i32_0 : i32, i32, i32, i32
  }
  func.func @transform_6(%arg0: i32, %arg1: i32) -> (i32, i32, i32) {
    %c0_i32 = arith.constant 0 : i32
    %c0_i32_0 = arith.constant 0 : i32
    %c0_i32_1 = arith.constant 0 : i32
    return %arg0, %c0_i32, %c0_i32_0 : i32, i32, i32
  }
  func.func @transform_7(%arg0: i32, %arg1: i32) -> (i32, i32, i32) {
    %c0_i32 = arith.constant 0 : i32
    %c0_i32_0 = arith.constant 0 : i32
    %c0_i32_1 = arith.constant 0 : i32
    return %arg0, %c0_i32, %c0_i32_0 : i32, i32, i32
  }
}

module attributes {stable_mosaic.version = 11 : i64} {
  func.func @_bn_relu_pool_kernel(%arg0: i32, %arg1: i32, %arg2: memref<1x8x16x128xf32, #tpu.memory_space<vmem>>, %arg3: memref<1x128xf32, #tpu.memory_space<vmem>>, %arg4: memref<1x128xf32, #tpu.memory_space<vmem>>, %arg5: memref<1x8x16x128xf32, #tpu.memory_space<vmem>>, %arg6: memref<1x4x8x128xf32, #tpu.memory_space<vmem>>) attributes {dimension_semantics = [#tpu.dimension_semantics<parallel>, #tpu.dimension_semantics<parallel>], iteration_bounds = array<i64: 2, 2>, scalar_prefetch = 0 : i64, scratch_operands = 0 : i64, tpu.core_type = #tpu.core_type<tc>, window_params = [{transform_indices = @transform_0, window_bounds = array<i64: 1, 8, 16, 128>}, {pipeline_mode = #tpu.pipeline_mode<synchronous>, transform_indices = @transform_1, window_bounds = array<i64: 1, 128>}, {pipeline_mode = #tpu.pipeline_mode<synchronous>, transform_indices = @transform_2, window_bounds = array<i64: 1, 128>}, {transform_indices = @transform_3, window_bounds = array<i64: 1, 8, 16, 128>}, {transform_indices = @transform_4, window_bounds = array<i64: 1, 4, 8, 128>}]} {
    %c0 = arith.constant 0 : index
    %c0_0 = arith.constant 0 : index
    %c0_1 = arith.constant 0 : index
    %c0_2 = arith.constant 0 : index
    %0 = vector.load %arg2[%c0, %c0_0, %c0_1, %c0_2] : memref<1x8x16x128xf32, #tpu.memory_space<vmem>>, vector<1x8x16x128xf32>
    %1 = vector.shape_cast %0 : vector<1x8x16x128xf32> to vector<8x16x128xf32>
    %c0_3 = arith.constant 0 : index
    %c0_4 = arith.constant 0 : index
    %2 = vector.load %arg3[%c0_3, %c0_4] : memref<1x128xf32, #tpu.memory_space<vmem>>, vector<1x128xf32>
    %3 = vector.shape_cast %2 : vector<1x128xf32> to vector<1x1x128xf32>
    %4 = vector.broadcast %3 : vector<1x1x128xf32> to vector<8x16x128xf32>
    %5 = arith.mulf %1, %4 : vector<8x16x128xf32>
    %c0_5 = arith.constant 0 : index
    %c0_6 = arith.constant 0 : index
    %6 = vector.load %arg4[%c0_5, %c0_6] : memref<1x128xf32, #tpu.memory_space<vmem>>, vector<1x128xf32>
    %7 = vector.shape_cast %6 : vector<1x128xf32> to vector<1x1x128xf32>
    %8 = vector.broadcast %7 : vector<1x1x128xf32> to vector<8x16x128xf32>
    %9 = arith.addf %5, %8 : vector<8x16x128xf32>
    %cst = arith.constant 0.000000e+00 : f32
    %10 = vector.broadcast %cst : f32 to vector<8x16x128xf32>
    %11 = arith.maximumf %9, %10 : vector<8x16x128xf32>
    %c0_7 = arith.constant 0 : index
    %c0_8 = arith.constant 0 : index
    %c0_9 = arith.constant 0 : index
    %c0_10 = arith.constant 0 : index
    %12 = vector.load %arg5[%c0_7, %c0_8, %c0_9, %c0_10] : memref<1x8x16x128xf32, #tpu.memory_space<vmem>>, vector<1x8x16x128xf32>
    %13 = vector.shape_cast %12 : vector<1x8x16x128xf32> to vector<8x16x128xf32>
    %14 = vector.shape_cast %11 : vector<8x16x128xf32> to vector<1x8x16x128xf32>
    tpu.vector_store %arg5[%c0_7, %c0_8, %c0_9, %c0_10], %14 {strides = array<i32>} : memref<1x8x16x128xf32, #tpu.memory_space<vmem>>, vector<1x8x16x128xf32>,
    %c0_11 = arith.constant 0 : index
    %c0_12 = arith.constant 0 : index
    %c0_13 = arith.constant 0 : index
    %c0_14 = arith.constant 0 : index
    %15 = tpu.strided_load %arg5[%c0_11, %c0_12, %c0_13, %c0_14] {strides = array<i32: 1, 1, 2, 1>} : memref<1x8x16x128xf32, #tpu.memory_space<vmem>>, vector<1x8x8x128xf32>
    %16 = vector.shape_cast %15 : vector<1x8x8x128xf32> to vector<8x8x128xf32>
    %c0_15 = arith.constant 0 : index
    %c0_16 = arith.constant 0 : index
    %c1 = arith.constant 1 : index
    %c0_17 = arith.constant 0 : index
    %17 = tpu.strided_load %arg5[%c0_15, %c0_16, %c1, %c0_17] {strides = array<i32: 1, 1, 2, 1>} : memref<1x8x16x128xf32, #tpu.memory_space<vmem>>, vector<1x8x8x128xf32>
    %18 = vector.shape_cast %17 : vector<1x8x8x128xf32> to vector<8x8x128xf32>
    %19 = arith.maximumf %16, %18 : vector<8x8x128xf32>
    %20 = vector.shape_cast %19 : vector<8x8x128xf32> to vector<4x2x8x128xf32>
    %cst_18 = arith.constant dense<0xFF800000> : vector<4x8x128xf32>
    %21 = vector.multi_reduction <maximumf>, %20, %cst_18 [1] : vector<4x2x8x128xf32> to vector<4x8x128xf32>
    %c0_19 = arith.constant 0 : index
    %c0_20 = arith.constant 0 : index
    %c0_21 = arith.constant 0 : index
    %c0_22 = arith.constant 0 : index
    %22 = vector.load %arg6[%c0_19, %c0_20, %c0_21, %c0_22] : memref<1x4x8x128xf32, #tpu.memory_space<vmem>>, vector<1x4x8x128xf32>
    %23 = vector.shape_cast %22 : vector<1x4x8x128xf32> to vector<4x8x128xf32>
    %24 = vector.shape_cast %21 : vector<4x8x128xf32> to vector<1x4x8x128xf32>
    tpu.vector_store %arg6[%c0_19, %c0_20, %c0_21, %c0_22], %24 {strides = array<i32>} : memref<1x4x8x128xf32, #tpu.memory_space<vmem>>, vector<1x4x8x128xf32>,
    return
  }
  func.func @transform_0(%arg0: i32, %arg1: i32) -> (i32, i32, i32, i32) {
    %c0_i32 = arith.constant 0 : i32
    %c0_i32_0 = arith.constant 0 : i32
    %c0_i32_1 = arith.constant 0 : i32
    return %arg0, %arg1, %c0_i32, %c0_i32_0 : i32, i32, i32, i32
  }
  func.func @transform_1(%arg0: i32, %arg1: i32) -> (i32, i32) {
    %c0_i32 = arith.constant 0 : i32
    %c0_i32_0 = arith.constant 0 : i32
    %c0_i32_1 = arith.constant 0 : i32
    return %c0_i32, %c0_i32_0 : i32, i32
  }
  func.func @transform_2(%arg0: i32, %arg1: i32) -> (i32, i32) {
    %c0_i32 = arith.constant 0 : i32
    %c0_i32_0 = arith.constant 0 : i32
    %c0_i32_1 = arith.constant 0 : i32
    return %c0_i32, %c0_i32_0 : i32, i32
  }
  func.func @transform_3(%arg0: i32, %arg1: i32) -> (i32, i32, i32, i32) {
    %c0_i32 = arith.constant 0 : i32
    %c0_i32_0 = arith.constant 0 : i32
    %c0_i32_1 = arith.constant 0 : i32
    return %arg0, %arg1, %c0_i32, %c0_i32_0 : i32, i32, i32, i32
  }
  func.func @transform_4(%arg0: i32, %arg1: i32) -> (i32, i32, i32, i32) {
    %c0_i32 = arith.constant 0 : i32
    %c0_i32_0 = arith.constant 0 : i32
    %c0_i32_1 = arith.constant 0 : i32
    return %arg0, %arg1, %c0_i32, %c0_i32_0 : i32, i32, i32, i32
  }
}

module attributes {stable_mosaic.version = 11 : i64} {
  func.func @_conv_stats_kernel(%arg0: i32, %arg1: i32, %arg2: memref<2x18x18x128xf32, #tpu.memory_space<any>>, %arg3: memref<9x128x128xf32, #tpu.memory_space<vmem>>, %arg4: memref<1x128xf32, #tpu.memory_space<vmem>>, %arg5: memref<1x128xf32, #tpu.memory_space<vmem>>, %arg6: memref<1x128xf32, #tpu.memory_space<vmem>>, %arg7: memref<1x8x16x128xf32, #tpu.memory_space<vmem>>, %arg8: memref<1x1x128xf32, #tpu.memory_space<vmem>>, %arg9: memref<1x1x128xf32, #tpu.memory_space<vmem>>, %arg10: memref<2x10x18x128xf32, #tpu.memory_space<vmem>>, %arg11: memref<2x!tpu.dma_semaphore, #tpu.memory_space<semaphore_mem>>) attributes {dimension_semantics = [#tpu.dimension_semantics<parallel>, #tpu.dimension_semantics<arbitrary>], iteration_bounds = array<i64: 2, 2>, scalar_prefetch = 0 : i64, scratch_operands = 2 : i64, tpu.core_type = #tpu.core_type<tc>, window_params = [{}, {pipeline_mode = #tpu.pipeline_mode<synchronous>, transform_indices = @transform_1, window_bounds = array<i64: 9, 128, 128>}, {pipeline_mode = #tpu.pipeline_mode<synchronous>, transform_indices = @transform_2, window_bounds = array<i64: 1, 128>}, {pipeline_mode = #tpu.pipeline_mode<synchronous>, transform_indices = @transform_3, window_bounds = array<i64: 1, 128>}, {pipeline_mode = #tpu.pipeline_mode<synchronous>, transform_indices = @transform_4, window_bounds = array<i64: 1, 128>}, {transform_indices = @transform_5, window_bounds = array<i64: 1, 8, 16, 128>}, {transform_indices = @transform_6, window_bounds = array<i64: 1, 1, 128>}, {transform_indices = @transform_7, window_bounds = array<i64: 1, 1, 128>}]} {
    %c2_i32 = arith.constant 2 : i32
    %0 = arith.remsi %arg1, %c2_i32 : i32
    %c0_i32 = arith.constant 0 : i32
    %1 = arith.cmpi eq, %arg1, %c0_i32 : i32
    %2 = arith.extui %1 : i1 to i32
    %c0_i32_0 = arith.constant 0 : i32
    %3 = arith.cmpi ne, %2, %c0_i32_0 : i32
    scf.if %3 {
      %c8_i32 = arith.constant 8 : i32
      %152 = arith.muli %arg1, %c8_i32 : i32
      %153 = tpu.assume_multiple %152, 8 : i32
      %c0_i32_102 = arith.constant 0 : i32
      %c0_i32_103 = arith.constant 0 : i32
      %154 = tpu.memref_slice %arg2[%arg0, %153, %c0_i32_102, %c0_i32_103] : memref<2x18x18x128xf32, #tpu.memory_space<any>> -> memref<1x10x18x128xf32, #tpu.memory_space<any>>
      %155 = tpu.memref_squeeze %154 : memref<1x10x18x128xf32, #tpu.memory_space<any>> -> memref<10x18x128xf32, #tpu.memory_space<any>>
      %c0_i32_104 = arith.constant 0 : i32
      %c0_i32_105 = arith.constant 0 : i32
      %c0_i32_106 = arith.constant 0 : i32
      %156 = tpu.memref_slice %arg10[%0, %c0_i32_104, %c0_i32_105, %c0_i32_106] : memref<2x10x18x128xf32, #tpu.memory_space<vmem>> -> memref<1x10x18x128xf32, #tpu.memory_space<vmem>>
      %157 = tpu.memref_squeeze %156 : memref<1x10x18x128xf32, #tpu.memory_space<vmem>> -> memref<10x18x128xf32, #tpu.memory_space<vmem>>
      %158 = tpu.memref_slice %arg11[%0] : memref<2x!tpu.dma_semaphore, #tpu.memory_space<semaphore_mem>> -> memref<1x!tpu.dma_semaphore, #tpu.memory_space<semaphore_mem>>
      %159 = tpu.memref_squeeze %158 : memref<1x!tpu.dma_semaphore, #tpu.memory_space<semaphore_mem>> -> memref<!tpu.dma_semaphore, #tpu.memory_space<semaphore_mem>>
      tpu.enqueue_dma source(%155 : memref<10x18x128xf32, #tpu.memory_space<any>>) target(%157 : memref<10x18x128xf32, #tpu.memory_space<vmem>>) target_semaphore(%159 : memref<!tpu.dma_semaphore, #tpu.memory_space<semaphore_mem>>)
    } else {
    }
    %c0_i32_1 = arith.constant 0 : i32
    %c0_i32_2 = arith.constant 0 : i32
    %c0_i32_3 = arith.constant 0 : i32
    %4 = tpu.memref_slice %arg2[%arg0, %c0_i32_1, %c0_i32_2, %c0_i32_3] : memref<2x18x18x128xf32, #tpu.memory_space<any>> -> memref<1x10x18x128xf32, #tpu.memory_space<any>>
    %5 = tpu.memref_squeeze %4 : memref<1x10x18x128xf32, #tpu.memory_space<any>> -> memref<10x18x128xf32, #tpu.memory_space<any>>
    %c0_i32_4 = arith.constant 0 : i32
    %c0_i32_5 = arith.constant 0 : i32
    %c0_i32_6 = arith.constant 0 : i32
    %6 = tpu.memref_slice %arg10[%0, %c0_i32_4, %c0_i32_5, %c0_i32_6] : memref<2x10x18x128xf32, #tpu.memory_space<vmem>> -> memref<1x10x18x128xf32, #tpu.memory_space<vmem>>
    %7 = tpu.memref_squeeze %6 : memref<1x10x18x128xf32, #tpu.memory_space<vmem>> -> memref<10x18x128xf32, #tpu.memory_space<vmem>>
    %8 = tpu.memref_slice %arg11[%0] : memref<2x!tpu.dma_semaphore, #tpu.memory_space<semaphore_mem>> -> memref<1x!tpu.dma_semaphore, #tpu.memory_space<semaphore_mem>>
    %9 = tpu.memref_squeeze %8 : memref<1x!tpu.dma_semaphore, #tpu.memory_space<semaphore_mem>> -> memref<!tpu.dma_semaphore, #tpu.memory_space<semaphore_mem>>
    tpu.wait_dma2 semaphore(%9 : memref<!tpu.dma_semaphore, #tpu.memory_space<semaphore_mem>>) src(%5 : memref<10x18x128xf32, #tpu.memory_space<any>>) dst(%7 : memref<10x18x128xf32, #tpu.memory_space<vmem>>)
    %c1_i32 = arith.constant 1 : i32
    %10 = arith.addi %arg1, %c1_i32 : i32
    %c2_i32_7 = arith.constant 2 : i32
    %11 = arith.cmpi slt, %10, %c2_i32_7 : i32
    %12 = arith.extui %11 : i1 to i32
    %c0_i32_8 = arith.constant 0 : i32
    %13 = arith.cmpi ne, %12, %c0_i32_8 : i32
    scf.if %13 {
      %c1_i32_102 = arith.constant 1 : i32
      %152 = arith.addi %arg1, %c1_i32_102 : i32
      %c1_i32_103 = arith.constant 1 : i32
      %153 = arith.subi %c1_i32_103, %0 : i32
      %c8_i32 = arith.constant 8 : i32
      %154 = arith.muli %152, %c8_i32 : i32
      %155 = tpu.assume_multiple %154, 8 : i32
      %c0_i32_104 = arith.constant 0 : i32
      %c0_i32_105 = arith.constant 0 : i32
      %156 = tpu.memref_slice %arg2[%arg0, %155, %c0_i32_104, %c0_i32_105] : memref<2x18x18x128xf32, #tpu.memory_space<any>> -> memref<1x10x18x128xf32, #tpu.memory_space<any>>
      %157 = tpu.memref_squeeze %156 : memref<1x10x18x128xf32, #tpu.memory_space<any>> -> memref<10x18x128xf32, #tpu.memory_space<any>>
      %c0_i32_106 = arith.constant 0 : i32
      %c0_i32_107 = arith.constant 0 : i32
      %c0_i32_108 = arith.constant 0 : i32
      %158 = tpu.memref_slice %arg10[%153, %c0_i32_106, %c0_i32_107, %c0_i32_108] : memref<2x10x18x128xf32, #tpu.memory_space<vmem>> -> memref<1x10x18x128xf32, #tpu.memory_space<vmem>>
      %159 = tpu.memref_squeeze %158 : memref<1x10x18x128xf32, #tpu.memory_space<vmem>> -> memref<10x18x128xf32, #tpu.memory_space<vmem>>
      %160 = tpu.memref_slice %arg11[%153] : memref<2x!tpu.dma_semaphore, #tpu.memory_space<semaphore_mem>> -> memref<1x!tpu.dma_semaphore, #tpu.memory_space<semaphore_mem>>
      %161 = tpu.memref_squeeze %160 : memref<1x!tpu.dma_semaphore, #tpu.memory_space<semaphore_mem>> -> memref<!tpu.dma_semaphore, #tpu.memory_space<semaphore_mem>>
      tpu.enqueue_dma source(%157 : memref<10x18x128xf32, #tpu.memory_space<any>>) target(%159 : memref<10x18x128xf32, #tpu.memory_space<vmem>>) target_semaphore(%161 : memref<!tpu.dma_semaphore, #tpu.memory_space<semaphore_mem>>)
    } else {
    }
    %14 = arith.index_cast %0 : i32 to index
    %c0 = arith.constant 0 : index
    %c0_9 = arith.constant 0 : index
    %c0_10 = arith.constant 0 : index
    %15 = vector.load %arg10[%14, %c0, %c0_9, %c0_10] : memref<2x10x18x128xf32, #tpu.memory_space<vmem>>, vector<1x10x18x128xf32>
    %16 = vector.shape_cast %15 : vector<1x10x18x128xf32> to vector<10x18x128xf32>
    %c0_11 = arith.constant 0 : index
    %c0_12 = arith.constant 0 : index
    %17 = vector.load %arg5[%c0_11, %c0_12] : memref<1x128xf32, #tpu.memory_space<vmem>>, vector<1x128xf32>
    %18 = vector.shape_cast %17 : vector<1x128xf32> to vector<1x1x128xf32>
    %19 = vector.broadcast %18 : vector<1x1x128xf32> to vector<10x18x128xf32>
    %20 = arith.mulf %16, %19 : vector<10x18x128xf32>
    %c0_13 = arith.constant 0 : index
    %c0_14 = arith.constant 0 : index
    %21 = vector.load %arg6[%c0_13, %c0_14] : memref<1x128xf32, #tpu.memory_space<vmem>>, vector<1x128xf32>
    %22 = vector.shape_cast %21 : vector<1x128xf32> to vector<1x1x128xf32>
    %23 = vector.broadcast %22 : vector<1x1x128xf32> to vector<10x18x128xf32>
    %24 = arith.addf %20, %23 : vector<10x18x128xf32>
    %cst = arith.constant 0.000000e+00 : f32
    %25 = vector.broadcast %cst : f32 to vector<10x18x128xf32>
    %26 = arith.maximumf %24, %25 : vector<10x18x128xf32>
    %27 = tpu.iota {dimensions = array<i32: 0>} : vector<10x18x1xi32>
    %28 = tpu.iota {dimensions = array<i32: 1>} : vector<10x18x1xi32>
    %c0_i32_15 = arith.constant 0 : i32
    %29 = arith.cmpi eq, %arg1, %c0_i32_15 : i32
    %c1_i32_16 = arith.constant 1 : i32
    %c0_i32_17 = arith.constant 0 : i32
    %30 = arith.select %29, %c1_i32_16, %c0_i32_17 : i32
    %c1_i32_18 = arith.constant 1 : i32
    %31 = arith.cmpi eq, %arg1, %c1_i32_18 : i32
    %c9_i32 = arith.constant 9 : i32
    %c10_i32 = arith.constant 10 : i32
    %32 = arith.select %31, %c9_i32, %c10_i32 : i32
    %33 = vector.broadcast %30 : i32 to vector<10x18x1xi32>
    %34 = arith.cmpi sge, %27, %33 : vector<10x18x1xi32>
    %35 = vector.broadcast %32 : i32 to vector<10x18x1xi32>
    %36 = arith.cmpi slt, %27, %35 : vector<10x18x1xi32>
    %37 = arith.andi %34, %36 : vector<10x18x1xi1>
    %c1_i32_19 = arith.constant 1 : i32
    %38 = vector.broadcast %c1_i32_19 : i32 to vector<10x18x1xi32>
    %39 = arith.cmpi sge, %28, %38 : vector<10x18x1xi32>
    %40 = arith.andi %37, %39 : vector<10x18x1xi1>
    %c16_i32 = arith.constant 16 : i32
    %41 = vector.broadcast %c16_i32 : i32 to vector<10x18x1xi32>
    %42 = arith.cmpi sle, %28, %41 : vector<10x18x1xi32>
    %43 = arith.andi %40, %42 : vector<10x18x1xi1>
    %cst_20 = arith.constant 0.000000e+00 : f32
    %44 = vector.shape_cast %43 : vector<10x18x1xi1> to vector<10x18x1xi1>
    %45 = vector.broadcast %44 : vector<10x18x1xi1> to vector<10x18x128xi1>
    %46 = vector.broadcast %cst_20 : f32 to vector<10x18x128xf32>
    %47 = arith.select %45, %26, %46 : vector<10x18x128xi1>, vector<10x18x128xf32>
    %48 = arith.index_cast %0 : i32 to index
    %c0_21 = arith.constant 0 : index
    %c0_22 = arith.constant 0 : index
    %c0_23 = arith.constant 0 : index
    %49 = vector.load %arg10[%48, %c0_21, %c0_22, %c0_23] : memref<2x10x18x128xf32, #tpu.memory_space<vmem>>, vector<1x10x18x128xf32>
    %50 = vector.shape_cast %49 : vector<1x10x18x128xf32> to vector<10x18x128xf32>
    %51 = vector.shape_cast %47 : vector<10x18x128xf32> to vector<1x10x18x128xf32>
    tpu.vector_store %arg10[%48, %c0_21, %c0_22, %c0_23], %51 {strides = array<i32>} : memref<2x10x18x128xf32, #tpu.memory_space<vmem>>, vector<1x10x18x128xf32>,
    %cst_24 = arith.constant 0.000000e+00 : f32
    %52 = vector.broadcast %cst_24 : f32 to vector<128x128xf32>
    %53 = arith.index_cast %0 : i32 to index
    %c0_25 = arith.constant 0 : index
    %c0_26 = arith.constant 0 : index
    %c0_27 = arith.constant 0 : index
    %54 = vector.load %arg10[%53, %c0_25, %c0_26, %c0_27] : memref<2x10x18x128xf32, #tpu.memory_space<vmem>>, vector<1x8x16x128xf32>
    %55 = vector.shape_cast %54 : vector<1x8x16x128xf32> to vector<8x16x128xf32>
    %56 = vector.shape_cast %55 : vector<8x16x128xf32> to vector<128x128xf32>
    %c0_28 = arith.constant 0 : index
    %c0_29 = arith.constant 0 : index
    %c0_30 = arith.constant 0 : index
    %57 = vector.load %arg3[%c0_28, %c0_29, %c0_30] : memref<9x128x128xf32, #tpu.memory_space<vmem>>, vector<1x128x128xf32>
    %58 = vector.shape_cast %57 : vector<1x128x128xf32> to vector<128x128xf32>
    %cst_31 = arith.constant dense<0.000000e+00> : vector<128x128xf32>
    %59 = tpu.matmul %56, %58, %cst_31 {dimension_numbers = #tpu.dot_dimension_numbers<[1], [0], [0], [1], [0, 0, 1, 1], [], []>} : vector<128x128xf32>, vector<128x128xf32>, vector<128x128xf32> -> vector<128x128xf32>
    %60 = arith.addf %52, %59 : vector<128x128xf32>
    %61 = arith.index_cast %0 : i32 to index
    %c0_32 = arith.constant 0 : index
    %c1 = arith.constant 1 : index
    %c0_33 = arith.constant 0 : index
    %62 = vector.load %arg10[%61, %c0_32, %c1, %c0_33] : memref<2x10x18x128xf32, #tpu.memory_space<vmem>>, vector<1x8x16x128xf32>
    %63 = vector.shape_cast %62 : vector<1x8x16x128xf32> to vector<8x16x128xf32>
    %64 = vector.shape_cast %63 : vector<8x16x128xf32> to vector<128x128xf32>
    %c1_34 = arith.constant 1 : index
    %c0_35 = arith.constant 0 : index
    %c0_36 = arith.constant 0 : index
    %65 = vector.load %arg3[%c1_34, %c0_35, %c0_36] : memref<9x128x128xf32, #tpu.memory_space<vmem>>, vector<1x128x128xf32>
    %66 = vector.shape_cast %65 : vector<1x128x128xf32> to vector<128x128xf32>
    %cst_37 = arith.constant dense<0.000000e+00> : vector<128x128xf32>
    %67 = tpu.matmul %64, %66, %cst_37 {dimension_numbers = #tpu.dot_dimension_numbers<[1], [0], [0], [1], [0, 0, 1, 1], [], []>} : vector<128x128xf32>, vector<128x128xf32>, vector<128x128xf32> -> vector<128x128xf32>
    %68 = arith.addf %60, %67 : vector<128x128xf32>
    %69 = arith.index_cast %0 : i32 to index
    %c0_38 = arith.constant 0 : index
    %c2 = arith.constant 2 : index
    %c0_39 = arith.constant 0 : index
    %70 = vector.load %arg10[%69, %c0_38, %c2, %c0_39] : memref<2x10x18x128xf32, #tpu.memory_space<vmem>>, vector<1x8x16x128xf32>
    %71 = vector.shape_cast %70 : vector<1x8x16x128xf32> to vector<8x16x128xf32>
    %72 = vector.shape_cast %71 : vector<8x16x128xf32> to vector<128x128xf32>
    %c2_40 = arith.constant 2 : index
    %c0_41 = arith.constant 0 : index
    %c0_42 = arith.constant 0 : index
    %73 = vector.load %arg3[%c2_40, %c0_41, %c0_42] : memref<9x128x128xf32, #tpu.memory_space<vmem>>, vector<1x128x128xf32>
    %74 = vector.shape_cast %73 : vector<1x128x128xf32> to vector<128x128xf32>
    %cst_43 = arith.constant dense<0.000000e+00> : vector<128x128xf32>
    %75 = tpu.matmul %72, %74, %cst_43 {dimension_numbers = #tpu.dot_dimension_numbers<[1], [0], [0], [1], [0, 0, 1, 1], [], []>} : vector<128x128xf32>, vector<128x128xf32>, vector<128x128xf32> -> vector<128x128xf32>
    %76 = arith.addf %68, %75 : vector<128x128xf32>
    %77 = arith.index_cast %0 : i32 to index
    %c1_44 = arith.constant 1 : index
    %c0_45 = arith.constant 0 : index
    %c0_46 = arith.constant 0 : index
    %78 = vector.load %arg10[%77, %c1_44, %c0_45, %c0_46] : memref<2x10x18x128xf32, #tpu.memory_space<vmem>>, vector<1x8x16x128xf32>
    %79 = vector.shape_cast %78 : vector<1x8x16x128xf32> to vector<8x16x128xf32>
    %80 = vector.shape_cast %79 : vector<8x16x128xf32> to vector<128x128xf32>
    %c3 = arith.constant 3 : index
    %c0_47 = arith.constant 0 : index
    %c0_48 = arith.constant 0 : index
    %81 = vector.load %arg3[%c3, %c0_47, %c0_48] : memref<9x128x128xf32, #tpu.memory_space<vmem>>, vector<1x128x128xf32>
    %82 = vector.shape_cast %81 : vector<1x128x128xf32> to vector<128x128xf32>
    %cst_49 = arith.constant dense<0.000000e+00> : vector<128x128xf32>
    %83 = tpu.matmul %80, %82, %cst_49 {dimension_numbers = #tpu.dot_dimension_numbers<[1], [0], [0], [1], [0, 0, 1, 1], [], []>} : vector<128x128xf32>, vector<128x128xf32>, vector<128x128xf32> -> vector<128x128xf32>
    %84 = arith.addf %76, %83 : vector<128x128xf32>
    %85 = arith.index_cast %0 : i32 to index
    %c1_50 = arith.constant 1 : index
    %c1_51 = arith.constant 1 : index
    %c0_52 = arith.constant 0 : index
    %86 = vector.load %arg10[%85, %c1_50, %c1_51, %c0_52] : memref<2x10x18x128xf32, #tpu.memory_space<vmem>>, vector<1x8x16x128xf32>
    %87 = vector.shape_cast %86 : vector<1x8x16x128xf32> to vector<8x16x128xf32>
    %88 = vector.shape_cast %87 : vector<8x16x128xf32> to vector<128x128xf32>
    %c4 = arith.constant 4 : index
    %c0_53 = arith.constant 0 : index
    %c0_54 = arith.constant 0 : index
    %89 = vector.load %arg3[%c4, %c0_53, %c0_54] : memref<9x128x128xf32, #tpu.memory_space<vmem>>, vector<1x128x128xf32>
    %90 = vector.shape_cast %89 : vector<1x128x128xf32> to vector<128x128xf32>
    %cst_55 = arith.constant dense<0.000000e+00> : vector<128x128xf32>
    %91 = tpu.matmul %88, %90, %cst_55 {dimension_numbers = #tpu.dot_dimension_numbers<[1], [0], [0], [1], [0, 0, 1, 1], [], []>} : vector<128x128xf32>, vector<128x128xf32>, vector<128x128xf32> -> vector<128x128xf32>
    %92 = arith.addf %84, %91 : vector<128x128xf32>
    %93 = arith.index_cast %0 : i32 to index
    %c1_56 = arith.constant 1 : index
    %c2_57 = arith.constant 2 : index
    %c0_58 = arith.constant 0 : index
    %94 = vector.load %arg10[%93, %c1_56, %c2_57, %c0_58] : memref<2x10x18x128xf32, #tpu.memory_space<vmem>>, vector<1x8x16x128xf32>
    %95 = vector.shape_cast %94 : vector<1x8x16x128xf32> to vector<8x16x128xf32>
    %96 = vector.shape_cast %95 : vector<8x16x128xf32> to vector<128x128xf32>
    %c5 = arith.constant 5 : index
    %c0_59 = arith.constant 0 : index
    %c0_60 = arith.constant 0 : index
    %97 = vector.load %arg3[%c5, %c0_59, %c0_60] : memref<9x128x128xf32, #tpu.memory_space<vmem>>, vector<1x128x128xf32>
    %98 = vector.shape_cast %97 : vector<1x128x128xf32> to vector<128x128xf32>
    %cst_61 = arith.constant dense<0.000000e+00> : vector<128x128xf32>
    %99 = tpu.matmul %96, %98, %cst_61 {dimension_numbers = #tpu.dot_dimension_numbers<[1], [0], [0], [1], [0, 0, 1, 1], [], []>} : vector<128x128xf32>, vector<128x128xf32>, vector<128x128xf32> -> vector<128x128xf32>
    %100 = arith.addf %92, %99 : vector<128x128xf32>
    %101 = arith.index_cast %0 : i32 to index
    %c2_62 = arith.constant 2 : index
    %c0_63 = arith.constant 0 : index
    %c0_64 = arith.constant 0 : index
    %102 = vector.load %arg10[%101, %c2_62, %c0_63, %c0_64] : memref<2x10x18x128xf32, #tpu.memory_space<vmem>>, vector<1x8x16x128xf32>
    %103 = vector.shape_cast %102 : vector<1x8x16x128xf32> to vector<8x16x128xf32>
    %104 = vector.shape_cast %103 : vector<8x16x128xf32> to vector<128x128xf32>
    %c6 = arith.constant 6 : index
    %c0_65 = arith.constant 0 : index
    %c0_66 = arith.constant 0 : index
    %105 = vector.load %arg3[%c6, %c0_65, %c0_66] : memref<9x128x128xf32, #tpu.memory_space<vmem>>, vector<1x128x128xf32>
    %106 = vector.shape_cast %105 : vector<1x128x128xf32> to vector<128x128xf32>
    %cst_67 = arith.constant dense<0.000000e+00> : vector<128x128xf32>
    %107 = tpu.matmul %104, %106, %cst_67 {dimension_numbers = #tpu.dot_dimension_numbers<[1], [0], [0], [1], [0, 0, 1, 1], [], []>} : vector<128x128xf32>, vector<128x128xf32>, vector<128x128xf32> -> vector<128x128xf32>
    %108 = arith.addf %100, %107 : vector<128x128xf32>
    %109 = arith.index_cast %0 : i32 to index
    %c2_68 = arith.constant 2 : index
    %c1_69 = arith.constant 1 : index
    %c0_70 = arith.constant 0 : index
    %110 = vector.load %arg10[%109, %c2_68, %c1_69, %c0_70] : memref<2x10x18x128xf32, #tpu.memory_space<vmem>>, vector<1x8x16x128xf32>
    %111 = vector.shape_cast %110 : vector<1x8x16x128xf32> to vector<8x16x128xf32>
    %112 = vector.shape_cast %111 : vector<8x16x128xf32> to vector<128x128xf32>
    %c7 = arith.constant 7 : index
    %c0_71 = arith.constant 0 : index
    %c0_72 = arith.constant 0 : index
    %113 = vector.load %arg3[%c7, %c0_71, %c0_72] : memref<9x128x128xf32, #tpu.memory_space<vmem>>, vector<1x128x128xf32>
    %114 = vector.shape_cast %113 : vector<1x128x128xf32> to vector<128x128xf32>
    %cst_73 = arith.constant dense<0.000000e+00> : vector<128x128xf32>
    %115 = tpu.matmul %112, %114, %cst_73 {dimension_numbers = #tpu.dot_dimension_numbers<[1], [0], [0], [1], [0, 0, 1, 1], [], []>} : vector<128x128xf32>, vector<128x128xf32>, vector<128x128xf32> -> vector<128x128xf32>
    %116 = arith.addf %108, %115 : vector<128x128xf32>
    %117 = arith.index_cast %0 : i32 to index
    %c2_74 = arith.constant 2 : index
    %c2_75 = arith.constant 2 : index
    %c0_76 = arith.constant 0 : index
    %118 = vector.load %arg10[%117, %c2_74, %c2_75, %c0_76] : memref<2x10x18x128xf32, #tpu.memory_space<vmem>>, vector<1x8x16x128xf32>
    %119 = vector.shape_cast %118 : vector<1x8x16x128xf32> to vector<8x16x128xf32>
    %120 = vector.shape_cast %119 : vector<8x16x128xf32> to vector<128x128xf32>
    %c8 = arith.constant 8 : index
    %c0_77 = arith.constant 0 : index
    %c0_78 = arith.constant 0 : index
    %121 = vector.load %arg3[%c8, %c0_77, %c0_78] : memref<9x128x128xf32, #tpu.memory_space<vmem>>, vector<1x128x128xf32>
    %122 = vector.shape_cast %121 : vector<1x128x128xf32> to vector<128x128xf32>
    %cst_79 = arith.constant dense<0.000000e+00> : vector<128x128xf32>
    %123 = tpu.matmul %120, %122, %cst_79 {dimension_numbers = #tpu.dot_dimension_numbers<[1], [0], [0], [1], [0, 0, 1, 1], [], []>} : vector<128x128xf32>, vector<128x128xf32>, vector<128x128xf32> -> vector<128x128xf32>
    %124 = arith.addf %116, %123 : vector<128x128xf32>
    %c0_80 = arith.constant 0 : index
    %c0_81 = arith.constant 0 : index
    %125 = vector.load %arg4[%c0_80, %c0_81] : memref<1x128xf32, #tpu.memory_space<vmem>>, vector<1x128xf32>
    %126 = vector.broadcast %125 : vector<1x128xf32> to vector<128x128xf32>
    %127 = arith.addf %124, %126 : vector<128x128xf32>
    %128 = vector.shape_cast %127 : vector<128x128xf32> to vector<8x16x128xf32>
    %c0_82 = arith.constant 0 : index
    %c0_83 = arith.constant 0 : index
    %c0_84 = arith.constant 0 : index
    %c0_85 = arith.constant 0 : index
    %129 = vector.load %arg7[%c0_82, %c0_83, %c0_84, %c0_85] : memref<1x8x16x128xf32, #tpu.memory_space<vmem>>, vector<1x8x16x128xf32>
    %130 = vector.shape_cast %129 : vector<1x8x16x128xf32> to vector<8x16x128xf32>
    %131 = vector.shape_cast %128 : vector<8x16x128xf32> to vector<1x8x16x128xf32>
    tpu.vector_store %arg7[%c0_82, %c0_83, %c0_84, %c0_85], %131 {strides = array<i32>} : memref<1x8x16x128xf32, #tpu.memory_space<vmem>>, vector<1x8x16x128xf32>,
    %c0_i32_86 = arith.constant 0 : i32
    %132 = arith.cmpi eq, %arg1, %c0_i32_86 : i32
    %133 = arith.extui %132 : i1 to i32
    %c0_i32_87 = arith.constant 0 : i32
    %134 = arith.cmpi ne, %133, %c0_i32_87 : i32
    scf.if %134 {
      %cst_102 = arith.constant 0.000000e+00 : f32
      %152 = vector.broadcast %cst_102 : f32 to vector<1x128xf32>
      %c0_103 = arith.constant 0 : index
      %c0_104 = arith.constant 0 : index
      %c0_105 = arith.constant 0 : index
      %153 = vector.load %arg8[%c0_103, %c0_104, %c0_105] : memref<1x1x128xf32, #tpu.memory_space<vmem>>, vector<1x1x128xf32>
      %154 = vector.shape_cast %153 : vector<1x1x128xf32> to vector<1x128xf32>
      %155 = vector.shape_cast %152 : vector<1x128xf32> to vector<1x1x128xf32>
      tpu.vector_store %arg8[%c0_103, %c0_104, %c0_105], %155 {strides = array<i32>} : memref<1x1x128xf32, #tpu.memory_space<vmem>>, vector<1x1x128xf32>,
      %cst_106 = arith.constant 0.000000e+00 : f32
      %156 = vector.broadcast %cst_106 : f32 to vector<1x128xf32>
      %c0_107 = arith.constant 0 : index
      %c0_108 = arith.constant 0 : index
      %c0_109 = arith.constant 0 : index
      %157 = vector.load %arg9[%c0_107, %c0_108, %c0_109] : memref<1x1x128xf32, #tpu.memory_space<vmem>>, vector<1x1x128xf32>
      %158 = vector.shape_cast %157 : vector<1x1x128xf32> to vector<1x128xf32>
      %159 = vector.shape_cast %156 : vector<1x128xf32> to vector<1x1x128xf32>
      tpu.vector_store %arg9[%c0_107, %c0_108, %c0_109], %159 {strides = array<i32>} : memref<1x1x128xf32, #tpu.memory_space<vmem>>, vector<1x1x128xf32>,
    } else {
    }
    %c0_88 = arith.constant 0 : index
    %c0_89 = arith.constant 0 : index
    %c0_90 = arith.constant 0 : index
    %135 = vector.load %arg8[%c0_88, %c0_89, %c0_90] : memref<1x1x128xf32, #tpu.memory_space<vmem>>, vector<1x1x128xf32>
    %136 = vector.shape_cast %135 : vector<1x1x128xf32> to vector<1x128xf32>
    %cst_91 = arith.constant dense<0.000000e+00> : vector<128xf32>
    %137 = vector.multi_reduction <add>, %127, %cst_91 [0] : vector<128x128xf32> to vector<128xf32>
    %138 = vector.shape_cast %137 : vector<128xf32> to vector<1x128xf32>
    %139 = arith.addf %136, %138 : vector<1x128xf32>
    %c0_92 = arith.constant 0 : index
    %c0_93 = arith.constant 0 : index
    %c0_94 = arith.constant 0 : index
    %140 = vector.load %arg8[%c0_92, %c0_93, %c0_94] : memref<1x1x128xf32, #tpu.memory_space<vmem>>, vector<1x1x128xf32>
    %141 = vector.shape_cast %140 : vector<1x1x128xf32> to vector<1x128xf32>
    %142 = vector.shape_cast %139 : vector<1x128xf32> to vector<1x1x128xf32>
    tpu.vector_store %arg8[%c0_92, %c0_93, %c0_94], %142 {strides = array<i32>} : memref<1x1x128xf32, #tpu.memory_space<vmem>>, vector<1x1x128xf32>,
    %c0_95 = arith.constant 0 : index
    %c0_96 = arith.constant 0 : index
    %c0_97 = arith.constant 0 : index
    %143 = vector.load %arg9[%c0_95, %c0_96, %c0_97] : memref<1x1x128xf32, #tpu.memory_space<vmem>>, vector<1x1x128xf32>
    %144 = vector.shape_cast %143 : vector<1x1x128xf32> to vector<1x128xf32>
    %145 = arith.mulf %127, %127 : vector<128x128xf32>
    %cst_98 = arith.constant dense<0.000000e+00> : vector<128xf32>
    %146 = vector.multi_reduction <add>, %145, %cst_98 [0] : vector<128x128xf32> to vector<128xf32>
    %147 = vector.shape_cast %146 : vector<128xf32> to vector<1x128xf32>
    %148 = arith.addf %144, %147 : vector<1x128xf32>
    %c0_99 = arith.constant 0 : index
    %c0_100 = arith.constant 0 : index
    %c0_101 = arith.constant 0 : index
    %149 = vector.load %arg9[%c0_99, %c0_100, %c0_101] : memref<1x1x128xf32, #tpu.memory_space<vmem>>, vector<1x1x128xf32>
    %150 = vector.shape_cast %149 : vector<1x1x128xf32> to vector<1x128xf32>
    %151 = vector.shape_cast %148 : vector<1x128xf32> to vector<1x1x128xf32>
    tpu.vector_store %arg9[%c0_99, %c0_100, %c0_101], %151 {strides = array<i32>} : memref<1x1x128xf32, #tpu.memory_space<vmem>>, vector<1x1x128xf32>,
    return
  }
  func.func @transform_1(%arg0: i32, %arg1: i32) -> (i32, i32, i32) {
    %c0_i32 = arith.constant 0 : i32
    %c0_i32_0 = arith.constant 0 : i32
    %c0_i32_1 = arith.constant 0 : i32
    %c0_i32_2 = arith.constant 0 : i32
    return %c0_i32, %c0_i32_0, %c0_i32_1 : i32, i32, i32
  }
  func.func @transform_2(%arg0: i32, %arg1: i32) -> (i32, i32) {
    %c0_i32 = arith.constant 0 : i32
    %c0_i32_0 = arith.constant 0 : i32
    %c0_i32_1 = arith.constant 0 : i32
    return %c0_i32, %c0_i32_0 : i32, i32
  }
  func.func @transform_3(%arg0: i32, %arg1: i32) -> (i32, i32) {
    %c0_i32 = arith.constant 0 : i32
    %c0_i32_0 = arith.constant 0 : i32
    %c0_i32_1 = arith.constant 0 : i32
    return %c0_i32, %c0_i32_0 : i32, i32
  }
  func.func @transform_4(%arg0: i32, %arg1: i32) -> (i32, i32) {
    %c0_i32 = arith.constant 0 : i32
    %c0_i32_0 = arith.constant 0 : i32
    %c0_i32_1 = arith.constant 0 : i32
    return %c0_i32, %c0_i32_0 : i32, i32
  }
  func.func @transform_5(%arg0: i32, %arg1: i32) -> (i32, i32, i32, i32) {
    %c0_i32 = arith.constant 0 : i32
    %c0_i32_0 = arith.constant 0 : i32
    %c0_i32_1 = arith.constant 0 : i32
    return %arg0, %arg1, %c0_i32, %c0_i32_0 : i32, i32, i32, i32
  }
  func.func @transform_6(%arg0: i32, %arg1: i32) -> (i32, i32, i32) {
    %c0_i32 = arith.constant 0 : i32
    %c0_i32_0 = arith.constant 0 : i32
    %c0_i32_1 = arith.constant 0 : i32
    return %arg0, %c0_i32, %c0_i32_0 : i32, i32, i32
  }
  func.func @transform_7(%arg0: i32, %arg1: i32) -> (i32, i32, i32) {
    %c0_i32 = arith.constant 0 : i32
    %c0_i32_0 = arith.constant 0 : i32
    %c0_i32_1 = arith.constant 0 : i32
    return %arg0, %c0_i32, %c0_i32_0 : i32, i32, i32
  }
}

</mosaic_0001>

<bundles_post_ra>
// kernel: down_block_forward.5
= control target key start
LH: loop header
LB: loop body
LE: loop exit
PB: predicated region body
PF: predicated region fallthrough
CT: control target
= control target key end

     0   :  { %s696_s15 = smov 0   ;;  %s698_s16 = smov 0   ;;  %s862_s0 = inlined_call_operand.vmem [shape: f32[2,16,16,128], index: 0, kind: input, shape index: {}]   ;;  %s863_s1 = inlined_call_operand.vmem [shape: f32[1,128], index: 1, kind: input, shape index: {}]   ;;  %s864_s2 = inlined_call_operand.vmem [shape: f32[1,128], index: 2, kind: input, shape index: {}]   ;;  %s865_s3 = inlined_call_operand.vmem [shape: f32[2,16,16,128], index: 3, kind: output, shape index: {0}]   ;;  %s866_s4 = inlined_call_operand.vmem [shape: f32[2,8,8,128], index: 4, kind: output, shape index: {1}]  }
   0x1   :  { %s700_s17 = smov 0   ;;  %s702_s18 = smov 0  }
   0x2   :  { %s704_s19 = smov 0  }
   0x3 LB: > { %s24_s20 = sadd.s32 1, %s661_s17  ;;  %s27_s21 = sadd.s32 1, %s665_s18  ;;  %s669_s19 = sphi %s704_s19, %s15_s19   ;;  %s665_s18 = sphi %s702_s18, %s871_s18   ;;  %s661_s17 = sphi %s700_s17, %s870_s17   ;;  %s657_s16 = sphi %s698_s16, %s869_s16   ;;  %s653_s15 = sphi %s696_s15, %s868_s15  }
   0x4   : > { %p25_p0 = scmp.ge.s32.totalorder %s24_s20, 2  ;;  %p560_p1 = scmp.ge.s32.totalorder %s669_s19, 1 }
   0x5   : > { %p189_p2 = scmp.lt.s32.totalorder %s669_s19, 5 }
   0x6   : > { %s873_s20 = smov (%p25_p0, %s24_s20), 0  ;;  %s875_s21 = smov (!%p25_p0, %s27_s21), %s665_s18 }
   0x7   : > { %p190_p3 = pnand %p560_p1, %p189_p2  ;;  %p29_p4 = scmp.ge.s32.totalorder %s875_s21, 2 }
   0x8   : > { %s561_s22 = sshll.u32 (!%p190_p3), %s653_s15, 3  ;;  %p235_p5 = scmp.lt.s32.totalorder (!%p190_p3), %s657_s16, 1  ;;  %v735_v0 = vld [vmem:[%s863_s1] ss:$0 sm:$0xff] (!%p190_p3) }
   0x9   : > { %s877_s21 = smov (%p29_p4, %s875_s21), 0  ;;  %193 = sbr.rel (%p190_p3) target bundleno = 51 (0x33), region = 32 }
   0xa   : > { %p237_p6 = scmp.lt.s32.totalorder (!%p190_p3), %s561_s22, 15  ;;  %v745_v1 = vld [vmem:[%s864_s2] ss:$0 sm:$0xff] (!%p190_p3)  ;;  %s569_s8 = sshll.u32 (!%p190_p3), %s653_s15, 2 }
   0xb   : > { %p768_p7 = scmp.lt.s32.totalorder (!%p190_p3), %s569_s8, 7 }
  0x10   : > { %s879_s16 = smov (!%p235_p5, %s657_s16), 1  ;;  %s881_s22 = smov (!%p237_p6, %s561_s22), 15 }
  0x11   : > { %s563_s23 = sshll.u32 %s879_s16, 5  ;;  %s562_s24 = sshll.u32 %s881_s22, 1 }
  0x12   : > { %s241_s25 = sadd.s32 %s563_s23, %s562_s24  ;;  %s883_s8 = smov (!%p768_p7, %s569_s8), 7 }
  0x13   : > { %s564_s26 = sshll.u32 %s241_s25, 3  ;;  %s570_s13 = sshll.u32 %s879_s16, 3 }
  0x14   : > { %s740_s5 = scalar_lea.vmem %s862_s0, %s564_s26  ;;  %s775_s12 = scalar_lea.vmem %s865_s3, %s564_s26 }
  0x15   : > { %v266_v2 = vld [vmem:[%s740_s5] sm:$0xff]  ;;  %v267_v3 = vld [vmem:[%s740_s5 + $0x8] sm:$0xff]  ;;  %v268_v4 = vld [vmem:[%s740_s5 + $0x10] sm:$0xff]  ;;  %s262_s14 = sadd.s32 %s570_s13, %s883_s8 }
  0x16   : > { %v289_v5 = vmul.f32 %v735_v0, %v266_v2  ;;  %v290_v6 = vmul.f32 %v735_v0, %v267_v3  ;;  %v291_v7 = vmul.f32 %v735_v0, %v268_v4  ;;  %v269_v8 = vld [vmem:[%s740_s5 + $0x18] sm:$0xff]  ;;  %v270_v9 = vld [vmem:[%s740_s5 + $0x20] sm:$0xff]  ;;  %v271_v10 = vld [vmem:[%s740_s5 + $0x28] sm:$0xff]  ;;  %s571_s15 = sshll.u32 %s262_s14, 3 }
  0x17   : > { %v292_v11 = vmul.f32 %v735_v0, %v269_v8  ;;  %v293_v12 = vmul.f32 %v735_v0, %v270_v9  ;;  %v294_v13 = vmul.f32 %v735_v0, %v271_v10  ;;  %v272_v14 = vld [vmem:[%s740_s5 + $0x30] sm:$0xff]  ;;  %v273_v15 = vld [vmem:[%s740_s5 + $0x38] sm:$0xff]  ;;  %v274_v24 = vld [vmem:[%s740_s5 + $0x40] sm:$0xff]  ;;  %s264_s23 = scalar_lea.vmem %s866_s4, %s571_s15 }
  0x18   : > { %v312_v16 = vadd.f32 %v745_v1, %v289_v5  ;;  %v313_v17 = vadd.f32 %v745_v1, %v290_v6  ;;  %v314_v18 = vadd.f32 %v745_v1, %v291_v7  ;;  %v295_v19 = vmul.f32 %v735_v0, %v272_v14  ;;  %v275_v25 = vld [vmem:[%s740_s5 + $0x48] sm:$0xff]  ;;  %v276_v26 = vld [vmem:[%s740_s5 + $0x50] sm:$0xff]  ;;  %v277_v31 = vld [vmem:[%s740_s5 + $0x58] sm:$0xff] }
  0x19   : > { %v315_v20 = vadd.f32 %v745_v1, %v292_v11  ;;  %v316_v21 = vadd.f32 %v745_v1, %v293_v12  ;;  %v317_v22 = vadd.f32 %v745_v1, %v294_v13  ;;  %v296_v23 = vmul.f32 %v735_v0, %v273_v15  ;;  %v278_v32 = vld [vmem:[%s740_s5 + $0x60] sm:$0xff]  ;;  %v279_v33 = vld [vmem:[%s740_s5 + $0x68] sm:$0xff]  ;;  %v280_v38 = vld [vmem:[%s740_s5 + $0x70] sm:$0xff] }
  0x1a   : > { %v328_v27 = vmax.f32 %v312_v16, 0.0  ;;  %v329_v28 = vmax.f32 %v313_v17, 0.0  ;;  %v330_v29 = vmax.f32 %v314_v18, 0.0  ;;  %v318_v30 = vadd.f32 %v745_v1, %v295_v19  ;;  %v281_v43 = vld [vmem:[%s740_s5 + $0x78] sm:$0xff] }
  0x1b   : > { %v331_v34 = vmax.f32 %v315_v20, 0.0  ;;  %v332_v35 = vmax.f32 %v316_v21, 0.0  ;;  %v333_v36 = vmax.f32 %v317_v22, 0.0  ;;  %v319_v37 = vadd.f32 %v745_v1, %v296_v23 }
  0x1c   : > { %344 = vst [vmem:[%s775_s12] sm:$0xff] %v328_v27  ;;  %345 = vst [vmem:[%s775_s12 + $0x8] sm:$0xff] %v329_v28  ;;  %v334_v39 = vmax.f32 %v318_v30, 0.0  ;;  %v297_v40 = vmul.f32 %v735_v0, %v274_v24  ;;  %v298_v41 = vmul.f32 %v735_v0, %v275_v25  ;;  %v299_v42 = vmul.f32 %v735_v0, %v276_v26 }
  0x1d   : > { %346 = vst [vmem:[%s775_s12 + $0x10] sm:$0xff] %v330_v29  ;;  %347 = vst [vmem:[%s775_s12 + $0x18] sm:$0xff] %v331_v34  ;;  %v335_v44 = vmax.f32 %v319_v37, 0.0  ;;  %v300_v45 = vmul.f32 %v735_v0, %v277_v31  ;;  %v301_v46 = vmul.f32 %v735_v0, %v278_v32  ;;  %v302_v47 = vmul.f32 %v735_v0, %v279_v33 }
  0x1e   : > { %348 = vst [vmem:[%s775_s12 + $0x20] sm:$0xff] %v332_v35  ;;  %349 = vst [vmem:[%s775_s12 + $0x28] sm:$0xff] %v333_v36  ;;  %v320_v48 = vadd.f32 %v745_v1, %v297_v40  ;;  %v321_v49 = vadd.f32 %v745_v1, %v298_v41  ;;  %v322_v50 = vadd.f32 %v745_v1, %v299_v42 }
  0x1f   : > { %350 = vst [vmem:[%s775_s12 + $0x30] sm:$0xff] %v334_v39  ;;  %v303_v51 = vmul.f32 %v735_v0, %v280_v38  ;;  %351 = vst [vmem:[%s775_s12 + $0x38] sm:$0xff] %v335_v44  ;;  %v323_v52 = vadd.f32 %v745_v1, %v300_v45  ;;  %v324_v53 = vadd.f32 %v745_v1, %v301_v46 }
  0x20   : > { %v325_v54 = vadd.f32 %v745_v1, %v302_v47  ;;  %v304_v55 = vmul.f32 %v735_v0, %v281_v43  ;;  %v336_v56 = vmax.f32 %v320_v48, 0.0  ;;  %v337_v57 = vmax.f32 %v321_v49, 0.0 }
  0x21   : > { %v338_v58 = vmax.f32 %v322_v50, 0.0  ;;  %v326_v59 = vadd.f32 %v745_v1, %v303_v51  ;;  %v339_v60 = vmax.f32 %v323_v52, 0.0  ;;  %v340_v61 = vmax.f32 %v324_v53, 0.0 }
  0x22   : > { %v341_v62 = vmax.f32 %v325_v54, 0.0  ;;  %v327_v63 = vadd.f32 %v745_v1, %v304_v55  ;;  %352 = vst [vmem:[%s775_s12 + $0x40] sm:$0xff] %v336_v56  ;;  %353 = vst [vmem:[%s775_s12 + $0x48] sm:$0xff] %v337_v57 }
  0x23   : > { %354 = vst [vmem:[%s775_s12 + $0x50] sm:$0xff] %v338_v58  ;;  %v342_v0 = vmax.f32 %v326_v59, 0.0  ;;  %355 = vst [vmem:[%s775_s12 + $0x58] sm:$0xff] %v339_v60  ;;  %v360_v3 = vld [vmem:[%s775_s12] ss:$2 sm:$0xff] }
  0x24   : > { %356 = vst [vmem:[%s775_s12 + $0x60] sm:$0xff] %v340_v61  ;;  %357 = vst [vmem:[%s775_s12 + $0x68] sm:$0xff] %v341_v62  ;;  %v343_v2 = vmax.f32 %v327_v63, 0.0  ;;  %v581_v4 = vld [vmem:[%s775_s12 + $0x1] ss:$2 sm:$0xff] }
  0x25   : > { %358 = vst [vmem:[%s775_s12 + $0x70] sm:$0xff] %v342_v0  ;;  %v574_v5 = vld [vmem:[%s775_s12 + $0x10] ss:$2 sm:$0xff]  ;;  %v582_v1 = vld [vmem:[%s775_s12 + $0x11] ss:$2 sm:$0xff]  ;;  %v391_v6 = vmax.f32 %v360_v3, %v581_v4 }
  0x26   : > { %v575_v7 = vld [vmem:[%s775_s12 + $0x20] ss:$2 sm:$0xff]  ;;  %359 = vst [vmem:[%s775_s12 + $0x78] sm:$0xff] %v343_v2  ;;  %v392_v8 = vmax.f32 %v574_v5, %v582_v1  ;;  %v583_v9 = vld [vmem:[%s775_s12 + $0x21] ss:$2 sm:$0xff] }
  0x27   : > { %v576_v10 = vld [vmem:[%s775_s12 + $0x30] ss:$2 sm:$0xff]  ;;  %v584_v11 = vld [vmem:[%s775_s12 + $0x31] ss:$2 sm:$0xff]  ;;  %v393_v12 = vmax.f32 %v575_v7, %v583_v9 }
  0x28   : > { %v399_v13 = vmax.f32 %v391_v6, %v392_v8  ;;  %v394_v14 = vmax.f32 %v576_v10, %v584_v11 }
  0x29   : > { %v577_v16 = vld [vmem:[%s775_s12 + $0x40] ss:$2 sm:$0xff]  ;;  %v585_v17 = vld [vmem:[%s775_s12 + $0x41] ss:$2 sm:$0xff] }
  0x2a   : > { %403 = vst [vmem:[%s264_s23] sm:$0xff] %v399_v13  ;;  %v400_v15 = vmax.f32 %v393_v12, %v394_v14  ;;  %v578_v18 = vld [vmem:[%s775_s12 + $0x50] ss:$2 sm:$0xff]  ;;  %v586_v19 = vld [vmem:[%s775_s12 + $0x51] ss:$2 sm:$0xff]  ;;  %v395_v20 = vmax.f32 %v577_v16, %v585_v17 }
  0x2b   : > { %v579_v21 = vld [vmem:[%s775_s12 + $0x60] ss:$2 sm:$0xff]  ;;  %v396_v22 = vmax.f32 %v578_v18, %v586_v19  ;;  %v587_v23 = vld [vmem:[%s775_s12 + $0x61] ss:$2 sm:$0xff] }
  0x2c   : > { %404 = vst [vmem:[%s264_s23 + $0x8] sm:$0xff] %v400_v15  ;;  %v397_v26 = vmax.f32 %v579_v21, %v587_v23 }
  0x2d   : > { %v580_v24 = vld [vmem:[%s775_s12 + $0x70] ss:$2 sm:$0xff]  ;;  %v588_v25 = vld [vmem:[%s775_s12 + $0x71] ss:$2 sm:$0xff]  ;;  %v401_v27 = vmax.f32 %v395_v20, %v396_v22 }
  0x2e   : > { %v398_v28 = vmax.f32 %v580_v24, %v588_v25 }
  0x2f   : > { %405 = vst [vmem:[%s264_s23 + $0x10] sm:$0xff] %v401_v27 }
  0x30   : > { %v402_v29 = vmax.f32 %v397_v26, %v398_v28 }
  0x32   : > { %406 = vst [vmem:[%s264_s23 + $0x18] sm:$0xff] %v402_v29 }
  0x33 PF: > { %s15_s19 = sadd.s32 1, %s669_s19   ;;  %s868_s15 = smov %s661_s17 }
  0x34   : > { %p12_p8 = scmp.ge.s32.totalorder %s15_s19, 6   ;;  %s869_s16 = smov %s665_s18 }
  0x35   : > { %s870_s17 = smov %s873_s20  ;;  %s871_s18 = smov %s877_s21 }
  0x36   :  { %14 = sbr.rel (!%p12_p8) target bundleno = 3 (0x3), region = 89 }

// kernel: down_block_forward.3
= control target key start
LH: loop header
LB: loop body
LE: loop exit
PB: predicated region body
PF: predicated region fallthrough
CT: control target
= control target key end

     0   :  { %s4251_s24 = smov 0   ;;  %s4253_s25 = smov 0   ;;  %s5263_s0 = inlined_call_operand.vmem [shape: f32[2,18,18,128], index: 0, kind: input, shape index: {}]   ;;  %s5264_s1 = inlined_call_operand.vmem [shape: f32[9,128,128], index: 1, kind: input, shape index: {}]   ;;  %s5265_s2 = inlined_call_operand.vmem [shape: f32[1,128], index: 2, kind: input, shape index: {}]   ;;  %s5266_s3 = inlined_call_operand.vmem [shape: f32[1,128], index: 3, kind: input, shape index: {}, may-alias: {3,4}]   ;;  %s5267_s4 = inlined_call_operand.vmem [shape: f32[1,128], index: 4, kind: input, shape index: {}, may-alias: {3,4}]   ;;  %s5268_s5 = inlined_call_operand.vmem [shape: f32[2,16,16,128], index: 5, kind: output, shape index: {0}]   ;;  %s5269_s6 = inlined_call_operand.vmem [shape: f32[2,1,128], index: 6, kind: output, shape index: {1}]   ;;  %s5270_s7 = inlined_call_operand.vmem [shape: f32[2,1,128], index: 7, kind: output, shape index: {2}]  }
   0x1   :  { %s4255_s26 = smov 0   ;;  %s4257_s27 = smov 0  }
   0x2   :  { %s4259_s3 = smov 0  }
   0x3 LB: > { %s27_s4 = sadd.s32 1, %s4200_s26  ;;  %s30_s28 = sadd.s32 1, %s4204_s27  ;;  %s4208_s3 = sphi %s4259_s3, %s18_s3   ;;  %s4204_s27 = sphi %s4257_s27, %s5276_s27   ;;  %s4200_s26 = sphi %s4255_s26, %s5275_s26   ;;  %s4196_s25 = sphi %s4253_s25, %s5274_s25   ;;  %s4192_s24 = sphi %s4251_s24, %s5273_s24  }
   0x4   : > { %p28_p0 = scmp.ge.s32.totalorder %s27_s4, 2  ;;  %p2592_p1 = scmp.ge.s32.totalorder %s4208_s3, 1 }
   0x5   : > { %p222_p2 = scmp.lt.s32.totalorder %s4208_s3, 5 }
   0x6   : > { %s5278_s4 = smov (%p28_p0, %s27_s4), 0  ;;  %s5280_s28 = smov (!%p28_p0, %s30_s28), %s4204_s27 }
   0x7   : > { %p223_p3 = pnand %p2592_p1, %p222_p2  ;;  %p32_p4 = scmp.ge.s32.totalorder %s5280_s28, 2 }
   0x8   : > { %s2593_s29 = sshll.u32 (!%p223_p3), %s4192_s24, 3  ;;  %p259_p5 = scmp.lt.s32.totalorder (!%p223_p3), %s4196_s25, 1 }
   0x9   : > { %s5282_s28 = smov (%p32_p4, %s5280_s28), 0  ;;  %226 = sbr.rel (%p223_p3) target bundleno = 513 (0x201), region = 36 }
   0xa   : > { %5271 = sst [smem:[#allocation7_spill]] %s5282_s28  ;;  %p261_p6 = scmp.lt.s32.totalorder (!%p223_p3), %s2593_s29, 15 }
   0xb   : > { %p275_p7 = scmp.lt.s32.totalorder (!%p223_p3), %s4192_s24, 0  ;;  %s276_s17 = ssub.s32 (!%p223_p3), 0, %s4192_s24 }
   0xc   : > { %s2597_s19 = smin.u32 (!%p223_p3), %s4192_s24, %s276_s17  ;;  %p2598_p8 = scmp.ne.s32.totalorder (!%p223_p3), %s4192_s24, 0 }
   0xd   : > { %s278_s23 = sand.u32 (!%p223_p3), 1, %s2597_s19  }
   0xe   : > { %s279_s28 = ssub.s32 (!%p223_p3), 0, %s278_s23 }
  0x10   : > { %s260_s30 = scalar_select %p259_p5, %s4196_s25, 1 }
  0x11   : > { %s5284_s29 = smov (!%p261_p6, %s2593_s29), 15  ;;  %s5286_s28 = smov (!%p275_p7, %s279_s28), %s278_s23 }
  0x12   : > { %s2595_s8 = sshll.u32 %s260_s30, 5  ;;  %s4292_s11 = scalar_lea.vmem %s5269_s6, %s260_s30 }
  0x13   : > { %s2594_s12 = sshll.u32 %s5284_s29, 1  ;;  %s4297_s15 = scalar_lea.vmem %s5270_s7, %s260_s30 }
  0x14   : > { %s265_s16 = sadd.s32 %s2595_s8, %s2594_s12  ;;  %284 = sbr.rel (%p2598_p8) target bundleno = 44 (0x2c), region = 40 }
  0x15   : > { %s2596_s18 = sshll.u32 %s265_s16, 3  ;;  %s2600_s29 = smul.u32 (!%p2598_p8), 192, %s4192_s24 }
  0x16   : > { %s4304_s22 = scalar_lea.vmem %s5268_s5, %s2596_s18  ;;  %s287_s30 = smul.u32 (!%p2598_p8), 432, %s4196_s25 }
  0x17   : > { %s290_s8 = smul.u32 (!%p2598_p8), 240, %s5286_s28  ;;  %s292_s16 = scalar_lea.sflag (!%p2598_p8), [#allocation3], %s5286_s28 }
  0x18   : > { %s288_s9 = sadd.s32 (!%p2598_p8), %s2600_s29, %s287_s30 }
  0x19   : > { %s4319_s13 = scalar_lea.vmem (!%p2598_p8), %s5263_s0, %s288_s9  ;;  %s4324_s14 = scalar_lea.vmem (!%p2598_p8), [#allocation2], %s290_s8 }
  0x1a   : > { %v348_v0 = vld [vmem:[%s4319_s13] sm:$0xff] (!%p2598_p8)  ;;  %v350_v1 = vld [vmem:[%s4319_s13 + $0x8] sm:$0xff] (!%p2598_p8)  ;;  %v352_v2 = vld [vmem:[%s4319_s13 + $0x18] sm:$0xff] (!%p2598_p8) }
  0x1b   : > { %349 = vst [vmem:[%s4324_s14] sm:$0xff] %v348_v0  ;;  %351 = vst [vmem:[%s4324_s14 + $0x8] sm:$0xff] %v350_v1  ;;  %v354_v3 = vld [vmem:[%s4319_s13 + $0x20] sm:$0xff]  ;;  %v356_v4 = vld [vmem:[%s4319_s13 + $0x30] sm:$0xff] }
  0x1c   : > { %353 = vst [vmem:[%s4324_s14 + $0x18] sm:$0xff] %v352_v2  ;;  %v358_v5 = vld [vmem:[%s4319_s13 + $0x38] sm:$0xff]  ;;  %355 = vst [vmem:[%s4324_s14 + $0x20] sm:$0xff] %v354_v3  ;;  %v360_v6 = vld [vmem:[%s4319_s13 + $0x48] sm:$0xff] }
  0x1d   : > { %357 = vst [vmem:[%s4324_s14 + $0x30] sm:$0xff] %v356_v4  ;;  %359 = vst [vmem:[%s4324_s14 + $0x38] sm:$0xff] %v358_v5  ;;  %v362_v7 = vld [vmem:[%s4319_s13 + $0x50] sm:$0xff]  ;;  %v364_v8 = vld [vmem:[%s4319_s13 + $0x60] sm:$0xff] }
  0x1e   : > { %361 = vst [vmem:[%s4324_s14 + $0x48] sm:$0xff] %v360_v6  ;;  %363 = vst [vmem:[%s4324_s14 + $0x50] sm:$0xff] %v362_v7  ;;  %v366_v9 = vld [vmem:[%s4319_s13 + $0x68] sm:$0xff]  ;;  %v368_v10 = vld [vmem:[%s4319_s13 + $0x78] sm:$0xff] }
  0x1f   : > { %365 = vst [vmem:[%s4324_s14 + $0x60] sm:$0xff] %v364_v8  ;;  %v370_v11 = vld [vmem:[%s4319_s13 + $0x80] sm:$0xff]  ;;  %367 = vst [vmem:[%s4324_s14 + $0x68] sm:$0xff] %v366_v9  ;;  %v372_v12 = vld [vmem:[%s4319_s13 + $0x90] sm:$0xff] }
  0x20   : > { %369 = vst [vmem:[%s4324_s14 + $0x78] sm:$0xff] %v368_v10  ;;  %371 = vst [vmem:[%s4324_s14 + $0x80] sm:$0xff] %v370_v11  ;;  %v374_v13 = vld [vmem:[%s4319_s13 + $0x98] sm:$0xff]  ;;  %v376_v14 = vld [vmem:[%s4319_s13 + $0xa8] sm:$0xff] }
  0x21   : > { %373 = vst [vmem:[%s4324_s14 + $0x90] sm:$0xff] %v372_v12  ;;  %375 = vst [vmem:[%s4324_s14 + $0x98] sm:$0xff] %v374_v13  ;;  %v378_v15 = vld [vmem:[%s4319_s13 + $0xb0] sm:$0xff]  ;;  %v380_v16 = vld [vmem:[%s4319_s13 + $0xc0] sm:$0xff] }
  0x22   : > { %377 = vst [vmem:[%s4324_s14 + $0xa8] sm:$0xff] %v376_v14  ;;  %v382_v17 = vld [vmem:[%s4319_s13 + $0xc8] sm:$0xff]  ;;  %379 = vst [vmem:[%s4324_s14 + $0xb0] sm:$0xff] %v378_v15  ;;  %v384_v18 = vld [vmem:[%s4319_s13 + $0xd8] sm:$0xff] }
  0x23   : > { %381 = vst [vmem:[%s4324_s14 + $0xc0] sm:$0xff] %v380_v16  ;;  %383 = vst [vmem:[%s4324_s14 + $0xc8] sm:$0xff] %v382_v17  ;;  %v386_v19 = vld [vmem:[%s4319_s13 + $0xe0] sm:$0xff]  ;;  %v2601_v20 = vld [vmem:[%s4319_s13 + $0x10] sm:$0x3] }
  0x24   : > { %385 = vst [vmem:[%s4324_s14 + $0xd8] sm:$0xff] %v384_v18  ;;  %387 = vst [vmem:[%s4324_s14 + $0xe0] sm:$0xff] %v386_v19  ;;  %v2603_v21 = vld [vmem:[%s4319_s13 + $0x28] sm:$0x3]  ;;  %v2605_v22 = vld [vmem:[%s4319_s13 + $0x40] sm:$0x3] }
  0x25   : > { %2602 = vst [vmem:[%s4324_s14 + $0x10] sm:$0x3] %v2601_v20  ;;  %v2607_v23 = vld [vmem:[%s4319_s13 + $0x58] sm:$0x3]  ;;  %2604 = vst [vmem:[%s4324_s14 + $0x28] sm:$0x3] %v2603_v21 }
  0x26   : > { %2606 = vst [vmem:[%s4324_s14 + $0x40] sm:$0x3] %v2605_v22  ;;  %2608 = vst [vmem:[%s4324_s14 + $0x58] sm:$0x3] %v2607_v23  ;;  %v2609_v24 = vld [vmem:[%s4319_s13 + $0x70] sm:$0x3] }
  0x27   : > { %v2611_v25 = vld [vmem:[%s4319_s13 + $0x88] sm:$0x3]  ;;  %v2613_v26 = vld [vmem:[%s4319_s13 + $0xa0] sm:$0x3]  ;;  %2610 = vst [vmem:[%s4324_s14 + $0x70] sm:$0x3] %v2609_v24 }
  0x28   : > { %2612 = vst [vmem:[%s4324_s14 + $0x88] sm:$0x3] %v2611_v25  ;;  %2614 = vst [vmem:[%s4324_s14 + $0xa0] sm:$0x3] %v2613_v26  ;;  %v2615_v27 = vld [vmem:[%s4319_s13 + $0xb8] sm:$0x3] }
  0x29   : > { %v2617_v28 = vld [vmem:[%s4319_s13 + $0xd0] sm:$0x3]  ;;  %v2619_v29 = vld [vmem:[%s4319_s13 + $0xe8] sm:$0x3]  ;;  %2616 = vst [vmem:[%s4324_s14 + $0xb8] sm:$0x3] %v2615_v27 }
  0x2a   : > { %2618 = vst [vmem:[%s4324_s14 + $0xd0] sm:$0x3] %v2617_v28  ;;  %2620 = vst [vmem:[%s4324_s14 + $0xe8] sm:$0x3] %v2619_v29 }
  0x2b   : > { %420 = vsyncadd %s292_s16, 2880 }
  0x2c PF: > { %s421_s17 = scalar_lea.sflag [#allocation3], %s5286_s28 }
  0x2d   : > { %4188 = dma.done.wait %s421_s17, 2880 }
  0x2e   : > { %4189 = vsyncadd %s421_s17, 4294964416  ;;  %s426_s18 = sadd.s32 1, %s4192_s24 }
  0x2f   : > { %p2621_p9 = scmp.ge.s32.totalorder %s426_s18, 2 }
  0x30   : > { %s431_s19 = ssub.s32 (!%p2621_p9), 1, %s5286_s28  ;;  %s2488_s20 = smul.u32 (!%p2621_p9), 192, %s4192_s24 }
  0x31   : > { %430 = sbr.rel (%p2621_p9) target bundleno = 72 (0x48), region = 81  ;;  %s439_s10 = scalar_lea.sflag (!%p2621_p9), [#allocation3], %s431_s19 }
  0x32   : > { %s2489_s21 = smul.u32 (!%p2621_p9), 432, %s4196_s25 }
  0x33   : > { %s437_s23 = smul.u32 (!%p2621_p9), 240, %s431_s19 }
  0x34   : > { %s2490_s29 = sadd.s32 (!%p2621_p9), %s2489_s21, %s2488_s20 }
  0x35   : > { %s4394_s9 = scalar_lea.vmem (!%p2621_p9), %s5263_s0, %s2490_s29  ;;  %s4399_s25 = scalar_lea.vmem (!%p2621_p9), [#allocation2], %s437_s23 }
  0x36   : > { %v2623_v30 = vld [vmem:[%s4394_s9 + $0xc0] sm:$0xff] (!%p2621_p9)  ;;  %v2624_v31 = vld [vmem:[%s4394_s9 + $0xc8] sm:$0xff] (!%p2621_p9)  ;;  %v2625_v32 = vld [vmem:[%s4394_s9 + $0xd8] sm:$0xff] (!%p2621_p9) }
  0x37   : > { %496 = vst [vmem:[%s4399_s25] sm:$0xff] (!%p2621_p9), %v2623_v30  ;;  %498 = vst [vmem:[%s4399_s25 + $0x8] sm:$0xff] (!%p2621_p9), %v2624_v31  ;;  %v2626_v33 = vld [vmem:[%s4394_s9 + $0xe0] sm:$0xff] (!%p2621_p9)  ;;  %v2627_v34 = vld [vmem:[%s4394_s9 + $0xf0] sm:$0xff] (!%p2621_p9) }
  0x38   : > { %500 = vst [vmem:[%s4399_s25 + $0x18] sm:$0xff] %v2625_v32  ;;  %v2628_v35 = vld [vmem:[%s4394_s9 + $0xf8] sm:$0xff]  ;;  %502 = vst [vmem:[%s4399_s25 + $0x20] sm:$0xff] %v2626_v33  ;;  %v2629_v36 = vld [vmem:[%s4394_s9 + $0x108] sm:$0xff] }
  0x39   : > { %504 = vst [vmem:[%s4399_s25 + $0x30] sm:$0xff] %v2627_v34  ;;  %506 = vst [vmem:[%s4399_s25 + $0x38] sm:$0xff] %v2628_v35  ;;  %v2630_v37 = vld [vmem:[%s4394_s9 + $0x110] sm:$0xff]  ;;  %v2631_v38 = vld [vmem:[%s4394_s9 + $0x120] sm:$0xff] }
  0x3a   : > { %508 = vst [vmem:[%s4399_s25 + $0x48] sm:$0xff] %v2629_v36  ;;  %510 = vst [vmem:[%s4399_s25 + $0x50] sm:$0xff] %v2630_v37  ;;  %v2632_v39 = vld [vmem:[%s4394_s9 + $0x128] sm:$0xff]  ;;  %v2633_v40 = vld [vmem:[%s4394_s9 + $0x138] sm:$0xff] }
  0x3b   : > { %512 = vst [vmem:[%s4399_s25 + $0x60] sm:$0xff] %v2631_v38  ;;  %v2634_v41 = vld [vmem:[%s4394_s9 + $0x140] sm:$0xff]  ;;  %514 = vst [vmem:[%s4399_s25 + $0x68] sm:$0xff] %v2632_v39  ;;  %v2635_v42 = vld [vmem:[%s4394_s9 + $0x150] sm:$0xff] }
  0x3c   : > { %516 = vst [vmem:[%s4399_s25 + $0x78] sm:$0xff] %v2633_v40  ;;  %518 = vst [vmem:[%s4399_s25 + $0x80] sm:$0xff] %v2634_v41  ;;  %v2636_v43 = vld [vmem:[%s4394_s9 + $0x158] sm:$0xff]  ;;  %v2637_v44 = vld [vmem:[%s4394_s9 + $0x168] sm:$0xff] }
  0x3d   : > { %520 = vst [vmem:[%s4399_s25 + $0x90] sm:$0xff] %v2635_v42  ;;  %522 = vst [vmem:[%s4399_s25 + $0x98] sm:$0xff] %v2636_v43  ;;  %v2638_v45 = vld [vmem:[%s4394_s9 + $0x170] sm:$0xff]  ;;  %v2639_v46 = vld [vmem:[%s4394_s9 + $0x180] sm:$0xff] }
  0x3e   : > { %524 = vst [vmem:[%s4399_s25 + $0xa8] sm:$0xff] %v2637_v44  ;;  %v2640_v47 = vld [vmem:[%s4394_s9 + $0x188] sm:$0xff]  ;;  %526 = vst [vmem:[%s4399_s25 + $0xb0] sm:$0xff] %v2638_v45  ;;  %v2641_v48 = vld [vmem:[%s4394_s9 + $0x198] sm:$0xff] }
  0x3f   : > { %528 = vst [vmem:[%s4399_s25 + $0xc0] sm:$0xff] %v2639_v46  ;;  %530 = vst [vmem:[%s4399_s25 + $0xc8] sm:$0xff] %v2640_v47  ;;  %v2642_v49 = vld [vmem:[%s4394_s9 + $0x1a0] sm:$0xff]  ;;  %v2643_v50 = vld [vmem:[%s4394_s9 + $0xd0] sm:$0x3] }
  0x40   : > { %532 = vst [vmem:[%s4399_s25 + $0xd8] sm:$0xff] %v2641_v48  ;;  %534 = vst [vmem:[%s4399_s25 + $0xe0] sm:$0xff] %v2642_v49  ;;  %v2645_v51 = vld [vmem:[%s4394_s9 + $0xe8] sm:$0x3]  ;;  %v2647_v52 = vld [vmem:[%s4394_s9 + $0x100] sm:$0x3] }
  0x41   : > { %2644 = vst [vmem:[%s4399_s25 + $0x10] sm:$0x3] %v2643_v50  ;;  %v2649_v53 = vld [vmem:[%s4394_s9 + $0x118] sm:$0x3]  ;;  %2646 = vst [vmem:[%s4399_s25 + $0x28] sm:$0x3] %v2645_v51 }
  0x42   : > { %2648 = vst [vmem:[%s4399_s25 + $0x40] sm:$0x3] %v2647_v52  ;;  %2650 = vst [vmem:[%s4399_s25 + $0x58] sm:$0x3] %v2649_v53  ;;  %v2651_v54 = vld [vmem:[%s4394_s9 + $0x130] sm:$0x3] }
  0x43   : > { %v2653_v55 = vld [vmem:[%s4394_s9 + $0x148] sm:$0x3]  ;;  %v2655_v56 = vld [vmem:[%s4394_s9 + $0x160] sm:$0x3]  ;;  %2652 = vst [vmem:[%s4399_s25 + $0x70] sm:$0x3] %v2651_v54 }
  0x44   : > { %2654 = vst [vmem:[%s4399_s25 + $0x88] sm:$0x3] %v2653_v55  ;;  %2656 = vst [vmem:[%s4399_s25 + $0xa0] sm:$0x3] %v2655_v56  ;;  %v2657_v57 = vld [vmem:[%s4394_s9 + $0x178] sm:$0x3] }
  0x45   : > { %v2659_v58 = vld [vmem:[%s4394_s9 + $0x190] sm:$0x3]  ;;  %v2661_v59 = vld [vmem:[%s4394_s9 + $0x1a8] sm:$0x3]  ;;  %2658 = vst [vmem:[%s4399_s25 + $0xb8] sm:$0x3] %v2657_v57 }
  0x46   : > { %2660 = vst [vmem:[%s4399_s25 + $0xd0] sm:$0x3] %v2659_v58  ;;  %2662 = vst [vmem:[%s4399_s25 + $0xe8] sm:$0x3] %v2661_v59 }
  0x47   : > { %567 = vsyncadd %s439_s10, 2880 }
  0x48 PF: > { %v2673_v60 = vld [vmem:[%s5264_s1 + $0x80] sm:$0xff]  ;;  %v2674_v61 = vld [vmem:[%s5264_s1 + $0x88] sm:$0xff]  ;;  %v2675_v1 = vld [vmem:[%s5264_s1 + $0x90] sm:$0xff]  ;;  %s568_s19 = smul.u32 240, %s5286_s28 }
  0x49   : > { %v2753_v62 = vld [vmem:[%s5264_s1 + $0x200] sm:$0xff]  ;;  %v3695_v63 = vpack.c.bf16 %v2674_v61, %v2673_v60  ;;  %v2754_v0 = vld [vmem:[%s5264_s1 + $0x208] sm:$0xff]  ;;  %v2676_v2 = vld [vmem:[%s5264_s1 + $0x98] sm:$0xff] }
  0x4a   : > { %v3823_v3 = vpack.c.bf16 %v2754_v0, %v2753_v62  ;;  %v3699_v4 = vpack.c.bf16 %v2676_v2, %v2675_v1  ;;  %v2755_v5 = vld [vmem:[%s5264_s1 + $0x210] sm:$0xff]  ;;  %v2756_v6 = vld [vmem:[%s5264_s1 + $0x218] sm:$0xff]  ;;  %v2677_v7 = vld [vmem:[%s5264_s1 + $0xa0] sm:$0xff]  ;;  %s4515_s17 = scalar_lea.vmem [#allocation2], %s568_s19 }
  0x4b   : > { %3696 = vmatprep.subr.bf16.mxu1 %v3695_v63  ;;  %v3827_v8 = vpack.c.bf16 %v2756_v6, %v2755_v5  ;;  %v2678_v9 = vld [vmem:[%s5264_s1 + $0xa8] sm:$0xff]  ;;  %v2757_v10 = vld [vmem:[%s5264_s1 + $0x220] sm:$0xff]  ;;  %v2679_v14 = vld [vmem:[%s5264_s1 + $0xb0] sm:$0xff] }
  0x4c   : > { %v2758_v11 = vld [vmem:[%s5264_s1 + $0x228] sm:$0xff]  ;;  %3824 = vmatprep.subr.bf16.mxu0 %v3823_v3  ;;  %3698 = vmatpush3.bf16.msra.mxu1 %v3695_v63  ;;  %v3703_v12 = vpack.c.bf16 %v2678_v9, %v2677_v7  ;;  %v2680_v15 = vld [vmem:[%s5264_s1 + $0xb8] sm:$0xff]  ;;  %v2759_v16 = vld [vmem:[%s5264_s1 + $0x230] sm:$0xff] }
  0x4d   : > { %3826 = vmatpush3.bf16.msra.mxu0 %v3823_v3  ;;  %3700 = vmatprep.subr.bf16.mxu1 %v3699_v4  ;;  %v3831_v13 = vpack.c.bf16 %v2758_v11, %v2757_v10  ;;  %v2760_v17 = vld [vmem:[%s5264_s1 + $0x238] sm:$0xff]  ;;  %v3707_v18 = vpack.c.bf16 %v2680_v15, %v2679_v14  ;;  %v2681_v20 = vld [vmem:[%s5264_s1 + $0xc0] sm:$0xff]  ;;  %v2682_v21 = vld [vmem:[%s5264_s1 + $0xc8] sm:$0xff] }
  0x4e   : > { %3828 = vmatprep.subr.bf16.mxu0 %v3827_v8  ;;  %v3835_v19 = vpack.c.bf16 %v2760_v17, %v2759_v16  ;;  %v602_v22 = vld [vmem:[%s4515_s17 + $0x1] sm:$0xff]  ;;  %v4525_v25 = vld [vmem:[%s4515_s17 + $0x19] sm:$0xff]  ;;  %v3711_v26 = vpack.c.bf16 %v2682_v21, %v2681_v20  ;;  %v603_v54 = vld [vmem:[%s4515_s17 + $0x9] sm:$0xff] }
  0x4f   : > { %v2761_v23 = vld [vmem:[%s5264_s1 + $0x240] sm:$0xff]  ;;  %v2762_v24 = vld [vmem:[%s5264_s1 + $0x248] sm:$0xff]  ;;  %3223 = vmatprep.mubr.f32.mxu1 %v602_v22  ;;  %3447 = vmatprep.mubr.f32.mxu0 %v4525_v25  ;;  %v2683_v28 = vld [vmem:[%s5264_s1 + $0xd0] sm:$0xff] }
  0x50   : > { %3702 = vmatpush3.bf16.msra.mxu1 %v3699_v4  ;;  %v3839_v27 = vpack.c.bf16 %v2762_v24, %v2761_v23  ;;  %v2684_v29 = vld [vmem:[%s5264_s1 + $0xd8] sm:$0xff]  ;;  %v2763_v30 = vld [vmem:[%s5264_s1 + $0x250] sm:$0xff]  ;;  %v2685_v34 = vld [vmem:[%s5264_s1 + $0xe0] sm:$0xff] }
  0x51   : > { %3830 = vmatpush3.bf16.msra.mxu0 %v3827_v8  ;;  %3704 = vmatprep.subr.bf16.mxu1 %v3703_v12  ;;  %v2764_v31 = vld [vmem:[%s5264_s1 + $0x258] sm:$0xff]  ;;  %v3715_v32 = vpack.c.bf16 %v2684_v29, %v2683_v28  ;;  %v2686_v35 = vld [vmem:[%s5264_s1 + $0xe8] sm:$0xff]  ;;  %v2765_v36 = vld [vmem:[%s5264_s1 + $0x260] sm:$0xff] }
  0x52   : > { %3832 = vmatprep.subr.bf16.mxu0 %v3831_v13  ;;  %v3843_v33 = vpack.c.bf16 %v2764_v31, %v2763_v30  ;;  %v2766_v37 = vld [vmem:[%s5264_s1 + $0x268] sm:$0xff]  ;;  %v3719_v38 = vpack.c.bf16 %v2686_v35, %v2685_v34  ;;  %v2687_v40 = vld [vmem:[%s5264_s1 + $0xf0] sm:$0xff]  ;;  %v2688_v41 = vld [vmem:[%s5264_s1 + $0xf8] sm:$0xff] }
  0x53   : > { %v3847_v39 = vpack.c.bf16 %v2766_v37, %v2765_v36  ;;  %v2767_v42 = vld [vmem:[%s5264_s1 + $0x270] sm:$0xff]  ;;  %v2768_v43 = vld [vmem:[%s5264_s1 + $0x278] sm:$0xff]  ;;  %v3723_v44 = vpack.c.bf16 %v2688_v41, %v2687_v40  ;;  %v586_v46 = vld [vmem:[%s5264_s1] sm:$0xff] }
  0x54   : > { %3706 = vmatpush3.bf16.msra.mxu1 %v3703_v12  ;;  %v3851_v45 = vpack.c.bf16 %v2768_v43, %v2767_v42  ;;  %v587_v47 = vld [vmem:[%s5264_s1 + $0x8] sm:$0xff]  ;;  %v2785_v48 = vld [vmem:[%s5264_s1 + $0x280] sm:$0xff]  ;;  %v588_v52 = vld [vmem:[%s5264_s1 + $0x10] sm:$0xff] }
  0x55   : > { %3834 = vmatpush3.bf16.msra.mxu0 %v3831_v13  ;;  %3708 = vmatprep.subr.bf16.mxu1 %v3707_v18  ;;  %v2786_v49 = vld [vmem:[%s5264_s1 + $0x288] sm:$0xff]  ;;  %v3727_v50 = vpack.c.bf16 %v587_v47, %v586_v46  ;;  %v589_v53 = vld [vmem:[%s5264_s1 + $0x18] sm:$0xff]  ;;  %v2787_v55 = vld [vmem:[%s5264_s1 + $0x290] sm:$0xff] }
  0x56   : > { %3836 = vmatprep.subr.bf16.mxu0 %v3835_v19  ;;  %v3855_v51 = vpack.c.bf16 %v2786_v49, %v2785_v48  ;;  %v2788_v56 = vld [vmem:[%s5264_s1 + $0x298] sm:$0xff]  ;;  %v3731_v58 = vpack.c.bf16 %v589_v53, %v588_v52  ;;  %v590_v61 = vld [vmem:[%s5264_s1 + $0x20] sm:$0xff]  ;;  %v591_v62 = vld [vmem:[%s5264_s1 + $0x28] sm:$0xff] }
  0x57   : > { %v2738_v57 = vld [vmem:[%s4515_s17 + $0x21] sm:$0xff]  ;;  %v4591_v59 = vld [vmem:[%s4515_s17 + $0x31] sm:$0xff]  ;;  %v3859_v60 = vpack.c.bf16 %v2788_v56, %v2787_v55  ;;  %v4607_v1 = vld [vmem:[%s4515_s17 + $0x39] sm:$0xff]  ;;  %v3735_v2 = vpack.c.bf16 %v591_v62, %v590_v61 }
  0x58   : > { %3710 = vmatpush3.bf16.msra.mxu1 %v3707_v18  ;;  %v2789_v63 = vld [vmem:[%s5264_s1 + $0x2a0] sm:$0xff]  ;;  %v2790_v0 = vld [vmem:[%s5264_s1 + $0x2a8] sm:$0xff]  ;;  %v592_v5 = vld [vmem:[%s5264_s1 + $0x30] sm:$0xff] }
  0x59   : > { %3838 = vmatpush3.bf16.msra.mxu0 %v3835_v19  ;;  %3712 = vmatprep.subr.bf16.mxu1 %v3711_v26  ;;  %v4611_v3 = vld [vmem:[%s4515_s17 + $0x49] sm:$0xff]  ;;  %v3863_v4 = vpack.c.bf16 %v2790_v0, %v2789_v63  ;;  %v4628_v9 = vld [vmem:[%s4515_s17 + $0x51] sm:$0xff]  ;;  %v4633_v11 = vld [vmem:[%s4515_s17 + $0x61] sm:$0xff] }
  0x5a   : > { %3840 = vmatprep.subr.bf16.mxu0 %v3839_v27  ;;  %v593_v6 = vld [vmem:[%s5264_s1 + $0x38] sm:$0xff]  ;;  %v2791_v7 = vld [vmem:[%s5264_s1 + $0x2b0] sm:$0xff]  ;;  %v594_v13 = vld [vmem:[%s5264_s1 + $0x40] sm:$0xff] }
  0x5b   : > { %v2792_v8 = vld [vmem:[%s5264_s1 + $0x2b8] sm:$0xff]  ;;  %v3739_v10 = vpack.c.bf16 %v593_v6, %v592_v5  ;;  %v595_v14 = vld [vmem:[%s5264_s1 + $0x48] sm:$0xff]  ;;  %v2793_v15 = vld [vmem:[%s5264_s1 + $0x2c0] sm:$0xff] }
  0x5c   : > { %3714 = vmatpush3.bf16.msra.mxu1 %v3711_v26  ;;  %v3867_v12 = vpack.c.bf16 %v2792_v8, %v2791_v7  ;;  %v2794_v16 = vld [vmem:[%s5264_s1 + $0x2c8] sm:$0xff]  ;;  %v3743_v18 = vpack.c.bf16 %v595_v14, %v594_v13  ;;  %v596_v21 = vld [vmem:[%s5264_s1 + $0x50] sm:$0xff]  ;;  %v597_v22 = vld [vmem:[%s5264_s1 + $0x58] sm:$0xff] }
  0x5d   : > { %3842 = vmatpush3.bf16.msra.mxu0 %v3839_v27  ;;  %3716 = vmatprep.subr.bf16.mxu1 %v3715_v32  ;;  %v4650_v17 = vld [vmem:[%s4515_s17 + $0x69] sm:$0xff]  ;;  %v4655_v19 = vld [vmem:[%s4515_s17 + $0x79] sm:$0xff]  ;;  %v3871_v20 = vpack.c.bf16 %v2794_v16, %v2793_v15  ;;  %v3747_v26 = vpack.c.bf16 %v597_v22, %v596_v21  ;;  %v4677_v27 = vld [vmem:[%s4515_s17 + $0x91] sm:$0xff] }
  0x5e   : > { %3844 = vmatprep.subr.bf16.mxu0 %v3843_v33  ;;  %v2795_v23 = vld [vmem:[%s5264_s1 + $0x2d0] sm:$0xff]  ;;  %v2796_v24 = vld [vmem:[%s5264_s1 + $0x2d8] sm:$0xff]  ;;  %v598_v29 = vld [vmem:[%s5264_s1 + $0x60] sm:$0xff] }
  0x5f   : > { %v3875_v28 = vpack.c.bf16 %v2796_v24, %v2795_v23  ;;  %v599_v30 = vld [vmem:[%s5264_s1 + $0x68] sm:$0xff]  ;;  %v2797_v31 = vld [vmem:[%s5264_s1 + $0x2e0] sm:$0xff]  ;;  %v600_v37 = vld [vmem:[%s5264_s1 + $0x70] sm:$0xff] }
  0x60   : > { %3718 = vmatpush3.bf16.msra.mxu1 %v3715_v32  ;;  %v2798_v32 = vld [vmem:[%s5264_s1 + $0x2e8] sm:$0xff]  ;;  %v3751_v34 = vpack.c.bf16 %v599_v30, %v598_v29  ;;  %v2800_v40 = vld [vmem:[%s5264_s1 + $0x2f8] sm:$0xff]  ;;  %v2817_v47 = vld [vmem:[%s5264_s1 + $0x300] sm:$0xff] }
  0x61   : > { %3846 = vmatpush3.bf16.msra.mxu0 %v3843_v33  ;;  %3720 = vmatprep.subr.bf16.mxu1 %v3719_v38  ;;  %v4694_v33 = vld [vmem:[%s4515_s17 + $0x99] sm:$0xff]  ;;  %v4699_v35 = vld [vmem:[%s4515_s17 + $0xa9] sm:$0xff]  ;;  %v3879_v36 = vpack.c.bf16 %v2798_v32, %v2797_v31  ;;  %v4716_v41 = vld [vmem:[%s4515_s17 + $0xb1] sm:$0xff] }
  0x62   : > { %3848 = vmatprep.subr.bf16.mxu0 %v3847_v39  ;;  %v4721_v43 = vld [vmem:[%s4515_s17 + $0xc1] sm:$0xff]  ;;  %v4738_v49 = vld [vmem:[%s4515_s17 + $0xc9] sm:$0xff]  ;;  %v4765_v61 = vld [vmem:[%s4515_s17 + $0x18] sm:$0xff] }
  0x63   : > { %v2690_v46 = vld [vmem:[%s5264_s1 + $0x108] sm:$0xff]  ;;  %v2692_v55 = vld [vmem:[%s5264_s1 + $0x118] sm:$0xff]  ;;  %v4778_v5 = vld [vmem:[%s4515_s17 + $0x20] sm:$0xff] }
  0x64   : > { %3722 = vmatpush3.bf16.msra.mxu1 %v3719_v38  ;;  %v601_v38 = vld [vmem:[%s5264_s1 + $0x78] sm:$0xff]  ;;  %v2818_v48 = vld [vmem:[%s5264_s1 + $0x308] sm:$0xff]  ;;  %v2821_v6 = vld [vmem:[%s5264_s1 + $0x320] sm:$0xff] }
  0x65   : > { %3850 = vmatpush3.bf16.msra.mxu0 %v3847_v39  ;;  %3724 = vmatprep.subr.bf16.mxu1 %v3723_v44  ;;  %v2799_v39 = vld [vmem:[%s5264_s1 + $0x2f0] sm:$0xff]  ;;  %v3755_v42 = vpack.c.bf16 %v601_v38, %v600_v37  ;;  %v3887_v53 = vpack.c.bf16 %v2818_v48, %v2817_v47  ;;  %v571_v56 = vld [vmem:[%s4515_s17 + $0x8] sm:$0xff]  ;;  %v2697_v29 = vld [vmem:[%s5264_s1 + $0x140] sm:$0xff] }
  0x66   : > { %3852 = vmatprep.subr.bf16.mxu0 %v3851_v45  ;;  %v4744_v52 = vld [vmem:[%s4515_s17 + $0x1a] sm:$0xff]  ;;  %v4768_v63 = vld [vmem:[%s4515_s17 + $0x32] sm:$0xff]  ;;  %v4796_v13 = vld [vmem:[%s4515_s17 + $0x4a] sm:$0xff] }
  0x67   : > { %v2822_v7 = vld [vmem:[%s5264_s1 + $0x328] sm:$0xff]  ;;  %v2695_v15 = vld [vmem:[%s5264_s1 + $0x130] sm:$0xff]  ;;  %v2696_v16 = vld [vmem:[%s5264_s1 + $0x138] sm:$0xff] }
  0x68   : > { %3726 = vmatpush3.bf16.msra.mxu1 %v3723_v44  ;;  %v3883_v44 = vpack.c.bf16 %v2800_v40, %v2799_v39  ;;  %v4788_v8 = vld [vmem:[%s4515_s17 + $0x3a] sm:$0xff]  ;;  %v3895_v14 = vpack.c.bf16 %v2822_v7, %v2821_v6  ;;  %v4816_v22 = vld [vmem:[%s4515_s17 + $0x52] sm:$0xff]  ;;  %v4820_v23 = vld [vmem:[%s4515_s17 + $0x48] sm:$0xff]  ;;  %v3771_v24 = vpack.c.bf16 %v2696_v16, %v2695_v15 }
  0x69   : > { %3854 = vmatpush3.bf16.msra.mxu0 %v3851_v45  ;;  %3728 = vmatprep.subr.bf16.mxu1 %v3727_v50  ;;  %v2689_v45 = vld [vmem:[%s5264_s1 + $0x100] sm:$0xff]  ;;  %v2824_v21 = vld [vmem:[%s5264_s1 + $0x338] sm:$0xff]  ;;  %v2698_v30 = vld [vmem:[%s5264_s1 + $0x148] sm:$0xff] }
  0x6a   : > { %3856 = vmatprep.subr.bf16.mxu0 %v3855_v51  ;;  %v4834_v31 = vld [vmem:[%s4515_s17 + $0x50] sm:$0xff]  ;;  %v4848_v37 = vld [vmem:[%s4515_s17 + $0x60] sm:$0xff]  ;;  %v3775_v38 = vpack.c.bf16 %v2698_v30, %v2697_v29  ;;  %v2828_v47 = vld [vmem:[%s5264_s1 + $0x358] sm:$0xff] }
  0x6b   : > { %3224 = vmatmul.mubr.f32.vlgmr.msra.gmra.mrb[0].mxu1 %v603_v54  ;;  %v2691_v54 = vld [vmem:[%s5264_s1 + $0x110] sm:$0xff]  ;;  %v2825_v32 = vld [vmem:[%s5264_s1 + $0x340] sm:$0xff]  ;;  %v4918_v15 = vld [vmem:[%s4515_s17 + $0x98] sm:$0xff] }
  0x6c   : > { %3448 = vmatmul.mubr.f32.vlgmr.msra.gmra.mrb[0].mxu0 %v2738_v57  ;;  %3730 = vmatpush3.bf16.msra.mxu1 %v3727_v50  ;;  %v570_v50 = vld [vmem:[%s4515_s17] sm:$0xff]  ;;  %v3763_v62 = vpack.c.bf16 %v2692_v55, %v2691_v54  ;;  %v4908_v6 = vld [vmem:[%s4515_s17 + $0xaa] sm:$0xff] }
  0x6d   : > { %3858 = vmatpush3.bf16.msra.mxu0 %v3855_v51  ;;  %3226 = vmatprep.mubr.f32.mxu1 %v4525_v25  ;;  %v4672_v25 = vld [vmem:[%s4515_s17 + $0x81] sm:$0xff]  ;;  %v3759_v51 = vpack.c.bf16 %v2690_v46, %v2689_v45 }
  0x6e   : > { %3450 = vmatprep.mubr.f32.mxu0 %v4591_v59  ;;  %3732 = vmatprep.subr.bf16.mxu1 %v3731_v58  ;;  %v4852_v39 = vld [vmem:[%s4515_s17 + $0x7a] sm:$0xff]  ;;  %v4862_v45 = vld [vmem:[%s4515_s17 + $0x68] sm:$0xff] }
  0x6f   : > { %3227 = vmatmul.mubr.f32.gmra.mrb[2].mxu1 %v2738_v57  ;;  %3860 = vmatprep.subr.bf16.mxu0 %v3859_v60  ;;  %v2819_v57 = vld [vmem:[%s5264_s1 + $0x310] sm:$0xff]  ;;  %v2701_v55 = vld [vmem:[%s5264_s1 + $0x160] sm:$0xff] }
  0x70   : > { %3451 = vmatmul.mubr.f32.gmra.mrb[2].mxu0 %v4607_v1  ;;  %3734 = vmatpush3.bf16.msra.mxu1 %v3731_v58  ;;  %v2820_v58 = vld [vmem:[%s5264_s1 + $0x318] sm:$0xff]  ;;  %v2827_v46 = vld [vmem:[%s5264_s1 + $0x350] sm:$0xff] }
  0x71   : > { %3862 = vmatpush3.bf16.msra.mxu0 %v3859_v60  ;;  %3229 = vmatprep.mubr.f32.mxu1 %v4591_v59  ;;  %v4761_v60 = vld [vmem:[%s4515_s17 + $0x22] sm:$0xff]  ;;  %v3891_v0 = vpack.c.bf16 %v2820_v58, %v2819_v57  ;;  %v3907_v54 = vpack.c.bf16 %v2828_v47, %v2827_v46 }
  0x72   : > { %3453 = vmatprep.mubr.f32.mxu0 %v4611_v3  ;;  %3736 = vmatprep.subr.bf16.mxu1 %v3735_v2  ;;  %v4872_v48 = vld [vmem:[%s4515_s17 + $0x82] sm:$0xff] }
  0x73   : > { %3230 = vmatmul.mubr.f32.gmra.mrb[4].mxu1 %v4607_v1  ;;  %3864 = vmatprep.subr.bf16.mxu0 %v3863_v4  ;;  %v4890_v57 = vld [vmem:[%s4515_s17 + $0x80] sm:$0xff] }
  0x74   : > { %3454 = vmatmul.mubr.f32.gmra.mrb[4].mxu0 %v4628_v9  ;;  %3738 = vmatpush3.bf16.msra.mxu1 %v3735_v2  ;;  %v2693_v2 = vld [vmem:[%s5264_s1 + $0x120] sm:$0xff]  ;;  %v2831_v16 = vld [vmem:[%s5264_s1 + $0x370] sm:$0xff] }
  0x75   : > { %3866 = vmatpush3.bf16.msra.mxu0 %v3863_v4  ;;  %3232 = vmatprep.mubr.f32.mxu1 %v4611_v3  ;;  %v2694_v4 = vld [vmem:[%s5264_s1 + $0x128] sm:$0xff]  ;;  %v2829_v58 = vld [vmem:[%s5264_s1 + $0x360] sm:$0xff] }
  0x76   : > { %3456 = vmatprep.mubr.f32.mxu0 %v4633_v11  ;;  %3740 = vmatprep.subr.bf16.mxu1 %v3739_v10  ;;  %v4936_v29 = vld [vmem:[%s4515_s17 + $0xc2] sm:$0xff] }
  0x77   : > { %3233 = vmatmul.mubr.f32.gmra.mrb[6].mxu1 %v4628_v9  ;;  %3868 = vmatprep.subr.bf16.mxu0 %v3867_v12  ;;  %v925_v46 = vld [vmem:[%s4515_s17 + $0x2] sm:$0xff] }
  0x78   : > { %3457 = vmatmul.mubr.f32.gmra.mrb[6].mxu0 %v4650_v17  ;;  %3742 = vmatpush3.bf16.msra.mxu1 %v3739_v10  ;;  %v4792_v10 = vld [vmem:[%s4515_s17 + $0x30] sm:$0xff] }
  0x79   : > { %3870 = vmatpush3.bf16.msra.mxu0 %v3867_v12  ;;  %3235 = vmatprep.mubr.f32.mxu1 %v4633_v11  ;;  %v3767_v12 = vpack.c.bf16 %v2694_v4, %v2693_v2  ;;  %v4904_v2 = vld [vmem:[%s4515_s17 + $0x90] sm:$0xff] }
  0x7a   : > { %3459 = vmatprep.mubr.f32.mxu0 %v4655_v19  ;;  %3744 = vmatprep.subr.bf16.mxu1 %v3743_v18 }
  0x7b   : > { %3236 = vmatmul.mubr.f32.gmra.mrb[8].mxu1 %v4650_v17  ;;  %3872 = vmatprep.subr.bf16.mxu0 %v3871_v20 }
  0x7c   : > { %3460 = vmatmul.mubr.f32.gmra.mrb[8].mxu0 %v4672_v25  ;;  %3746 = vmatpush3.bf16.msra.mxu1 %v3743_v18  ;;  %v4806_v18 = vld [vmem:[%s4515_s17 + $0x38] sm:$0xff] }
  0x7d   : > { %3874 = vmatpush3.bf16.msra.mxu0 %v3871_v20  ;;  %3238 = vmatprep.mubr.f32.mxu1 %v4655_v19  ;;  %v2823_v20 = vld [vmem:[%s5264_s1 + $0x330] sm:$0xff] }
  0x7e   : > { %3462 = vmatprep.mubr.f32.mxu0 %v4677_v27  ;;  %3748 = vmatprep.subr.bf16.mxu1 %v3747_v26 }
  0x7f   : > { %3239 = vmatmul.mubr.f32.gmra.mrb[10].mxu1 %v4672_v25  ;;  %3876 = vmatprep.subr.bf16.mxu0 %v3875_v28 }
  0x80   : > { %3463 = vmatmul.mubr.f32.gmra.mrb[10].mxu0 %v4694_v33  ;;  %3750 = vmatpush3.bf16.msra.mxu1 %v3747_v26  ;;  %v4824_v26 = vld [vmem:[%s4515_s17 + $0x62] sm:$0xff] }
  0x81   : > { %3878 = vmatpush3.bf16.msra.mxu0 %v3875_v28  ;;  %3241 = vmatprep.mubr.f32.mxu1 %v4677_v27  ;;  %v3899_v28 = vpack.c.bf16 %v2824_v21, %v2823_v20  ;;  %v2832_v20 = vld [vmem:[%s5264_s1 + $0x378] sm:$0xff] }
  0x82   : > { %3465 = vmatprep.mubr.f32.mxu0 %v4699_v35  ;;  %3752 = vmatprep.subr.bf16.mxu1 %v3751_v34  ;;  %v4928_v21 = vld [vmem:[%s4515_s17 + $0xb2] sm:$0xff]  ;;  %v3915_v30 = vpack.c.bf16 %v2832_v20, %v2831_v16 }
  0x83   : > { %3242 = vmatmul.mubr.f32.gmra.mrb[12].mxu1 %v4694_v33  ;;  %3880 = vmatprep.subr.bf16.mxu0 %v3879_v36  ;;  %v2853_v16 = vld [vmem:[%s5264_s1 + $0x3a0] sm:$0xff]  ;;  %v2854_v20 = vld [vmem:[%s5264_s1 + $0x3a8] sm:$0xff] }
  0x84   : > { %3466 = vmatmul.mubr.f32.gmra.mrb[12].mxu0 %v4716_v41  ;;  %3754 = vmatpush3.bf16.msra.mxu1 %v3751_v34  ;;  %v2826_v34 = vld [vmem:[%s5264_s1 + $0x348] sm:$0xff] }
  0x85   : > { %3882 = vmatpush3.bf16.msra.mxu0 %v3879_v36  ;;  %3244 = vmatprep.mubr.f32.mxu1 %v4699_v35  ;;  %v4844_v36 = vld [vmem:[%s4515_s17 + $0x6a] sm:$0xff]  ;;  %v3903_v40 = vpack.c.bf16 %v2826_v34, %v2825_v32 }
  0x86   : > { %3468 = vmatprep.mubr.f32.mxu0 %v4721_v43  ;;  %3756 = vmatprep.subr.bf16.mxu1 %v3755_v42  ;;  %v2721_v32 = vld [vmem:[%s5264_s1 + $0x180] sm:$0xff]  ;;  %v2722_v34 = vld [vmem:[%s5264_s1 + $0x188] sm:$0xff] }
  0x87   : > { %3245 = vmatmul.mubr.f32.gmra.mrb[14].mxu1 %v4716_v41  ;;  %3884 = vmatprep.subr.bf16.mxu0 %v3883_v44  ;;  %v3791_v47 = vpack.c.bf16 %v2722_v34, %v2721_v32  ;;  %v2727_v32 = vld [vmem:[%s5264_s1 + $0x1b0] sm:$0xff]  ;;  %v2728_v34 = vld [vmem:[%s5264_s1 + $0x1b8] sm:$0xff] }
  0x88   : > { %3469 = vmatmul.mubr.f32.gmra.mrb[14].mxu0 %v4738_v49  ;;  %3758 = vmatpush3.bf16.msra.mxu1 %v3755_v42  ;;  %v2699_v42 = vld [vmem:[%s5264_s1 + $0x150] sm:$0xff] }
  0x89   : > { %3886 = vmatpush3.bf16.msra.mxu0 %v3883_v44  ;;  %3279 = vmatprep.mubr.f32.mxu1 %v570_v50  ;;  %v2700_v44 = vld [vmem:[%s5264_s1 + $0x158] sm:$0xff] }
  0x8a   : > { %3503 = vmatprep.mubr.f32.mxu0 %v4744_v52  ;;  %3760 = vmatprep.subr.bf16.mxu1 %v3759_v51  ;;  %v4876_v50 = vld [vmem:[%s4515_s17 + $0x78] sm:$0xff] }
  0x8b   : > { %3280 = vmatmul.mubr.f32.vlgmr.msra.gmra.mrb[0].mxu1 %v571_v56  ;;  %3888 = vmatprep.subr.bf16.mxu0 %v3887_v53  ;;  %v2702_v56 = vld [vmem:[%s5264_s1 + $0x168] sm:$0xff] }
  0x8c   : > { %3504 = vmatmul.mubr.f32.vlgmr.msra.gmra.mrb[0].mxu0 %v4761_v60  ;;  %3762 = vmatpush3.bf16.msra.mxu1 %v3759_v51  ;;  %v3779_v51 = vpack.c.bf16 %v2700_v44, %v2699_v42  ;;  %v3783_v4 = vpack.c.bf16 %v2702_v56, %v2701_v55  ;;  %v2850_v42 = vld [vmem:[%s5264_s1 + $0x388] sm:$0xff]  ;;  %v2724_v55 = vld [vmem:[%s5264_s1 + $0x198] sm:$0xff] }
  0x8d   : > { %3890 = vmatpush3.bf16.msra.mxu0 %v3887_v53  ;;  %3282 = vmatprep.mubr.f32.mxu1 %v4765_v61  ;;  %v4880_v53 = vld [vmem:[%s4515_s17 + $0x92] sm:$0xff]  ;;  %v4956_v44 = vld [vmem:[%s4515_s17 + $0xca] sm:$0xff] }
  0x8e   : > { %3506 = vmatprep.mubr.f32.mxu0 %v4768_v63  ;;  %3764 = vmatprep.subr.bf16.mxu1 %v3763_v62  ;;  %v926_v56 = vld [vmem:[%s4515_s17 + $0xa] sm:$0xff] }
  0x8f   : > { %3283 = vmatmul.mubr.f32.gmra.mrb[2].mxu1 %v4778_v5  ;;  %3892 = vmatprep.subr.bf16.mxu0 %v3891_v0 }
  0x90   : > { %3507 = vmatmul.mubr.f32.gmra.mrb[2].mxu0 %v4788_v8  ;;  %3766 = vmatpush3.bf16.msra.mxu1 %v3763_v62  ;;  %v2830_v62 = vld [vmem:[%s5264_s1 + $0x368] sm:$0xff] }
  0x91   : > { %3894 = vmatpush3.bf16.msra.mxu0 %v3891_v0  ;;  %3285 = vmatprep.mubr.f32.mxu1 %v4792_v10  ;;  %v4900_v0 = vld [vmem:[%s4515_s17 + $0x9a] sm:$0xff]  ;;  %v3911_v7 = vpack.c.bf16 %v2830_v62, %v2829_v58 }
  0x92   : > { %3509 = vmatprep.mubr.f32.mxu0 %v4796_v13  ;;  %3768 = vmatprep.subr.bf16.mxu1 %v3767_v12  ;;  %v2851_v58 = vld [vmem:[%s5264_s1 + $0x390] sm:$0xff]  ;;  %v2852_v62 = vld [vmem:[%s5264_s1 + $0x398] sm:$0xff] }
  0x93   : > { %3286 = vmatmul.mubr.f32.gmra.mrb[4].mxu1 %v4806_v18  ;;  %3896 = vmatprep.subr.bf16.mxu0 %v3895_v14 }
  0x94   : > { %3510 = vmatmul.mubr.f32.gmra.mrb[4].mxu0 %v4816_v22  ;;  %3770 = vmatpush3.bf16.msra.mxu1 %v3767_v12  ;;  %v2703_v12 = vld [vmem:[%s5264_s1 + $0x170] sm:$0xff] }
  0x95   : > { %3898 = vmatpush3.bf16.msra.mxu0 %v3895_v14  ;;  %3288 = vmatprep.mubr.f32.mxu1 %v4820_v23  ;;  %v2704_v14 = vld [vmem:[%s5264_s1 + $0x178] sm:$0xff] }
  0x96   : > { %3512 = vmatprep.mubr.f32.mxu0 %v4824_v26  ;;  %3772 = vmatprep.subr.bf16.mxu1 %v3771_v24 }
  0x97   : > { %3289 = vmatmul.mubr.f32.gmra.mrb[6].mxu1 %v4834_v31  ;;  %3900 = vmatprep.subr.bf16.mxu0 %v3899_v28 }
  0x98   : > { %3513 = vmatmul.mubr.f32.gmra.mrb[6].mxu0 %v4844_v36  ;;  %3774 = vmatpush3.bf16.msra.mxu1 %v3771_v24  ;;  %v4932_v24 = vld [vmem:[%s4515_s17 + $0xa8] sm:$0xff] }
  0x99   : > { %3902 = vmatpush3.bf16.msra.mxu0 %v3899_v28  ;;  %3291 = vmatprep.mubr.f32.mxu1 %v4848_v37  ;;  %v3787_v28 = vpack.c.bf16 %v2704_v14, %v2703_v12  ;;  %v2725_v12 = vld [vmem:[%s5264_s1 + $0x1a0] sm:$0xff]  ;;  %v2726_v14 = vld [vmem:[%s5264_s1 + $0x1a8] sm:$0xff] }
  0x9a   : > { %3515 = vmatprep.mubr.f32.mxu0 %v4852_v39  ;;  %3776 = vmatprep.subr.bf16.mxu1 %v3775_v38 }
  0x9b   : > { %3292 = vmatmul.mubr.f32.gmra.mrb[8].mxu1 %v4862_v45  ;;  %3904 = vmatprep.subr.bf16.mxu0 %v3903_v40 }
  0x9c   : > { %3516 = vmatmul.mubr.f32.gmra.mrb[8].mxu0 %v4872_v48  ;;  %3778 = vmatpush3.bf16.msra.mxu1 %v3775_v38  ;;  %v4946_v38 = vld [vmem:[%s4515_s17 + $0xb0] sm:$0xff] }
  0x9d   : > { %3906 = vmatpush3.bf16.msra.mxu0 %v3903_v40  ;;  %3294 = vmatprep.mubr.f32.mxu1 %v4876_v50  ;;  %v2849_v40 = vld [vmem:[%s5264_s1 + $0x380] sm:$0xff] }
  0x9e   : > { %3518 = vmatprep.mubr.f32.mxu0 %v4880_v53  ;;  %3780 = vmatprep.subr.bf16.mxu1 %v3779_v51 }
  0x9f   : > { %3295 = vmatmul.mubr.f32.gmra.mrb[10].mxu1 %v4890_v57  ;;  %3908 = vmatprep.subr.bf16.mxu0 %v3907_v54 }
  0xa0   : > { %3519 = vmatmul.mubr.f32.gmra.mrb[10].mxu0 %v4900_v0  ;;  %3782 = vmatpush3.bf16.msra.mxu1 %v3779_v51  ;;  %v3919_v51 = vpack.c.bf16 %v2850_v42, %v2849_v40  ;;  %v3803_v40 = vpack.c.bf16 %v2728_v34, %v2727_v32  ;;  %v5057_v34 = vld [vmem:[%s4515_s17 + $0xc0] sm:$0xff] }
  0xa1   : > { %3910 = vmatpush3.bf16.msra.mxu0 %v3907_v54  ;;  %3297 = vmatprep.mubr.f32.mxu1 %v4904_v2  ;;  %v2723_v54 = vld [vmem:[%s5264_s1 + $0x190] sm:$0xff] }
  0xa2   : > { %3521 = vmatprep.mubr.f32.mxu0 %v4908_v6  ;;  %3784 = vmatprep.subr.bf16.mxu1 %v3783_v4 }
  0xa3   : > { %3298 = vmatmul.mubr.f32.gmra.mrb[12].mxu1 %v4918_v15  ;;  %3912 = vmatprep.subr.bf16.mxu0 %v3911_v7 }
  0xa4   : > { %3522 = vmatmul.mubr.f32.gmra.mrb[12].mxu0 %v4928_v21  ;;  %3786 = vmatpush3.bf16.msra.mxu1 %v3783_v4  ;;  %v3795_v4 = vpack.c.bf16 %v2724_v55, %v2723_v54  ;;  %v2858_v54 = vld [vmem:[%s5264_s1 + $0x3c8] sm:$0xff] }
  0xa5   : > { %3914 = vmatpush3.bf16.msra.mxu0 %v3911_v7  ;;  %3300 = vmatprep.mubr.f32.mxu1 %v4932_v24  ;;  %v3923_v7 = vpack.c.bf16 %v2852_v62, %v2851_v58  ;;  %v2731_v58 = vld [vmem:[%s5264_s1 + $0x1d0] sm:$0xff]  ;;  %v2732_v62 = vld [vmem:[%s5264_s1 + $0x1d8] sm:$0xff] }
  0xa6   : > { %3524 = vmatprep.mubr.f32.mxu0 %v4936_v29  ;;  %3788 = vmatprep.subr.bf16.mxu1 %v3787_v28 }
  0xa7   : > { %3301 = vmatmul.mubr.f32.gmra.mrb[14].mxu1 %v4946_v38  ;;  %3916 = vmatprep.subr.bf16.mxu0 %v3915_v30 }
  0xa8   : > { %3525 = vmatmul.mubr.f32.gmra.mrb[14].mxu0 %v4956_v44  ;;  %3790 = vmatpush3.bf16.msra.mxu1 %v3787_v28  ;;  %v3799_v28 = vpack.c.bf16 %v2726_v14, %v2725_v12  ;;  %v3811_v12 = vpack.c.bf16 %v2732_v62, %v2731_v58  ;;  %v2882_v58 = vld [vmem:[%s5264_s1 + $0x408] sm:$0xff]  ;;  %v2816_v62 = vld [vmem:[%s4515_s17 + $0xe0] sm:$0xff] }
  0xa9   : > { %3918 = vmatpush3.bf16.msra.mxu0 %v3915_v30  ;;  %3335 = vmatprep.mubr.f32.mxu1 %v925_v46  ;;  %v3927_v30 = vpack.c.bf16 %v2854_v20, %v2853_v16  ;;  %v2729_v46 = vld [vmem:[%s5264_s1 + $0x1c0] sm:$0xff]  ;;  %v2734_v20 = vld [vmem:[%s5264_s1 + $0x1e8] sm:$0xff] }
  0xaa   : > { %3559 = vmatprep.mubr.f32.mxu0 %v4792_v10  ;;  %3792 = vmatprep.subr.bf16.mxu1 %v3791_v47  ;;  %v2733_v16 = vld [vmem:[%s5264_s1 + $0x1e0] sm:$0xff] }
  0xab   : > { %3336 = vmatmul.mubr.f32.vlgmr.msra.gmra.mrb[0].mxu1 %v926_v56  ;;  %3920 = vmatprep.subr.bf16.mxu0 %v3919_v51  ;;  %v3815_v32 = vpack.c.bf16 %v2734_v20, %v2733_v16  ;;  %v2885_v16 = vld [vmem:[%s5264_s1 + $0x420] sm:$0xff]  ;;  %v2886_v20 = vld [vmem:[%s5264_s1 + $0x428] sm:$0xff] }
  0xac   : > { %3560 = vmatmul.mubr.f32.vlgmr.msra.gmra.mrb[0].mxu0 %v4806_v18  ;;  %3794 = vmatpush3.bf16.msra.mxu1 %v3791_v47  ;;  %v2730_v47 = vld [vmem:[%s5264_s1 + $0x1c8] sm:$0xff] }
  0xad   : > { %3922 = vmatpush3.bf16.msra.mxu0 %v3919_v51  ;;  %3338 = vmatprep.mubr.f32.mxu1 %v4744_v52  ;;  %v2855_v52 = vld [vmem:[%s5264_s1 + $0x3b0] sm:$0xff]  ;;  %v2857_v51 = vld [vmem:[%s5264_s1 + $0x3c0] sm:$0xff]  ;;  %v3807_v55 = vpack.c.bf16 %v2730_v47, %v2729_v46  ;;  %v2864_v46 = vld [vmem:[%s5264_s1 + $0x3f8] sm:$0xff] }
  0xae   : > { %3562 = vmatprep.mubr.f32.mxu0 %v4820_v23  ;;  %3796 = vmatprep.subr.bf16.mxu1 %v3795_v4  ;;  %v3935_v56 = vpack.c.bf16 %v2858_v54, %v2857_v51  ;;  %v5074_v47 = vld [vmem:[%s4515_s17 + $0xc8] sm:$0xff]  ;;  %v2815_v54 = vld [vmem:[%s4515_s17 + $0xd8] sm:$0xff] }
  0xaf   : > { %3339 = vmatmul.mubr.f32.gmra.mrb[2].mxu1 %v4761_v60  ;;  %3924 = vmatprep.subr.bf16.mxu0 %v3923_v7  ;;  %v2856_v60 = vld [vmem:[%s5264_s1 + $0x3b8] sm:$0xff] }
  0xb0   : > { %3563 = vmatmul.mubr.f32.gmra.mrb[2].mxu0 %v4834_v31  ;;  %3798 = vmatpush3.bf16.msra.mxu1 %v3795_v4  ;;  %v3931_v42 = vpack.c.bf16 %v2856_v60, %v2855_v52  ;;  %v2859_v4 = vld [vmem:[%s5264_s1 + $0x3d0] sm:$0xff] }
  0xb1   : > { %3926 = vmatpush3.bf16.msra.mxu0 %v3923_v7  ;;  %3341 = vmatprep.mubr.f32.mxu1 %v4768_v63  ;;  %v2860_v7 = vld [vmem:[%s5264_s1 + $0x3d8] sm:$0xff]  ;;  %v2735_v60 = vld [vmem:[%s5264_s1 + $0x1f0] sm:$0xff] }
  0xb2   : > { %3565 = vmatprep.mubr.f32.mxu0 %v4848_v37  ;;  %3800 = vmatprep.subr.bf16.mxu1 %v3799_v28  ;;  %v3939_v14 = vpack.c.bf16 %v2860_v7, %v2859_v4  ;;  %v2883_v7 = vld [vmem:[%s5264_s1 + $0x410] sm:$0xff] }
  0xb3   : > { %3342 = vmatmul.mubr.f32.gmra.mrb[4].mxu1 %v4788_v8  ;;  %3928 = vmatprep.subr.bf16.mxu0 %v3927_v30 }
  0xb4   : > { %3566 = vmatmul.mubr.f32.gmra.mrb[4].mxu0 %v4862_v45  ;;  %3802 = vmatpush3.bf16.msra.mxu1 %v3799_v28  ;;  %v2861_v28 = vld [vmem:[%s5264_s1 + $0x3e0] sm:$0xff] }
  0xb5   : > { %3930 = vmatpush3.bf16.msra.mxu0 %v3927_v30  ;;  %3344 = vmatprep.mubr.f32.mxu1 %v4796_v13  ;;  %v2862_v30 = vld [vmem:[%s5264_s1 + $0x3e8] sm:$0xff] }
  0xb6   : > { %3568 = vmatprep.mubr.f32.mxu0 %v4876_v50  ;;  %3804 = vmatprep.subr.bf16.mxu1 %v3803_v40  ;;  %v3943_v52 = vpack.c.bf16 %v2862_v30, %v2861_v28 }
  0xb7   : > { %3345 = vmatmul.mubr.f32.gmra.mrb[6].mxu1 %v4816_v22  ;;  %3932 = vmatprep.subr.bf16.mxu0 %v3931_v42 }
  0xb8   : > { %3569 = vmatmul.mubr.f32.gmra.mrb[6].mxu0 %v4890_v57  ;;  %3806 = vmatpush3.bf16.msra.mxu1 %v3803_v40  ;;  %v2736_v40 = vld [vmem:[%s5264_s1 + $0x1f8] sm:$0xff] }
  0xb9   : > { %3934 = vmatpush3.bf16.msra.mxu0 %v3931_v42  ;;  %3347 = vmatprep.mubr.f32.mxu1 %v4824_v26  ;;  %v2863_v42 = vld [vmem:[%s5264_s1 + $0x3f0] sm:$0xff]  ;;  %v3819_v51 = vpack.c.bf16 %v2736_v40, %v2735_v60 }
  0xba   : > { %3571 = vmatprep.mubr.f32.mxu0 %v4904_v2  ;;  %3808 = vmatprep.subr.bf16.mxu1 %v3807_v55 }
  0xbb   : > { %3348 = vmatmul.mubr.f32.gmra.mrb[8].mxu1 %v4844_v36  ;;  %3936 = vmatprep.subr.bf16.mxu0 %v3935_v56 }
  0xbc   : > { %3572 = vmatmul.mubr.f32.gmra.mrb[8].mxu0 %v4918_v15  ;;  %3810 = vmatpush3.bf16.msra.mxu1 %v3807_v55  ;;  %v3947_v55 = vpack.c.bf16 %v2864_v46, %v2863_v42 }
  0xbd   : > { %3938 = vmatpush3.bf16.msra.mxu0 %v3935_v56  ;;  %3350 = vmatprep.mubr.f32.mxu1 %v4852_v39  ;;  %v2881_v56 = vld [vmem:[%s5264_s1 + $0x400] sm:$0xff] }
  0xbe   : > { %3574 = vmatprep.mubr.f32.mxu0 %v4932_v24  ;;  %3812 = vmatprep.subr.bf16.mxu1 %v3811_v12  ;;  %v3951_v4 = vpack.c.bf16 %v2882_v58, %v2881_v56 }
  0xbf   : > { %3351 = vmatmul.mubr.f32.gmra.mrb[10].mxu1 %v4872_v48  ;;  %3940 = vmatprep.subr.bf16.mxu0 %v3939_v14 }
  0xc0   : > { %3575 = vmatmul.mubr.f32.gmra.mrb[10].mxu0 %v4946_v38  ;;  %3814 = vmatpush3.bf16.msra.mxu1 %v3811_v12  ;;  %v2884_v12 = vld [vmem:[%s5264_s1 + $0x418] sm:$0xff] }
  0xc1   : > { %3942 = vmatpush3.bf16.msra.mxu0 %v3939_v14  ;;  %3353 = vmatprep.mubr.f32.mxu1 %v4880_v53  ;;  %v3955_v14 = vpack.c.bf16 %v2884_v12, %v2883_v7 }
  0xc2   : > { %3577 = vmatprep.mubr.f32.mxu0 %v5057_v34  ;;  %3816 = vmatprep.subr.bf16.mxu1 %v3815_v32 }
  0xc3   : > { %3354 = vmatmul.mubr.f32.gmra.mrb[12].mxu1 %v4900_v0  ;;  %3944 = vmatprep.subr.bf16.mxu0 %v3943_v52 }
  0xc4   : > { %3578 = vmatmul.mubr.f32.gmra.mrb[12].mxu0 %v5074_v47  ;;  %3818 = vmatpush3.bf16.msra.mxu1 %v3815_v32 }
  0xc5   : > { %3946 = vmatpush3.bf16.msra.mxu0 %v3943_v52  ;;  %3356 = vmatprep.mubr.f32.mxu1 %v4908_v6 }
  0xc6   : > { %3580 = vmatprep.mubr.f32.mxu0 %v2815_v54  ;;  %3820 = vmatprep.subr.bf16.mxu1 %v3819_v51 }
  0xc7   : > { %3357 = vmatmul.mubr.f32.gmra.mrb[14].mxu1 %v4928_v21  ;;  %3948 = vmatprep.subr.bf16.mxu0 %v3947_v55 }
  0xc8   : > { %3581 = vmatmul.mubr.f32.gmra.mrb[14].mxu0 %v2816_v62  ;;  %3822 = vmatpush3.bf16.msra.mxu1 %v3819_v51  ;;  %v2897_v51 = vld [vmem:[%s5265_s2] ss:$0 sm:$0xff] }
  0xc9   : > { %3950 = vmatpush3.bf16.msra.mxu0 %v3947_v55  ;;  %3391 = vmatprep.mubr.f32.mxu1 %v4765_v61  ;;  %v2887_v61 = vld [vmem:[%s5264_s1 + $0x430] sm:$0xff] }
  0xca   : > { %3615 = vmatprep.mubr.f32.mxu0 %v4591_v59  ;;  %3952 = vmatprep.subr.bf16.mxu0 %v3951_v4  ;;  %v3959_v59 = vpack.c.bf16 %v2886_v20, %v2885_v16 }
  0xcb   : > { %3392 = vmatmul.mubr.f32.vlgmr.msra.gmra.mrb[0].mxu1 %v4778_v5  ;;  %3983 = vmatprep.subr.bf16.mxu1 %v3951_v4  ;;  %v2888_v5 = vld [vmem:[%s5264_s1 + $0x438] sm:$0xff] }
  0xcc   : > { %3616 = vmatmul.mubr.f32.vlgmr.msra.gmra.mrb[0].mxu0 %v4607_v1  ;;  %3991 = vmatpush3.bf16.msra.mxu1 %v3951_v4  ;;  %v3963_v1 = vpack.c.bf16 %v2888_v5, %v2887_v61 }
  0xcd   : > { %3954 = vmatpush3.bf16.msra.mxu0 %v3951_v4  ;;  %3394 = vmatprep.mubr.f32.mxu1 %v4792_v10  ;;  %v2890_v10 = vld [vmem:[%s5264_s1 + $0x448] sm:$0xff] }
  0xce   : > { %3618 = vmatprep.mubr.f32.mxu0 %v4611_v3  ;;  %3956 = vmatprep.subr.bf16.mxu0 %v3955_v14  ;;  %v2889_v3 = vld [vmem:[%s5264_s1 + $0x440] sm:$0xff] }
  0xcf   : > { %3395 = vmatmul.mubr.f32.gmra.mrb[2].mxu1 %v4806_v18  ;;  %3984 = vmatprep.subr.bf16.mxu1 %v3955_v14  ;;  %v2892_v18 = vld [vmem:[%s5264_s1 + $0x458] sm:$0xff] }
  0xd0   : > { %3619 = vmatmul.mubr.f32.gmra.mrb[2].mxu0 %v4628_v9  ;;  %3992 = vmatpush3.bf16.msra.mxu1 %v3955_v14  ;;  %v3967_v9 = vpack.c.bf16 %v2890_v10, %v2889_v3 }
  0xd1   : > { %3958 = vmatpush3.bf16.msra.mxu0 %v3955_v14  ;;  %3397 = vmatprep.mubr.f32.mxu1 %v4820_v23  ;;  %v2894_v23 = vld [vmem:[%s5264_s1 + $0x468] sm:$0xff] }
  0xd2   : > { %3621 = vmatprep.mubr.f32.mxu0 %v4633_v11  ;;  %3960 = vmatprep.subr.bf16.mxu0 %v3959_v59  ;;  %v2891_v11 = vld [vmem:[%s5264_s1 + $0x450] sm:$0xff] }
  0xd3   : > { %3398 = vmatmul.mubr.f32.gmra.mrb[4].mxu1 %v4834_v31  ;;  %3985 = vmatprep.subr.bf16.mxu1 %v3959_v59  ;;  %v2847_v31 = vld [vmem:[%s4515_s17 + $0xd9] sm:$0xff] }
  0xd4   : > { %3622 = vmatmul.mubr.f32.gmra.mrb[4].mxu0 %v4650_v17  ;;  %3993 = vmatpush3.bf16.msra.mxu1 %v3959_v59  ;;  %v3971_v17 = vpack.c.bf16 %v2892_v18, %v2891_v11 }
  0xd5   : > { %3962 = vmatpush3.bf16.msra.mxu0 %v3959_v59  ;;  %3400 = vmatprep.mubr.f32.mxu1 %v4848_v37  ;;  %v2848_v37 = vld [vmem:[%s4515_s17 + $0xe1] sm:$0xff] }
  0xd6   : > { %3624 = vmatprep.mubr.f32.mxu0 %v4655_v19  ;;  %3964 = vmatprep.subr.bf16.mxu0 %v3963_v1  ;;  %v2893_v19 = vld [vmem:[%s5264_s1 + $0x460] sm:$0xff] }
  0xd7   : > { %3401 = vmatmul.mubr.f32.gmra.mrb[6].mxu1 %v4862_v45  ;;  %3986 = vmatprep.subr.bf16.mxu1 %v3963_v1 }
  0xd8   : > { %3625 = vmatmul.mubr.f32.gmra.mrb[6].mxu0 %v4672_v25  ;;  %3994 = vmatpush3.bf16.msra.mxu1 %v3963_v1  ;;  %v3975_v25 = vpack.c.bf16 %v2894_v23, %v2893_v19 }
  0xd9   : > { %3966 = vmatpush3.bf16.msra.mxu0 %v3963_v1  ;;  %3403 = vmatprep.mubr.f32.mxu1 %v4876_v50 }
  0xda   : > { %3627 = vmatprep.mubr.f32.mxu0 %v4677_v27  ;;  %3968 = vmatprep.subr.bf16.mxu0 %v3967_v9  ;;  %v2895_v27 = vld [vmem:[%s5264_s1 + $0x470] sm:$0xff] }
  0xdb   : > { %3404 = vmatmul.mubr.f32.gmra.mrb[8].mxu1 %v4890_v57  ;;  %3987 = vmatprep.subr.bf16.mxu1 %v3967_v9 }
  0xdc   : > { %3628 = vmatmul.mubr.f32.gmra.mrb[8].mxu0 %v4694_v33  ;;  %3995 = vmatpush3.bf16.msra.mxu1 %v3967_v9  ;;  %v2896_v33 = vld [vmem:[%s5264_s1 + $0x478] sm:$0xff] }
  0xdd   : > { %3970 = vmatpush3.bf16.msra.mxu0 %v3967_v9  ;;  %3406 = vmatprep.mubr.f32.mxu1 %v4904_v2 }
  0xde   : > { %3630 = vmatprep.mubr.f32.mxu0 %v4699_v35  ;;  %3972 = vmatprep.subr.bf16.mxu0 %v3971_v17  ;;  %v3979_v35 = vpack.c.bf16 %v2896_v33, %v2895_v27 }
  0xdf   : > { %3407 = vmatmul.mubr.f32.gmra.mrb[10].mxu1 %v4918_v15  ;;  %3988 = vmatprep.subr.bf16.mxu1 %v3971_v17 }
  0xe0   : > { %3631 = vmatmul.mubr.f32.gmra.mrb[10].mxu0 %v4716_v41  ;;  %3996 = vmatpush3.bf16.msra.mxu1 %v3971_v17  ;;  %v2879_v41 = vld [vmem:[%s4515_s17 + $0xda] sm:$0xff] }
  0xe1   : > { %3974 = vmatpush3.bf16.msra.mxu0 %v3971_v17  ;;  %3409 = vmatprep.mubr.f32.mxu1 %v4932_v24 }
  0xe2   : > { %3633 = vmatprep.mubr.f32.mxu0 %v4721_v43  ;;  %3976 = vmatprep.subr.bf16.mxu0 %v3975_v25  ;;  %v2880_v43 = vld [vmem:[%s4515_s17 + $0xe2] sm:$0xff] }
  0xe3   : > { %3410 = vmatmul.mubr.f32.gmra.mrb[12].mxu1 %v4946_v38  ;;  %3989 = vmatprep.subr.bf16.mxu1 %v3975_v25 }
  0xe4   : > { %3634 = vmatmul.mubr.f32.gmra.mrb[12].mxu0 %v4738_v49  ;;  %3997 = vmatpush3.bf16.msra.mxu1 %v3975_v25 }
  0xe5   : > { %3978 = vmatpush3.bf16.msra.mxu0 %v3975_v25  ;;  %3412 = vmatprep.mubr.f32.mxu1 %v5057_v34 }
  0xe6   : > { %3636 = vmatprep.mubr.f32.mxu0 %v2847_v31  ;;  %3980 = vmatprep.subr.bf16.mxu0 %v3979_v35 }
  0xe7   : > { %3413 = vmatmul.mubr.f32.gmra.mrb[14].mxu1 %v5074_v47  ;;  %3990 = vmatprep.subr.bf16.mxu1 %v3979_v35 }
  0xe8   : > { %3637 = vmatmul.mubr.f32.gmra.mrb[14].mxu0 %v2848_v37  ;;  %3998 = vmatpush3.bf16.msra.mxu1 %v3979_v35 }
  0xe9   : > { %3982 = vmatpush3.bf16.msra.mxu0 %v3979_v35  ;;  %3671 = vmatprep.mubr.f32.mxu0 %v4768_v63 }
  0xea   : > { %3683 = vmatprep.mubr.f32.mxu1 %v4880_v53 }
  0xeb   : > { %3684 = vmatmul.mubr.f32.vlgmr.msra.gmra.mrb[16].mxu1 %v4900_v0 }
  0xec   : > { %3672 = vmatmul.mubr.f32.vlgmr.msra.gmra.mrb[0].mxu0 %v4788_v8  ;;  %3686 = vmatprep.mubr.f32.mxu1 %v4908_v6 }
  0xed   : > { %3674 = vmatprep.mubr.f32.mxu0 %v4796_v13 }
  0xef   : > { %3687 = vmatmul.mubr.f32.gmra.mrb[18].mxu1 %v4928_v21 }
  0xf0   : > { %3675 = vmatmul.mubr.f32.gmra.mrb[2].mxu0 %v4816_v22  ;;  %3689 = vmatprep.mubr.f32.mxu1 %v4936_v29 }
  0xf1   : > { %3677 = vmatprep.mubr.f32.mxu0 %v4824_v26 }
  0xf3   : > { %3690 = vmatmul.mubr.f32.gmra.mrb[20].mxu1 %v4956_v44 }
  0xf4   : > { %3678 = vmatmul.mubr.f32.gmra.mrb[4].mxu0 %v4844_v36  ;;  %3692 = vmatprep.mubr.f32.mxu1 %v2879_v41 }
  0xf5   : > { %3680 = vmatprep.mubr.f32.mxu0 %v4852_v39 }
  0xf7   : > { %3693 = vmatmul.mubr.f32.gmra.mrb[22].mxu1 %v2880_v43 }
  0xf8   : > { %3681 = vmatmul.mubr.f32.gmra.mrb[6].mxu0 %v4872_v48 }
 0x19e   : > { %v3393_v49 = vpop.f32.mrb[0].mxu1 }
 0x19f   : > { %v1220_v63 = vpop.f32.mrb[1].mxu1 }
 0x1a2   : > { %v3396_v8 = vpop.f32.mrb[2].mxu1 }
 0x1a3   : > { %v1230_v13 = vpop.f32.mrb[3].mxu1 }
 0x1a6   : > { %v5179_v22 = vpop.f32.mrb[4].mxu1 }
 0x1a7   : > { %v5181_v45 = vpop.f32.mrb[5].mxu1 }
 0x1aa   : > { %v5183_v26 = vpop.f32.mrb[6].mxu1 }
 0x1ab   : > { %v5185_v50 = vpop.f32.mrb[7].mxu1 }
 0x1ae   : > { %v3405_v36 = vpop.f32.mrb[8].mxu1 }
 0x1af   : > { %v3629_v53 = vpop.f32.mrb[8].mxu0  ;;  %v1260_v57 = vpop.f32.mrb[9].mxu1 }
 0x1b0   : > { %v4007_v0 = vadd.f32 %v3629_v53, %v3405_v36  ;;  %v2038_v39 = vpop.f32.mrb[9].mxu0 }
 0x1b1   : > { %v4009_v2 = vadd.f32 %v2038_v39, %v1260_v57 }
 0x1b2   : > { %v3408_v6 = vpop.f32.mrb[10].mxu1 }
 0x1b3   : > { %v3632_v48 = vpop.f32.mrb[10].mxu0  ;;  %v1270_v15 = vpop.f32.mrb[11].mxu1 }
 0x1b4   : > { %v4011_v21 = vadd.f32 %v3632_v48, %v3408_v6  ;;  %v2048_v24 = vpop.f32.mrb[11].mxu0 }
 0x1b5   : > { %v4013_v29 = vadd.f32 %v2048_v24, %v1270_v15 }
 0x1b6   : > { %v3411_v38 = vpop.f32.mrb[12].mxu1 }
 0x1b7   : > { %v3635_v44 = vpop.f32.mrb[12].mxu0  ;;  %v1280_v28 = vpop.f32.mrb[13].mxu1 }
 0x1b8   : > { %v4015_v30 = vadd.f32 %v3635_v44, %v3411_v38  ;;  %v2058_v32 = vpop.f32.mrb[13].mxu0 }
 0x1b9   : > { %v4017_v34 = vadd.f32 %v2058_v32, %v1280_v28 }
 0x1ba   : > { %v3414_v52 = vpop.f32.mrb[14].mxu1 }
 0x1bb   : > { %v3638_v60 = vpop.f32.mrb[14].mxu0  ;;  %v1290_v40 = vpop.f32.mrb[15].mxu1 }
 0x1bc   : > { %v4019_v42 = vadd.f32 %v3638_v60, %v3414_v52  ;;  %v2068_v46 = vpop.f32.mrb[15].mxu0 }
 0x1bd   : > { %v4021_v47 = vadd.f32 %v2068_v46, %v1290_v40 }
 0x1be   : > { %v3685_v54 = vpop.f32.mrb[16].mxu1 }
 0x1bf   : > { %v3673_v55 = vpop.f32.mrb[0].mxu0  ;;  %v4008_v56 = vadd.f32 %v4007_v0, %v3685_v54  ;;  %v2232_v58 = vpop.f32.mrb[17].mxu1 }
 0x1c0   : > { %v3999_v62 = vadd.f32 %v3673_v55, %v3393_v49  ;;  %v2192_v4 = vpop.f32.mrb[1].mxu0  ;;  %v4010_v7 = vadd.f32 %v4009_v2, %v2232_v58 }
 0x1c1   : > { %v5190_v12 = vadd.f32 %v4008_v56, %v2897_v51  ;;  %v4000_v14 = vadd.f32 %v2192_v4, %v1220_v63 }
 0x1c2   : > { %v2295_v16 = vadd.f32 %v3999_v62, %v2897_v51  ;;  %v5192_v20 = vadd.f32 %v4010_v7, %v2897_v51  ;;  %v3688_v59 = vpop.f32.mrb[18].mxu1 }
 0x1c3   : > { %2319 = vst [vmem:[%s4304_s22 + $0x48] sm:$0xff] %v5190_v12  ;;  %v2294_v61 = vadd.f32 %v4000_v14, %v2897_v51  ;;  %v3676_v5 = vpop.f32.mrb[2].mxu0  ;;  %v4012_v1 = vadd.f32 %v4011_v21, %v3688_v59  ;;  %v2242_v3 = vpop.f32.mrb[19].mxu1 }
 0x1c4   : > { %2311 = vst [vmem:[%s4304_s22 + $0x8] sm:$0xff] %v2295_v16  ;;  %2318 = vst [vmem:[%s4304_s22 + $0x40] sm:$0xff] %v5192_v20  ;;  %v4001_v10 = vadd.f32 %v3676_v5, %v3396_v8  ;;  %v2202_v9 = vpop.f32.mrb[3].mxu0  ;;  %v4014_v11 = vadd.f32 %v4013_v29, %v2242_v3  ;;  %v4210_v29 = vmov (!%p2598_p8), 0.0  }
 0x1c5   : > { %2310 = vst [vmem:[%s4304_s22] sm:$0xff] %v2294_v61  ;;  %v5200_v18 = vadd.f32 %v4012_v1, %v2897_v51  ;;  %v4002_v17 = vadd.f32 %v2202_v9, %v1230_v13  ;;  %2329 = vst [vmem:[%s4292_s11] sm:$0x1] (!%p2598_p8), %v4210_v29 }
 0x1c6   : > { %v2297_v19 = vadd.f32 %v4001_v10, %v2897_v51  ;;  %v5202_v23 = vadd.f32 %v4014_v11, %v2897_v51  ;;  %v3691_v25 = vpop.f32.mrb[20].mxu1  ;;  %2330 = vst [vmem:[%s4297_s15] sm:$0x1] (!%p2598_p8), %v4210_v29 }
 0x1c7   : > { %2321 = vst [vmem:[%s4304_s22 + $0x58] sm:$0xff] %v5200_v18  ;;  %v2296_v27 = vadd.f32 %v4002_v17, %v2897_v51  ;;  %v3679_v33 = vpop.f32.mrb[4].mxu0  ;;  %v4016_v35 = vadd.f32 %v4015_v30, %v3691_v25  ;;  %v2252_v31 = vpop.f32.mrb[21].mxu1 }
 0x1c8   : > { %2313 = vst [vmem:[%s4304_s22 + $0x18] sm:$0xff] %v2297_v19  ;;  %2320 = vst [vmem:[%s4304_s22 + $0x50] sm:$0xff] %v5202_v23  ;;  %v4003_v37 = vadd.f32 %v3679_v33, %v5179_v22  ;;  %v2212_v41 = vpop.f32.mrb[5].mxu0  ;;  %v4018_v43 = vadd.f32 %v4017_v34, %v2252_v31 }
 0x1c9   : > { %2312 = vst [vmem:[%s4304_s22 + $0x10] sm:$0xff] %v2296_v27  ;;  %v5211_v49 = vadd.f32 %v4016_v35, %v2897_v51  ;;  %v4004_v63 = vadd.f32 %v2212_v41, %v5181_v45 }
 0x1ca   : > { %v2299_v8 = vadd.f32 %v4003_v37, %v2897_v51  ;;  %v2306_v13 = vadd.f32 %v4018_v43, %v2897_v51  ;;  %v3694_v36 = vpop.f32.mrb[22].mxu1 }
 0x1cb   : > { %2323 = vst [vmem:[%s4304_s22 + $0x68] sm:$0xff] %v5211_v49  ;;  %v2298_v53 = vadd.f32 %v4004_v63, %v2897_v51  ;;  %v3682_v57 = vpop.f32.mrb[6].mxu0  ;;  %v4020_v0 = vadd.f32 %v4019_v42, %v3694_v36  ;;  %v2262_v22 = vpop.f32.mrb[23].mxu1  ;;  %2328 = sbr.rel (%p2598_p8) target bundleno = 466 (0x1d2), region = 122 }
 0x1cc   : > { %2315 = vst [vmem:[%s4304_s22 + $0x28] sm:$0xff] %v2299_v8  ;;  %2322 = vst [vmem:[%s4304_s22 + $0x60] sm:$0xff] %v2306_v13  ;;  %v4005_v39 = vadd.f32 %v3682_v57, %v5183_v26  ;;  %v2222_v2 = vpop.f32.mrb[7].mxu0  ;;  %v4022_v6 = vadd.f32 %v4021_v47, %v2262_v22 }
 0x1cd   : > { %2314 = vst [vmem:[%s4304_s22 + $0x20] sm:$0xff] %v2298_v53  ;;  %v2309_v45 = vadd.f32 %v4020_v0, %v2897_v51  ;;  %v4006_v48 = vadd.f32 %v2222_v2, %v5185_v50 }
 0x1ce   : > { %v2301_v15 = vadd.f32 %v4005_v39, %v2897_v51  ;;  %v2308_v21 = vadd.f32 %v4022_v6, %v2897_v51 }
 0x1cf   : > { %2325 = vst [vmem:[%s4304_s22 + $0x78] sm:$0xff] %v2309_v45  ;;  %v2300_v24 = vadd.f32 %v4006_v48, %v2897_v51 }
 0x1d0   : > { %2317 = vst [vmem:[%s4304_s22 + $0x38] sm:$0xff] %v2301_v15  ;;  %2324 = vst [vmem:[%s4304_s22 + $0x70] sm:$0xff] %v2308_v21 }
 0x1d1   : > { %2316 = vst [vmem:[%s4304_s22 + $0x30] sm:$0xff] %v2300_v24 }
 0x1d2 PF: > { %v2332_v26 = vadd.f32 %v2295_v16, %v2294_v61  ;;  %v2356_v38 = vmul.f32 %v2294_v61, %v2294_v61  ;;  %v2357_v44 = vmul.f32 %v2295_v16, %v2295_v16  ;;  %v2358_v28 = vmul.f32 %v2296_v27, %v2296_v27  ;;  %v2331_v22 = vld [vmem:[%s4292_s11] sm:$0x1] }
 0x1d3   : > { %v2359_v32 = vmul.f32 %v2297_v19, %v2297_v19  ;;  %v2360_v60 = vmul.f32 %v2298_v53, %v2298_v53  ;;  %v2361_v46 = vmul.f32 %v2299_v8, %v2299_v8  ;;  %v2362_v54 = vmul.f32 %v2300_v24, %v2300_v24 }
 0x1d4   : > { %v2333_v50 = vadd.f32 %v2332_v26, %v2296_v27  ;;  %v2372_v34 = vadd.f32 %v2357_v44, %v2356_v38  ;;  %v2363_v58 = vmul.f32 %v2301_v15, %v2301_v15  ;;  %v2364_v7 = vmul.f32 %v5192_v20, %v5192_v20 }
 0x1d5   : > { %v2365_v59 = vmul.f32 %v5190_v12, %v5190_v12  ;;  %v2366_v1 = vmul.f32 %v5202_v23, %v5202_v23  ;;  %v2367_v9 = vmul.f32 %v5200_v18, %v5200_v18  ;;  %v2368_v17 = vmul.f32 %v2306_v13, %v2306_v13 }
 0x1d6   : > { %v2334_v30 = vadd.f32 %v2333_v50, %v2297_v19  ;;  %v2373_v40 = vadd.f32 %v2372_v34, %v2358_v28  ;;  %v2370_v35 = vmul.f32 %v2308_v21, %v2308_v21  ;;  %v2371_v37 = vmul.f32 %v2309_v45, %v2309_v45 }
 0x1d8   : > { %v2335_v52 = vadd.f32 %v2334_v30, %v2298_v53  ;;  %v2374_v47 = vadd.f32 %v2373_v40, %v2359_v32 }
 0x1da   : > { %v2336_v42 = vadd.f32 %v2335_v52, %v2299_v8  ;;  %v2375_v55 = vadd.f32 %v2374_v47, %v2360_v60 }
 0x1dc   : > { %v2337_v51 = vadd.f32 %v2336_v42, %v2300_v24  ;;  %v2376_v62 = vadd.f32 %v2375_v55, %v2361_v46 }
 0x1de   : > { %v2338_v56 = vadd.f32 %v2337_v51, %v2301_v15  ;;  %v2377_v14 = vadd.f32 %v2376_v62, %v2362_v54 }
 0x1e0   : > { %v2339_v4 = vadd.f32 %v2338_v56, %v5192_v20  ;;  %v2378_v61 = vadd.f32 %v2377_v14, %v2363_v58 }
 0x1e2   : > { %v2340_v16 = vadd.f32 %v2339_v4, %v5190_v12  ;;  %v2379_v3 = vadd.f32 %v2378_v61, %v2364_v7  ;;  %v2369_v12 = vmul.f32 %v5211_v49, %v5211_v49 }
 0x1e4   : > { %v2341_v5 = vadd.f32 %v2340_v16, %v5202_v23  ;;  %v2380_v11 = vadd.f32 %v2379_v3, %v2365_v59 }
 0x1e6   : > { %v2342_v10 = vadd.f32 %v2341_v5, %v5200_v18  ;;  %v2381_v19 = vadd.f32 %v2380_v11, %v2366_v1 }
 0x1e8   : > { %v2343_v20 = vadd.f32 %v2342_v10, %v2306_v13  ;;  %v2382_v27 = vadd.f32 %v2381_v19, %v2367_v9 }
 0x1ea   : > { %v2344_v25 = vadd.f32 %v2343_v20, %v5211_v49  ;;  %v2383_v23 = vadd.f32 %v2382_v27, %v2368_v17 }
 0x1ec   : > { %v2345_v33 = vadd.f32 %v2344_v25, %v2308_v21  ;;  %v2384_v41 = vadd.f32 %v2383_v23, %v2369_v12 }
 0x1ee   : > { %v2346_v31 = vadd.f32 %v2345_v33, %v2309_v45  ;;  %v2385_v18 = vadd.f32 %v2384_v41, %v2370_v35  ;;  %v2355_v45 = vld [vmem:[%s4297_s15] sm:$0x1] }
 0x1f0   : > { %v2347_v43 = vrot.slane %v2346_v31, 4  ;;  %v2386_v8 = vadd.f32 %v2385_v18, %v2371_v37 }
 0x1f2   : > { %v2348_v63 = vadd.f32 %v2347_v43, %v2346_v31  ;;  %v2387_v36 = vrot.slane %v2386_v8, 4 }
 0x1f4   : > { %v2349_v13 = vrot.slane %v2348_v63, 2  ;;  %v2388_v57 = vadd.f32 %v2387_v36, %v2386_v8 }
 0x1f6   : > { %v2350_v53 = vadd.f32 %v2349_v13, %v2348_v63  ;;  %v2389_v0 = vrot.slane %v2388_v57, 2 }
 0x1f8   : > { %v2351_v49 = vrot.slane %v2350_v53, 1  ;;  %v2390_v2 = vadd.f32 %v2389_v0, %v2388_v57 }
 0x1fa   : > { %v2352_v39 = vadd.f32 %v2351_v49, %v2350_v53  ;;  %v2391_v48 = vrot.slane %v2390_v2, 1 }
 0x1fc   : > { %v2353_v6 = vadd.f32 %v2352_v39, %v2331_v22  ;;  %v2392_v15 = vadd.f32 %v2391_v48, %v2390_v2 }
 0x1fe   : > { %2354 = vst [vmem:[%s4292_s11] sm:$0x1] %v2353_v6  ;;  %v2393_v21 = vadd.f32 %v2392_v15, %v2355_v45 }
 0x200   : > { %2394 = vst [vmem:[%s4297_s15] sm:$0x1] %v2393_v21 }
 0x201 PF: > { %s18_s3 = sadd.s32 1, %s4208_s3   ;;  %s5272_s22 = sld [smem:[#allocation7_spill]] }
 0x202   : > { %p15_p10 = scmp.ge.s32.totalorder %s18_s3, 6   ;;  %s5273_s24 = smov %s4200_s26 }
 0x203   : > { %s5274_s25 = smov %s4204_s27  ;;  %s5275_s26 = smov %s5278_s4 }
 0x204   :  { %17 = sbr.rel (!%p15_p10) target bundleno = 3 (0x3), region = 220 }
 0x207   : > { %s5276_s27 = smov %s5272_s22 }
 0x20b   :  { %2451 = vsyncmov [#allocation3] }
 0x20e   :  { %s2452_s11 = vpop.sfrf %2451 }
 0x20f   :  { %p2901_p11 = scmp.ne.s32.totalorder %s2452_s11, 0 }
 0x211   :  { %2456 = shalt.err (%p2901_p11)  }
 0x212   :  { %2458 = vsyncmov [#allocation3 + $0x1] }
 0x215   :  { %s2459_s15 = vpop.sfrf %2458 }
 0x216   :  { %p2902_p12 = scmp.ne.s32.totalorder %s2459_s15, 0 }
 0x218   :  { %2463 = shalt.err (%p2902_p12)  }

// kernel: down_block_forward.4
= control target key start
LH: loop header
LB: loop body
LE: loop exit
PB: predicated region body
PF: predicated region fallthrough
CT: control target
= control target key end

     0   :  { %s4651_s24 = smov 0   ;;  %s4653_s25 = smov 0   ;;  %s6246_s0 = inlined_call_operand.vmem [shape: f32[2,18,18,128], index: 0, kind: input, shape index: {}]   ;;  %s6247_s1 = inlined_call_operand.vmem [shape: f32[9,128,128], index: 1, kind: input, shape index: {}]   ;;  %s6248_s2 = inlined_call_operand.vmem [shape: f32[1,128], index: 2, kind: input, shape index: {}]   ;;  %s6249_s3 = inlined_call_operand.vmem [shape: f32[1,128], index: 3, kind: input, shape index: {}]   ;;  %s6250_s4 = inlined_call_operand.vmem [shape: f32[1,128], index: 4, kind: input, shape index: {}]   ;;  %s6251_s5 = inlined_call_operand.vmem [shape: f32[2,16,16,128], index: 5, kind: output, shape index: {0}]   ;;  %s6252_s6 = inlined_call_operand.vmem [shape: f32[2,1,128], index: 6, kind: output, shape index: {1}]   ;;  %s6253_s7 = inlined_call_operand.vmem [shape: f32[2,1,128], index: 7, kind: output, shape index: {2}]  }
   0x1   :  { %s4655_s26 = smov 0   ;;  %s4657_s27 = smov 0  }
   0x2   :  { %s4659_s28 = smov 0  }
   0x3 LB: > { %6278 = sst [smem:[#allocation7_spill]] %s4604_s27  ;;  %s27_s29 = sadd.s32 1, %s4600_s26  ;;  %s4608_s28 = sphi %s4659_s28, %s18_s28   ;;  %s4604_s27 = sphi %s4657_s27, %s6376_s27   ;;  %s4600_s26 = sphi %s4655_s26, %s6378_s26   ;;  %s4596_s25 = sphi %s4653_s25, %s6374_s25   ;;  %s4592_s24 = sphi %s4651_s24, %s6377_s24  }
   0x4   : > { %s30_s30 = sadd.s32 1, %s4604_s27  ;;  %p28_p0 = scmp.ge.s32.totalorder %s27_s29, 2 }
   0x5   : > { %p2951_p1 = scmp.ge.s32.totalorder %s4608_s28, 1  ;;  %p222_p2 = scmp.lt.s32.totalorder %s4608_s28, 5 }
   0x6   : > { %s6380_s29 = smov (%p28_p0, %s27_s29), 0  ;;  %s6382_s30 = smov (!%p28_p0, %s30_s30), %s4604_s27 }
   0x7   : > { %6279 = sst [smem:[#allocation8_spill]] %s6380_s29  ;;  %p223_p3 = pnand %p2951_p1, %p222_p2 }
   0x8   : > { %p32_p4 = scmp.ge.s32.totalorder %s6382_s30, 2 }
   0x9   : > { %226 = sbr.rel (%p223_p3) target bundleno = 522 (0x20a), region = 36 }
   0xa   : > { %s6384_s30 = smov (%p32_p4, %s6382_s30), 0 }
   0xb   : > { %6280 = sst [smem:[#allocation9_spill]] %s6384_s30 }
  0x10   : > { %s2952_s8 = sshll.u32 %s4592_s24, 3  ;;  %p259_p5 = scmp.lt.s32.totalorder %s4596_s25, 1 }
  0x11   : > { %p261_p6 = scmp.lt.s32.totalorder %s2952_s8, 15  ;;  %p275_p7 = scmp.lt.s32.totalorder %s4592_s24, 0 }
  0x12   : > { %s260_s9 = scalar_select %p259_p5, %s4596_s25, 1 }
  0x13   : > { %s6386_s8 = smov (!%p261_p6, %s2952_s8), 15  ;;  %s276_s19 = ssub.s32 0, %s4592_s24 }
  0x14   : > { %s2954_s10 = sshll.u32 %s260_s9, 5  ;;  %s4692_s13 = scalar_lea.vmem %s6252_s6, %s260_s9 }
  0x15   : > { %s2953_s14 = sshll.u32 %s6386_s8, 1  ;;  %s4697_s17 = scalar_lea.vmem %s6253_s7, %s260_s9 }
  0x16   : > { %s265_s18 = sadd.s32 %s2954_s10, %s2953_s14  ;;  %s2956_s21 = smin.u32 %s4592_s24, %s276_s19 }
  0x17   : > { %s2955_s20 = sshll.u32 %s265_s18, 3  ;;  %s278_s29 = sand.u32 1, %s2956_s21  }
  0x18   : > { %s4704_s30 = scalar_lea.vmem %s6251_s5, %s2955_s20  ;;  %s279_s27 = ssub.s32 0, %s278_s29 }
  0x19   : > { %p281_p8 = scmp.eq.s32.totalorder %s4592_s24, 0  ;;  %s6388_s27 = smov (!%p275_p7, %s279_s27), %s278_s29 }
  0x1a   : > { %p2957_p9 = scmp.ne.s32.totalorder %s4592_s24, 0 }
  0x1b   : > { %s2959_s8 = smul.u32 (!%p2957_p9), 192, %s4592_s24  ;;  %s292_s16 = scalar_lea.sflag (!%p2957_p9), [#allocation3], %s6388_s27 }
  0x1c   : > { %284 = sbr.rel (%p2957_p9) target bundleno = 51 (0x33), region = 40 }
  0x1d   : > { %s287_s9 = smul.u32 (!%p2957_p9), 432, %s4596_s25 }
  0x1e   : > { %s290_s10 = smul.u32 (!%p2957_p9), 240, %s6388_s27 }
  0x1f   : > { %s288_s11 = sadd.s32 (!%p2957_p9), %s2959_s8, %s287_s9 }
  0x20   : > { %s4720_s15 = scalar_lea.vmem (!%p2957_p9), %s6246_s0, %s288_s11  ;;  %s4725_s29 = scalar_lea.vmem (!%p2957_p9), [#allocation2], %s290_s10 }
  0x21   : > { %v348_v0 = vld [vmem:[%s4720_s15] sm:$0xff] (!%p2957_p9)  ;;  %v350_v1 = vld [vmem:[%s4720_s15 + $0x8] sm:$0xff] (!%p2957_p9)  ;;  %v352_v2 = vld [vmem:[%s4720_s15 + $0x18] sm:$0xff] (!%p2957_p9) }
  0x22   : > { %349 = vst [vmem:[%s4725_s29] sm:$0xff] (!%p2957_p9), %v348_v0  ;;  %351 = vst [vmem:[%s4725_s29 + $0x8] sm:$0xff] (!%p2957_p9), %v350_v1  ;;  %v354_v3 = vld [vmem:[%s4720_s15 + $0x20] sm:$0xff] (!%p2957_p9)  ;;  %v356_v4 = vld [vmem:[%s4720_s15 + $0x30] sm:$0xff] (!%p2957_p9) }
  0x23   : > { %353 = vst [vmem:[%s4725_s29 + $0x18] sm:$0xff] %v352_v2  ;;  %v358_v5 = vld [vmem:[%s4720_s15 + $0x38] sm:$0xff]  ;;  %355 = vst [vmem:[%s4725_s29 + $0x20] sm:$0xff] %v354_v3  ;;  %v360_v6 = vld [vmem:[%s4720_s15 + $0x48] sm:$0xff] }
  0x24   : > { %357 = vst [vmem:[%s4725_s29 + $0x30] sm:$0xff] %v356_v4  ;;  %359 = vst [vmem:[%s4725_s29 + $0x38] sm:$0xff] %v358_v5  ;;  %v362_v7 = vld [vmem:[%s4720_s15 + $0x50] sm:$0xff]  ;;  %v364_v8 = vld [vmem:[%s4720_s15 + $0x60] sm:$0xff] }
  0x25   : > { %361 = vst [vmem:[%s4725_s29 + $0x48] sm:$0xff] %v360_v6  ;;  %363 = vst [vmem:[%s4725_s29 + $0x50] sm:$0xff] %v362_v7  ;;  %v366_v9 = vld [vmem:[%s4720_s15 + $0x68] sm:$0xff]  ;;  %v368_v10 = vld [vmem:[%s4720_s15 + $0x78] sm:$0xff] }
  0x26   : > { %365 = vst [vmem:[%s4725_s29 + $0x60] sm:$0xff] %v364_v8  ;;  %v370_v11 = vld [vmem:[%s4720_s15 + $0x80] sm:$0xff]  ;;  %367 = vst [vmem:[%s4725_s29 + $0x68] sm:$0xff] %v366_v9  ;;  %v372_v12 = vld [vmem:[%s4720_s15 + $0x90] sm:$0xff] }
  0x27   : > { %369 = vst [vmem:[%s4725_s29 + $0x78] sm:$0xff] %v368_v10  ;;  %371 = vst [vmem:[%s4725_s29 + $0x80] sm:$0xff] %v370_v11  ;;  %v374_v13 = vld [vmem:[%s4720_s15 + $0x98] sm:$0xff]  ;;  %v376_v14 = vld [vmem:[%s4720_s15 + $0xa8] sm:$0xff] }
  0x28   : > { %373 = vst [vmem:[%s4725_s29 + $0x90] sm:$0xff] %v372_v12  ;;  %375 = vst [vmem:[%s4725_s29 + $0x98] sm:$0xff] %v374_v13  ;;  %v378_v15 = vld [vmem:[%s4720_s15 + $0xb0] sm:$0xff]  ;;  %v380_v16 = vld [vmem:[%s4720_s15 + $0xc0] sm:$0xff] }
  0x29   : > { %377 = vst [vmem:[%s4725_s29 + $0xa8] sm:$0xff] %v376_v14  ;;  %v382_v17 = vld [vmem:[%s4720_s15 + $0xc8] sm:$0xff]  ;;  %379 = vst [vmem:[%s4725_s29 + $0xb0] sm:$0xff] %v378_v15  ;;  %v384_v18 = vld [vmem:[%s4720_s15 + $0xd8] sm:$0xff] }
  0x2a   : > { %381 = vst [vmem:[%s4725_s29 + $0xc0] sm:$0xff] %v380_v16  ;;  %383 = vst [vmem:[%s4725_s29 + $0xc8] sm:$0xff] %v382_v17  ;;  %v386_v19 = vld [vmem:[%s4720_s15 + $0xe0] sm:$0xff]  ;;  %v2960_v20 = vld [vmem:[%s4720_s15 + $0x10] sm:$0x3] }
  0x2b   : > { %385 = vst [vmem:[%s4725_s29 + $0xd8] sm:$0xff] %v384_v18  ;;  %387 = vst [vmem:[%s4725_s29 + $0xe0] sm:$0xff] %v386_v19  ;;  %v2962_v21 = vld [vmem:[%s4720_s15 + $0x28] sm:$0x3]  ;;  %v2964_v22 = vld [vmem:[%s4720_s15 + $0x40] sm:$0x3] }
  0x2c   : > { %2961 = vst [vmem:[%s4725_s29 + $0x10] sm:$0x3] %v2960_v20  ;;  %v2966_v23 = vld [vmem:[%s4720_s15 + $0x58] sm:$0x3]  ;;  %2963 = vst [vmem:[%s4725_s29 + $0x28] sm:$0x3] %v2962_v21 }
  0x2d   : > { %2965 = vst [vmem:[%s4725_s29 + $0x40] sm:$0x3] %v2964_v22  ;;  %2967 = vst [vmem:[%s4725_s29 + $0x58] sm:$0x3] %v2966_v23  ;;  %v2968_v24 = vld [vmem:[%s4720_s15 + $0x70] sm:$0x3] }
  0x2e   : > { %v2970_v25 = vld [vmem:[%s4720_s15 + $0x88] sm:$0x3]  ;;  %v2972_v26 = vld [vmem:[%s4720_s15 + $0xa0] sm:$0x3]  ;;  %2969 = vst [vmem:[%s4725_s29 + $0x70] sm:$0x3] %v2968_v24 }
  0x2f   : > { %2971 = vst [vmem:[%s4725_s29 + $0x88] sm:$0x3] %v2970_v25  ;;  %2973 = vst [vmem:[%s4725_s29 + $0xa0] sm:$0x3] %v2972_v26  ;;  %v2974_v27 = vld [vmem:[%s4720_s15 + $0xb8] sm:$0x3] }
  0x30   : > { %v2976_v28 = vld [vmem:[%s4720_s15 + $0xd0] sm:$0x3]  ;;  %v2978_v29 = vld [vmem:[%s4720_s15 + $0xe8] sm:$0x3]  ;;  %2975 = vst [vmem:[%s4725_s29 + $0xb8] sm:$0x3] %v2974_v27 }
  0x31   : > { %2977 = vst [vmem:[%s4725_s29 + $0xd0] sm:$0x3] %v2976_v28  ;;  %2979 = vst [vmem:[%s4725_s29 + $0xe8] sm:$0x3] %v2978_v29 }
  0x32   : > { %420 = vsyncadd %s292_s16, 2880 }
  0x33 PF: > { %s421_s18 = smul.u32 240, %s6388_s27  ;;  %s423_s20 = scalar_lea.sflag [#allocation3], %s6388_s27 }
  0x35   : > { %s4786_s19 = scalar_lea.vmem [#allocation2], %s421_s18 }
  0x36   : > { %4588 = dma.done.wait %s423_s20, 2880 }
  0x37   : > { %4589 = vsyncadd %s423_s20, 4294964416  ;;  %s428_s21 = sadd.s32 1, %s4592_s24 }
  0x38   : > { %p2980_p10 = scmp.ge.s32.totalorder %s428_s21, 2 }
  0x39   : > { %s433_s22 = ssub.s32 (!%p2980_p10), 1, %s6388_s27  ;;  %s2849_s23 = smul.u32 (!%p2980_p10), 192, %s4592_s24 }
  0x3a   : > { %432 = sbr.rel (%p2980_p10) target bundleno = 81 (0x51), region = 81  ;;  %s441_s15 = scalar_lea.sflag (!%p2980_p10), [#allocation3], %s433_s22 }
  0x3b   : > { %s2850_s8 = smul.u32 (!%p2980_p10), 432, %s4596_s25 }
  0x3c   : > { %s439_s9 = smul.u32 (!%p2980_p10), 240, %s433_s22 }
  0x3d   : > { %s2851_s10 = sadd.s32 (!%p2980_p10), %s2850_s8, %s2849_s23 }
  0x3e   : > { %s4798_s14 = scalar_lea.vmem (!%p2980_p10), %s6246_s0, %s2851_s10  ;;  %s4803_s25 = scalar_lea.vmem (!%p2980_p10), [#allocation2], %s439_s9 }
  0x3f   : > { %v2982_v30 = vld [vmem:[%s4798_s14 + $0xc0] sm:$0xff] (!%p2980_p10)  ;;  %v2983_v31 = vld [vmem:[%s4798_s14 + $0xc8] sm:$0xff] (!%p2980_p10)  ;;  %v2984_v32 = vld [vmem:[%s4798_s14 + $0xd8] sm:$0xff] (!%p2980_p10) }
  0x40   : > { %498 = vst [vmem:[%s4803_s25] sm:$0xff] (!%p2980_p10), %v2982_v30  ;;  %500 = vst [vmem:[%s4803_s25 + $0x8] sm:$0xff] (!%p2980_p10), %v2983_v31  ;;  %v2985_v33 = vld [vmem:[%s4798_s14 + $0xe0] sm:$0xff] (!%p2980_p10)  ;;  %v2986_v34 = vld [vmem:[%s4798_s14 + $0xf0] sm:$0xff] (!%p2980_p10) }
  0x41   : > { %502 = vst [vmem:[%s4803_s25 + $0x18] sm:$0xff] %v2984_v32  ;;  %v2987_v35 = vld [vmem:[%s4798_s14 + $0xf8] sm:$0xff]  ;;  %504 = vst [vmem:[%s4803_s25 + $0x20] sm:$0xff] %v2985_v33  ;;  %v2988_v36 = vld [vmem:[%s4798_s14 + $0x108] sm:$0xff] }
  0x42   : > { %506 = vst [vmem:[%s4803_s25 + $0x30] sm:$0xff] %v2986_v34  ;;  %508 = vst [vmem:[%s4803_s25 + $0x38] sm:$0xff] %v2987_v35  ;;  %v2989_v37 = vld [vmem:[%s4798_s14 + $0x110] sm:$0xff]  ;;  %v2990_v38 = vld [vmem:[%s4798_s14 + $0x120] sm:$0xff] }
  0x43   : > { %510 = vst [vmem:[%s4803_s25 + $0x48] sm:$0xff] %v2988_v36  ;;  %512 = vst [vmem:[%s4803_s25 + $0x50] sm:$0xff] %v2989_v37  ;;  %v2991_v39 = vld [vmem:[%s4798_s14 + $0x128] sm:$0xff]  ;;  %v2992_v40 = vld [vmem:[%s4798_s14 + $0x138] sm:$0xff] }
  0x44   : > { %514 = vst [vmem:[%s4803_s25 + $0x60] sm:$0xff] %v2990_v38  ;;  %v2993_v41 = vld [vmem:[%s4798_s14 + $0x140] sm:$0xff]  ;;  %516 = vst [vmem:[%s4803_s25 + $0x68] sm:$0xff] %v2991_v39  ;;  %v2994_v42 = vld [vmem:[%s4798_s14 + $0x150] sm:$0xff] }
  0x45   : > { %518 = vst [vmem:[%s4803_s25 + $0x78] sm:$0xff] %v2992_v40  ;;  %520 = vst [vmem:[%s4803_s25 + $0x80] sm:$0xff] %v2993_v41  ;;  %v2995_v43 = vld [vmem:[%s4798_s14 + $0x158] sm:$0xff]  ;;  %v2996_v44 = vld [vmem:[%s4798_s14 + $0x168] sm:$0xff] }
  0x46   : > { %522 = vst [vmem:[%s4803_s25 + $0x90] sm:$0xff] %v2994_v42  ;;  %524 = vst [vmem:[%s4803_s25 + $0x98] sm:$0xff] %v2995_v43  ;;  %v2997_v45 = vld [vmem:[%s4798_s14 + $0x170] sm:$0xff]  ;;  %v2998_v46 = vld [vmem:[%s4798_s14 + $0x180] sm:$0xff] }
  0x47   : > { %526 = vst [vmem:[%s4803_s25 + $0xa8] sm:$0xff] %v2996_v44  ;;  %v2999_v47 = vld [vmem:[%s4798_s14 + $0x188] sm:$0xff]  ;;  %528 = vst [vmem:[%s4803_s25 + $0xb0] sm:$0xff] %v2997_v45  ;;  %v3000_v48 = vld [vmem:[%s4798_s14 + $0x198] sm:$0xff] }
  0x48   : > { %530 = vst [vmem:[%s4803_s25 + $0xc0] sm:$0xff] %v2998_v46  ;;  %532 = vst [vmem:[%s4803_s25 + $0xc8] sm:$0xff] %v2999_v47  ;;  %v3001_v49 = vld [vmem:[%s4798_s14 + $0x1a0] sm:$0xff]  ;;  %v3002_v50 = vld [vmem:[%s4798_s14 + $0xd0] sm:$0x3] }
  0x49   : > { %534 = vst [vmem:[%s4803_s25 + $0xd8] sm:$0xff] %v3000_v48  ;;  %536 = vst [vmem:[%s4803_s25 + $0xe0] sm:$0xff] %v3001_v49  ;;  %v3004_v51 = vld [vmem:[%s4798_s14 + $0xe8] sm:$0x3]  ;;  %v3006_v52 = vld [vmem:[%s4798_s14 + $0x100] sm:$0x3] }
  0x4a   : > { %3003 = vst [vmem:[%s4803_s25 + $0x10] sm:$0x3] %v3002_v50  ;;  %v3008_v53 = vld [vmem:[%s4798_s14 + $0x118] sm:$0x3]  ;;  %3005 = vst [vmem:[%s4803_s25 + $0x28] sm:$0x3] %v3004_v51 }
  0x4b   : > { %3007 = vst [vmem:[%s4803_s25 + $0x40] sm:$0x3] %v3006_v52  ;;  %3009 = vst [vmem:[%s4803_s25 + $0x58] sm:$0x3] %v3008_v53  ;;  %v3010_v54 = vld [vmem:[%s4798_s14 + $0x130] sm:$0x3] }
  0x4c   : > { %v3012_v55 = vld [vmem:[%s4798_s14 + $0x148] sm:$0x3]  ;;  %v3014_v56 = vld [vmem:[%s4798_s14 + $0x160] sm:$0x3]  ;;  %3011 = vst [vmem:[%s4803_s25 + $0x70] sm:$0x3] %v3010_v54 }
  0x4d   : > { %3013 = vst [vmem:[%s4803_s25 + $0x88] sm:$0x3] %v3012_v55  ;;  %3015 = vst [vmem:[%s4803_s25 + $0xa0] sm:$0x3] %v3014_v56  ;;  %v3016_v57 = vld [vmem:[%s4798_s14 + $0x178] sm:$0x3] }
  0x4e   : > { %v3018_v58 = vld [vmem:[%s4798_s14 + $0x190] sm:$0x3]  ;;  %v3020_v59 = vld [vmem:[%s4798_s14 + $0x1a8] sm:$0x3]  ;;  %3017 = vst [vmem:[%s4803_s25 + $0xb8] sm:$0x3] %v3016_v57 }
  0x4f   : > { %3019 = vst [vmem:[%s4803_s25 + $0xd0] sm:$0x3] %v3018_v58  ;;  %3021 = vst [vmem:[%s4803_s25 + $0xe8] sm:$0x3] %v3020_v59 }
  0x50   : > { %569 = vsyncadd %s441_s15, 2880 }
  0x51 PF: > { %v3034_v60 = vld [vmem:[%s6247_s1 + $0x80] sm:$0xff]  ;;  %v3035_v61 = vld [vmem:[%s6247_s1 + $0x88] sm:$0xff]  ;;  %v704_v63 = vlaneseq  ;;  %s708_s27 = scalar_select %p281_p8, 1, 0  ;;  %v3036_v2 = vld [vmem:[%s6247_s1 + $0x90] sm:$0xff] }
  0x52   : > { %v3114_v62 = vld [vmem:[%s6247_s1 + $0x200] sm:$0xff]  ;;  %v4056_v0 = vpack.c.bf16 %v3035_v61, %v3034_v60  ;;  %v3115_v1 = vld [vmem:[%s6247_s1 + $0x208] sm:$0xff]  ;;  %v3037_v3 = vld [vmem:[%s6247_s1 + $0x98] sm:$0xff]  ;;  %p709_p11 = scmp.eq.s32.totalorder %s4592_s24, 1 }
  0x53   : > { %v4184_v4 = vpack.c.bf16 %v3115_v1, %v3114_v62  ;;  %v4060_v5 = vpack.c.bf16 %v3037_v3, %v3036_v2  ;;  %v3116_v6 = vld [vmem:[%s6247_s1 + $0x210] sm:$0xff]  ;;  %v3117_v7 = vld [vmem:[%s6247_s1 + $0x218] sm:$0xff]  ;;  %v3038_v8 = vld [vmem:[%s6247_s1 + $0xa0] sm:$0xff]  ;;  %v4894_v9 = vshrl.u32 %v704_v63, 7  ;;  %v4905_v15 = vstv %s708_s27 }
  0x54   : > { %4057 = vmatprep.subr.bf16.mxu1 %v4056_v0  ;;  %v4188_v10 = vpack.c.bf16 %v3117_v7, %v3116_v6  ;;  %v3039_v11 = vld [vmem:[%s6247_s1 + $0xa8] sm:$0xff]  ;;  %v3118_v12 = vld [vmem:[%s6247_s1 + $0x220] sm:$0xff]  ;;  %s710_s10 = scalar_select %p709_p11, 9, 10  ;;  %v3040_v17 = vld [vmem:[%s6247_s1 + $0xb0] sm:$0xff]  ;;  %vm712_vm0 = vcmp.le.s32.totalorder %v4905_v15, 0 }
  0x55   : > { %v3119_v13 = vld [vmem:[%s6247_s1 + $0x228] sm:$0xff]  ;;  %4185 = vmatprep.subr.bf16.mxu0 %v4184_v4  ;;  %4059 = vmatpush3.bf16.msra.mxu1 %v4056_v0  ;;  %v4064_v14 = vpack.c.bf16 %v3039_v11, %v3038_v8  ;;  %v3041_v18 = vld [vmem:[%s6247_s1 + $0xb8] sm:$0xff]  ;;  %v3120_v19 = vld [vmem:[%s6247_s1 + $0x230] sm:$0xff]  ;;  %v4919_v21 = vadd.s32 16, %v4894_v9  ;;  %vm6255_vm2 = vcmp.ge.s32.totalorder %v4894_v9, 1  ;;  %vm713_vm3 = vcmp.le.s32.totalorder %v4905_v15, 1 }
  0x56   : > { %4187 = vmatpush3.bf16.msra.mxu0 %v4184_v4  ;;  %4061 = vmatprep.subr.bf16.mxu1 %v4060_v5  ;;  %v4192_v16 = vpack.c.bf16 %v3119_v13, %v3118_v12  ;;  %v4916_v20 = vstv %s710_s10  ;;  %v3121_v22 = vld [vmem:[%s6247_s1 + $0x238] sm:$0xff]  ;;  %v3042_v23 = vld [vmem:[%s6247_s1 + $0xc0] sm:$0xff]  ;;  %v3043_v24 = vld [vmem:[%s6247_s1 + $0xc8] sm:$0xff]  ;;  %v4068_v28 = vpack.c.bf16 %v3041_v18, %v3040_v17  ;;  %vm714_vm6 = vcmp.le.s32.totalorder %v4905_v15, 2 }
  0x57   : > { %4189 = vmatprep.subr.bf16.mxu0 %v4188_v10  ;;  %v3122_v25 = vld [vmem:[%s6247_s1 + $0x240] sm:$0xff]  ;;  %v3123_v26 = vld [vmem:[%s6247_s1 + $0x248] sm:$0xff]  ;;  %v3044_v27 = vld [vmem:[%s6247_s1 + $0xd0] sm:$0xff]  ;;  %vm723_vm1 = vcmp.gt.s32.totalorder %v4916_v20, 0  ;;  %v4196_v32 = vpack.c.bf16 %v3121_v22, %v3120_v19  ;;  %vm724_vm4 = vcmp.gt.s32.totalorder %v4916_v20, 1  ;;  %vm6256_vm5 = vcmp.le.s32.totalorder %v4919_v21, 16 }
  0x58   : > { %v3045_v29 = vld [vmem:[%s6247_s1 + $0xd8] sm:$0xff]  ;;  %v3124_v30 = vld [vmem:[%s6247_s1 + $0x250] sm:$0xff]  ;;  %v3046_v33 = vld [vmem:[%s6247_s1 + $0xe0] sm:$0xff]  ;;  %v4962_v36 = vpack.c.bf16 %v3043_v24, %v3042_v23  ;;  %v4964_v37 = vpack.c.bf16 %v3123_v26, %v3122_v25  ;;  %vm725_vm7 = vcmp.gt.s32.totalorder %v4916_v20, 2  ;;  %vm715_vm9 = vcmp.le.s32.totalorder %v4905_v15, 3 }
  0x59   : > { %4063 = vmatpush3.bf16.msra.mxu1 %v4060_v5  ;;  %v3125_v31 = vld [vmem:[%s6247_s1 + $0x258] sm:$0xff]  ;;  %v3047_v34 = vld [vmem:[%s6247_s1 + $0xe8] sm:$0xff]  ;;  %v570_v35 = vld [vmem:[%s4786_s19] sm:$0xff]  ;;  %v4978_v41 = vpack.c.bf16 %v3045_v29, %v3044_v27  ;;  %vm726_vm11 = vcmp.gt.s32.totalorder %v4916_v20, 3  ;;  %vm716_vm13 = vcmp.le.s32.totalorder %v4905_v15, 4 }
  0x5a   : > { %4191 = vmatpush3.bf16.msra.mxu0 %v4188_v10  ;;  %4065 = vmatprep.subr.bf16.mxu1 %v4064_v14  ;;  %v571_v38 = vld [vmem:[%s4786_s19 + $0x8] sm:$0xff]  ;;  %v4970_v39 = vld [vmem:[%s6249_s3] ss:$0 sm:$0xff]  ;;  %vm4986_vm8 = vmand %vm712_vm0, %vm723_vm1  ;;  %v4993_v47 = vpack.c.bf16 %v3125_v31, %v3124_v30  ;;  %v5024_v57 = vpack.c.bf16 %v3047_v34, %v3046_v33  ;;  %vm727_vm0 = vcmp.gt.s32.totalorder %v4916_v20, 4 }
  0x5b   : > { %4193 = vmatprep.subr.bf16.mxu0 %v4192_v16  ;;  %v4975_v40 = vld [vmem:[%s6250_s4] ss:$0 sm:$0xff]  ;;  %v607_v42 = vmul.f32 %v4970_v39, %v570_v35  ;;  %v608_v43 = vmul.f32 %v4970_v39, %v571_v38  ;;  %v573_v45 = vld [vmem:[%s4786_s19 + $0x18] sm:$0xff]  ;;  %vm4999_vm10 = vmand %vm4986_vm8, %vm6255_vm2 }
  0x5c   : > { %v574_v46 = vld [vmem:[%s4786_s19 + $0x20] sm:$0xff]  ;;  %v610_v49 = vmul.f32 %v4970_v39, %v573_v45  ;;  %v572_v51 = vld [vmem:[%s4786_s19 + $0x10] sm:$0x3]  ;;  %vm5017_vm12 = vmand %vm713_vm3, %vm724_vm4  ;;  %vm717_vm3 = vcmp.le.s32.totalorder %v4905_v15, 5 }
  0x5d   : > { %4067 = vmatpush3.bf16.msra.mxu1 %v4064_v14  ;;  %v611_v50 = vmul.f32 %v4970_v39, %v574_v46  ;;  %v5008_v52 = vadd.f32 %v4975_v40, %v607_v42  ;;  %v5011_v53 = vadd.f32 %v4975_v40, %v608_v43  ;;  %v609_v55 = vmul.f32 %v4970_v39, %v572_v51  ;;  %v575_v56 = vld [vmem:[%s4786_s19 + $0x28] sm:$0x3]  ;;  %vm5036_vm14 = vmand %vm5017_vm12, %vm6255_vm2  ;;  %v576_v2 = vld [vmem:[%s4786_s19 + $0x30] sm:$0xff] }
  0x5e   : > { %4195 = vmatpush3.bf16.msra.mxu0 %v4192_v16  ;;  %4069 = vmatprep.subr.bf16.mxu1 %v4068_v28  ;;  %v5027_v58 = vadd.f32 %v4975_v40, %v610_v49  ;;  %v612_v61 = vmul.f32 %v4970_v39, %v575_v56  ;;  %vm5048_vm15 = vmand %vm4986_vm8, %vm6256_vm5  ;;  %v577_v3 = vld [vmem:[%s4786_s19 + $0x38] sm:$0xff]  ;;  %v3126_v4 = vld [vmem:[%s6247_s1 + $0x260] sm:$0xff]  ;;  %v613_v10 = vmul.f32 %v4970_v39, %v576_v2 }
  0x5f   : > { %4197 = vmatprep.subr.bf16.mxu0 %v4196_v32  ;;  %v5030_v59 = vadd.f32 %v4975_v40, %v611_v50  ;;  %v674_v62 = vmax.f32 %v5008_v52, 0.0  ;;  %v675_v63 = vmax.f32 %v5011_v53, 0.0  ;;  %v646_v0 = vadd.f32 %v4975_v40, %v609_v55  ;;  %vm5066_vm1 = vmand %vm5017_vm12, %vm6256_vm5  ;;  %v3127_v11 = vld [vmem:[%s6247_s1 + $0x268] sm:$0xff]  ;;  %v578_v18 = vld [vmem:[%s4786_s19 + $0x40] sm:$0x3] }
  0x60   : > { %v6266_v5 = vmax.f32 %v5027_v58, 0.0  ;;  %v649_v7 = vadd.f32 %v4975_v40, %v612_v61  ;;  %v614_v16 = vmul.f32 %v4970_v39, %v577_v3  ;;  %vm5089_vm4 = vmand %vm714_vm6, %vm725_vm7  ;;  %v3048_v19 = vld [vmem:[%s6247_s1 + $0xf0] sm:$0xff]  ;;  %v3049_v22 = vld [vmem:[%s6247_s1 + $0xf8] sm:$0xff]  ;;  %v650_v26 = vadd.f32 %v4975_v40, %v613_v10 }
  0x61   : > { %4071 = vmatpush3.bf16.msra.mxu1 %v4068_v28  ;;  %v6265_v6 = vmax.f32 %v5030_v59, 0.0  ;;  %v869_v12 = vsel %vm4999_vm10, %v674_v62, 0.0  ;;  %v870_v13 = vsel %vm4986_vm8, %v675_v63, 0.0  ;;  %v676_v14 = vmax.f32 %v646_v0, 0.0  ;;  %v579_v27 = vld [vmem:[%s4786_s19 + $0x48] sm:$0xff]  ;;  %vm5122_vm6 = vmand %vm5089_vm4, %vm6255_vm2  ;;  %v3128_v43 = vld [vmem:[%s6247_s1 + $0x270] sm:$0xff] }
  0x62   : > { %4199 = vmatpush3.bf16.msra.mxu0 %v4196_v32  ;;  %4073 = vmatprep.subr.bf16.mxu1 %v4962_v36  ;;  %899 = vst [vmem:[%s4786_s19] sm:$0xff] %v869_v12  ;;  %900 = vst [vmem:[%s4786_s19 + $0x8] sm:$0xff] %v870_v13  ;;  %v872_v23 = vsel %vm5036_vm14, %v6266_v5, 0.0  ;;  %v679_v25 = vmax.f32 %v649_v7, 0.0  ;;  %v651_v29 = vadd.f32 %v4975_v40, %v614_v16  ;;  %v580_v32 = vld [vmem:[%s4786_s19 + $0x50] sm:$0xff]  ;;  %vm728_vm7 = vcmp.gt.s32.totalorder %v4916_v20, 5  ;;  %v3129_v45 = vld [vmem:[%s6247_s1 + $0x278] sm:$0xff] }
  0x63   : > { %4201 = vmatprep.subr.bf16.mxu0 %v4964_v37  ;;  %v873_v24 = vsel %vm5017_vm12, %v6265_v6, 0.0  ;;  %902 = vst [vmem:[%s4786_s19 + $0x18] sm:$0xff] %v872_v23  ;;  %v871_v28 = vsel %vm5048_vm15, %v676_v14, 0.0  ;;  %v615_v31 = vmul.f32 %v4970_v39, %v578_v18  ;;  %v5131_v33 = vpack.c.bf16 %v3127_v11, %v3126_v4  ;;  %vm5143_vm15 = vmand %vm715_vm9, %vm726_vm11  ;;  %v582_v1 = vld [vmem:[%s4786_s19 + $0x60] sm:$0xff]  ;;  %v583_v2 = vld [vmem:[%s4786_s19 + $0x68] sm:$0xff] }
  0x64   : > { %903 = vst [vmem:[%s4786_s19 + $0x20] sm:$0xff] %v873_v24  ;;  %901 = vst [vmem:[%s4786_s19 + $0x10] sm:$0x3] %v871_v28  ;;  %v874_v34 = vsel %vm5066_vm1, %v679_v25, 0.0  ;;  %v5136_v35 = vmax.f32 %v650_v26, 0.0  ;;  %v5149_v42 = vpack.c.bf16 %v3049_v22, %v3048_v19  ;;  %v5158_v46 = vmax.f32 %v651_v29, 0.0 }
  0x65   : > { %4075 = vmatpush3.bf16.msra.mxu1 %v4962_v36  ;;  %v616_v36 = vmul.f32 %v4970_v39, %v579_v27  ;;  %904 = vst [vmem:[%s4786_s19 + $0x28] sm:$0x3] %v874_v34  ;;  %v652_v49 = vadd.f32 %v4975_v40, %v615_v31  ;;  %vm5165_vm9 = vmand %vm5089_vm4, %vm6256_vm5  ;;  %v617_v51 = vmul.f32 %v4970_v39, %v580_v32  ;;  %v945_v3 = vld [vmem:[%s6247_s1] sm:$0xff]  ;;  %v946_v4 = vld [vmem:[%s6247_s1 + $0x8] sm:$0xff]  ;;  %v6303_v11 = vmov 0 }
  0x66   : > { %4203 = vmatpush3.bf16.msra.mxu0 %v4964_v37  ;;  %4077 = vmatprep.subr.bf16.mxu1 %v4978_v41  ;;  %v581_v37 = vld [vmem:[%s4786_s19 + $0x58] sm:$0x3]  ;;  %v875_v55 = vsel %vm5122_vm6, %v5136_v35, 0.0  ;;  %vm5178_vm11 = vmand %vm5143_vm15, %vm6255_vm2  ;;  %v876_v7 = vsel %vm5089_vm4, %v5158_v46, 0.0  ;;  %v5209_v12 = vpack.c.bf16 %v3129_v45, %v3128_v43  ;;  %v3146_v13 = vld [vmem:[%s6247_s1 + $0x280] sm:$0xff]  ;;  %v620_v18 = vmul.f32 %v4970_v39, %v583_v2 }
  0x67   : > { %4205 = vmatprep.subr.bf16.mxu0 %v4993_v47  ;;  %v653_v56 = vadd.f32 %v4975_v40, %v616_v36  ;;  %v618_v0 = vmul.f32 %v4970_v39, %v581_v37  ;;  %905 = vst [vmem:[%s4786_s19 + $0x30] sm:$0xff] %v875_v55  ;;  %v682_v8 = vmax.f32 %v652_v49, 0.0  ;;  %v654_v10 = vadd.f32 %v4975_v40, %v617_v51  ;;  %vm5203_vm1 = vmand %vm716_vm13, %vm727_vm0  ;;  %v584_v19 = vld [vmem:[%s4786_s19 + $0x70] sm:$0x3]  ;;  %v3147_v23 = vld [vmem:[%s6247_s1 + $0x288] sm:$0xff] }
  0x68   : > { %v6304_v11 = vsel %vm5203_vm1, 4294967295, %v6303_v11  ;;  %906 = vst [vmem:[%s4786_s19 + $0x38] sm:$0xff] %v876_v7  ;;  %vm5222_vm13 = vmand %vm5143_vm15, %vm6256_vm5  ;;  %v621_v28 = vmul.f32 %v4970_v39, %v584_v19  ;;  %v657_v34 = vadd.f32 %v4975_v40, %v620_v18  ;;  %v585_v36 = vld [vmem:[%s4786_s19 + $0x78] sm:$0xff]  ;;  %v586_v37 = vld [vmem:[%s4786_s19 + $0x80] sm:$0xff]  ;;  %v4088_v51 = vpack.c.bf16 %v946_v4, %v945_v3 }
  0x69   : > { %4079 = vmatpush3.bf16.msra.mxu1 %v4978_v41  ;;  %v619_v41 = vmul.f32 %v4970_v39, %v582_v1  ;;  %v5215_v14 = vmax.f32 %v653_v56, 0.0  ;;  %v655_v16 = vadd.f32 %v4975_v40, %v618_v0  ;;  %v961_v22 = vld [vmem:[%s4786_s19 + $0x1] sm:$0xff]  ;;  %v877_v24 = vsel %vm5165_vm9, %v682_v8, 0.0  ;;  %vm5242_vm0 = vmand %vm5203_vm1, %vm6255_vm2  ;;  %v588_v19 = vld [vmem:[%s4786_s19 + $0x90] sm:$0xff] }
  0x6a   : > { %4207 = vmatpush3.bf16.msra.mxu0 %v4993_v47  ;;  %4081 = vmatprep.subr.bf16.mxu1 %v5024_v57  ;;  %v5235_v25 = vmax.f32 %v654_v10, 0.0  ;;  %907 = vst [vmem:[%s4786_s19 + $0x40] sm:$0x3] %v877_v24  ;;  %v658_v49 = vadd.f32 %v4975_v40, %v621_v28  ;;  %v622_v50 = vmul.f32 %v4970_v39, %v585_v36  ;;  %vm5272_vm9 = vmand %vm717_vm3, %vm728_vm7  ;;  %v947_v55 = vld [vmem:[%s6247_s1 + $0x10] sm:$0xff]  ;;  %v5284_v0 = vmax.f32 %v657_v34, 0.0  ;;  %v948_v3 = vld [vmem:[%s6247_s1 + $0x18] sm:$0xff] }
  0x6b   : > { %4209 = vmatprep.subr.bf16.mxu0 %v5131_v33  ;;  %v656_v26 = vadd.f32 %v4975_v40, %v619_v41  ;;  %3584 = vmatprep.mubr.f32.mxu1 %v961_v22  ;;  %v5248_v29 = vld [vmem:[%s4786_s19 + $0x19] sm:$0xff]  ;;  %v878_v31 = vsel %vm5178_vm11, %v5215_v14, 0.0  ;;  %v685_v32 = vmax.f32 %v655_v16, 0.0  ;;  %vm5290_vm3 = vmand %vm5203_vm1, %vm6256_vm5  ;;  %v623_v1 = vmul.f32 %v4970_v39, %v586_v37  ;;  %v587_v41 = vld [vmem:[%s4786_s19 + $0x88] sm:$0x3] }
  0x6c   : > { %3808 = vmatprep.mubr.f32.mxu0 %v5248_v29  ;;  %v879_v43 = vsel %vm5143_vm15, %v5235_v25, 0.0  ;;  %908 = vst [vmem:[%s4786_s19 + $0x48] sm:$0xff] %v878_v31  ;;  %v4216_v2 = vpack.c.bf16 %v3147_v23, %v3146_v13  ;;  %v3148_v4 = vld [vmem:[%s6247_s1 + $0x290] sm:$0xff]  ;;  %v688_v8 = vmax.f32 %v658_v49, 0.0  ;;  %v659_v10 = vadd.f32 %v4975_v40, %v622_v50  ;;  %vm5317_vm7 = vmand %vm5272_vm9, %vm6255_vm2  ;;  %v589_v22 = vld [vmem:[%s4786_s19 + $0x98] sm:$0xff] }
  0x6d   : > { %4083 = vmatpush3.bf16.msra.mxu1 %v5024_v57  ;;  %v5264_v45 = vmax.f32 %v656_v26, 0.0  ;;  %v6309_v57 = vmov 0  ;;  %909 = vst [vmem:[%s4786_s19 + $0x50] sm:$0xff] %v879_v43  ;;  %v880_v56 = vsel %vm5222_vm13, %v685_v32, 0.0  ;;  %v882_v13 = vsel %vm5203_vm1, %v5284_v0, 0.0  ;;  %v962_v23 = vld [vmem:[%s4786_s19 + $0x9] sm:$0xff] }
  0x6e   : > { %v6310_v57 = vsel %vm5272_vm9, 4294967295, %v6309_v57  ;;  %4211 = vmatpush3.bf16.msra.mxu0 %v5131_v33  ;;  %4085 = vmatprep.subr.bf16.mxu1 %v5149_v42  ;;  %910 = vst [vmem:[%s4786_s19 + $0x58] sm:$0x3] %v880_v56  ;;  %v660_v16 = vadd.f32 %v4975_v40, %v623_v1  ;;  %v6313_v47 = vmov 0  ;;  %v624_v18 = vmul.f32 %v4970_v39, %v587_v41  ;;  %v3149_v24 = vld [vmem:[%s6247_s1 + $0x298] sm:$0xff]  ;;  %912 = vst [vmem:[%s4786_s19 + $0x68] sm:$0xff] %v882_v13 }
  0x6f   : > { %4213 = vmatprep.subr.bf16.mxu0 %v5209_v12  ;;  %v881_v7 = vsel %vm5242_vm0, %v5264_v45, 0.0  ;;  %v6314_v47 = vsel %vm5317_vm7, 4294967295, %v6313_v47  ;;  %v883_v26 = vsel %vm5290_vm3, %v688_v8, 0.0  ;;  %v5332_v28 = vmax.f32 %v659_v10, 0.0  ;;  %v3099_v32 = vld [vmem:[%s4786_s19 + $0x21] sm:$0xff] }
  0x70   : > { %911 = vst [vmem:[%s4786_s19 + $0x60] sm:$0xff] %v881_v7  ;;  %v625_v31 = vmul.f32 %v4970_v39, %v588_v19  ;;  %vm6315_vm13 = vcmp.gt.s32.totalorder %v4916_v20, 6  ;;  %vm6316_vm2 = vcmp.le.s32.totalorder %v4905_v15, 6  ;;  %v949_v34 = vld [vmem:[%s6247_s1 + $0x20] sm:$0xff]  ;;  %913 = vst [vmem:[%s4786_s19 + $0x70] sm:$0x3] %v883_v26  ;;  %v661_v37 = vadd.f32 %v4975_v40, %v624_v18 }
  0x71   : > { %4087 = vmatpush3.bf16.msra.mxu1 %v5149_v42  ;;  %vm5339_vm5 = vmand %vm6316_vm2, %vm6315_vm13  ;;  %v6317_v42 = vmov 0  ;;  %v5350_v36 = vmax.f32 %v660_v16, 0.0  ;;  %v626_v43 = vmul.f32 %v4970_v39, %v589_v22  ;;  %v590_v49 = vld [vmem:[%s4786_s19 + $0xa0] sm:$0x3]  ;;  %vm730_vm2 = vcmp.gt.s32.totalorder %v4916_v20, 7  ;;  %v950_v56 = vld [vmem:[%s6247_s1 + $0x28] sm:$0xff] }
  0x72   : > { %v6318_v42 = vsel %vm5339_vm5, 4294967295, %v6317_v42  ;;  %4215 = vmatpush3.bf16.msra.mxu0 %v5209_v12  ;;  %4089 = vmatprep.subr.bf16.mxu1 %v4088_v51  ;;  %v5357_v12 = vld [vmem:[%s4786_s19 + $0x31] sm:$0xff]  ;;  %v4092_v50 = vpack.c.bf16 %v948_v3, %v947_v55  ;;  %v884_v33 = vsel %vm5317_vm7, %v5332_v28, 0.0  ;;  %vm6319_vm3 = vcmp.le.s32.totalorder %v4919_v21, 16  ;;  %v591_v16 = vld [vmem:[%s4786_s19 + $0xa8] sm:$0xff]  ;;  %v3101_v26 = vld [vmem:[%s4786_s19 + $0x39] sm:$0xff] }
  0x73   : > { %4217 = vmatprep.subr.bf16.mxu0 %v4216_v2  ;;  %vm5369_vm13 = vmand %vm5272_vm9, %vm6319_vm3  ;;  %v662_v7 = vadd.f32 %v4975_v40, %v625_v31  ;;  %v627_v55 = vmul.f32 %v4970_v39, %v590_v49  ;;  %v4220_v3 = vpack.c.bf16 %v3149_v24, %v3148_v4  ;;  %v885_v8 = vsel %vm5272_vm9, %v5350_v36, 0.0  ;;  %914 = vst [vmem:[%s4786_s19 + $0x78] sm:$0xff] %v884_v33  ;;  %v592_v18 = vld [vmem:[%s4786_s19 + $0xb0] sm:$0xff]  ;;  %v3151_v19 = vld [vmem:[%s6247_s1 + $0x2a8] sm:$0xff] }
  0x74   : > { %3585 = vmatmul.mubr.f32.vlgmr.msra.gmra.mrb[0].mxu1 %v962_v23  ;;  %v691_v10 = vmax.f32 %v661_v37, 0.0  ;;  %v663_v41 = vadd.f32 %v4975_v40, %v626_v43  ;;  %vm6322_vm3 = vcmp.ge.s32.totalorder %v4894_v9, 1  ;;  %v3150_v4 = vld [vmem:[%s6247_s1 + $0x2a0] sm:$0xff]  ;;  %915 = vst [vmem:[%s4786_s19 + $0x80] sm:$0xff] %v885_v8  ;;  %v628_v24 = vmul.f32 %v4970_v39, %v591_v16  ;;  %v951_v31 = vld [vmem:[%s6247_s1 + $0x30] sm:$0xff]  ;;  %v952_v37 = vld [vmem:[%s6247_s1 + $0x38] sm:$0xff] }
  0x75   : > { %vm5384_vm1 = vmand %vm5339_vm5, %vm6322_vm3  ;;  %3809 = vmatmul.mubr.f32.vlgmr.msra.gmra.mrb[0].mxu0 %v3099_v32  ;;  %4091 = vmatpush3.bf16.msra.mxu1 %v4088_v51  ;;  %v5397_v22 = vmax.f32 %v662_v7, 0.0  ;;  %v664_v23 = vadd.f32 %v4975_v40, %v627_v55  ;;  %vm6325_vm3 = vcmp.le.s32.totalorder %v4905_v15, 7  ;;  %v6326_v51 = vmov 0  ;;  %v3152_v1 = vld [vmem:[%s6247_s1 + $0x2b0] sm:$0xff]  ;;  %v3153_v7 = vld [vmem:[%s6247_s1 + $0x2b8] sm:$0xff] }
  0x76   : > { %vm5405_vm9 = vmand %vm6325_vm3, %vm730_vm2  ;;  %4219 = vmatpush3.bf16.msra.mxu0 %v4216_v2  ;;  %3587 = vmatprep.mubr.f32.mxu1 %v5248_v29  ;;  %v886_v43 = vsel %vm5369_vm13, %v691_v10, 0.0  ;;  %v5420_v49 = vmax.f32 %v663_v41, 0.0  ;;  %vm6328_vm2 = vcmp.le.s32.totalorder %v4919_v21, 16  ;;  %v629_v2 = vmul.f32 %v4970_v39, %v592_v18  ;;  %v593_v41 = vld [vmem:[%s4786_s19 + $0xb8] sm:$0x3]  ;;  %v3054_v48 = vld [vmem:[%s6247_s1 + $0x120] sm:$0xff] }
  0x77   : > { %v6327_v51 = vsel %vm5405_vm9, 4294967295, %v6326_v51  ;;  %vm5426_vm3 = vmand %vm5339_vm5, %vm6328_vm2  ;;  %vm731_vm7 = vcmp.gt.s32.totalorder %v4916_v20, 8  ;;  %3811 = vmatprep.mubr.f32.mxu0 %v5357_v12  ;;  %4093 = vmatprep.subr.bf16.mxu1 %v4092_v50  ;;  %v4096_v33 = vpack.c.bf16 %v950_v56, %v949_v34  ;;  %916 = vst [vmem:[%s4786_s19 + $0x88] sm:$0x3] %v886_v43  ;;  %v887_v55 = vsel %vm5384_vm1, %v5397_v22, 0.0  ;;  %v3102_v34 = vld [vmem:[%s4786_s19 + $0x49] sm:$0xff] }
  0x78   : > { %v694_v8 = vmax.f32 %v664_v23, 0.0  ;;  %v665_v10 = vadd.f32 %v4975_v40, %v628_v24  ;;  %3588 = vmatmul.mubr.f32.gmra.mrb[2].mxu1 %v3099_v32  ;;  %4221 = vmatprep.subr.bf16.mxu0 %v4220_v3  ;;  %v4224_v56 = vpack.c.bf16 %v3151_v19, %v3150_v4  ;;  %v888_v16 = vsel %vm5339_vm5, %v5420_v49, 0.0  ;;  %917 = vst [vmem:[%s4786_s19 + $0x90] sm:$0xff] %v887_v55  ;;  %v594_v4 = vld [vmem:[%s4786_s19 + $0xc0] sm:$0xff]  ;;  %v595_v43 = vld [vmem:[%s4786_s19 + $0xc8] sm:$0xff] }
  0x79   : > { %v666_v18 = vadd.f32 %v4975_v40, %v629_v2  ;;  %vm6331_vm13 = vcmp.ge.s32.totalorder %v4894_v9, 1  ;;  %v630_v32 = vmul.f32 %v4970_v39, %v593_v41  ;;  %3812 = vmatmul.mubr.f32.gmra.mrb[2].mxu0 %v3101_v26  ;;  %4095 = vmatpush3.bf16.msra.mxu1 %v4092_v50  ;;  %918 = vst [vmem:[%s4786_s19 + $0x98] sm:$0xff] %v888_v16  ;;  %v3103_v50 = vld [vmem:[%s4786_s19 + $0x51] sm:$0xff] }
  0x7a   : > { %vm5455_vm2 = vmand %vm5405_vm9, %vm6331_vm13  ;;  %v889_v19 = vsel %vm5426_vm3, %v694_v8, 0.0  ;;  %v5464_v24 = vmax.f32 %v665_v10, 0.0  ;;  %v631_v2 = vmul.f32 %v4970_v39, %v594_v4  ;;  %vm6334_vm13 = vcmp.le.s32.totalorder %v4905_v15, 8  ;;  %4223 = vmatpush3.bf16.msra.mxu0 %v4220_v3  ;;  %3590 = vmatprep.mubr.f32.mxu1 %v5357_v12  ;;  %v953_v3 = vld [vmem:[%s6247_s1 + $0x40] sm:$0xff]  ;;  %v3055_v52 = vld [vmem:[%s6247_s1 + $0x128] sm:$0xff] }
  0x7b   : > { %vm5472_vm5 = vmand %vm6334_vm13, %vm731_vm7  ;;  %919 = vst [vmem:[%s4786_s19 + $0xa0] sm:$0x3] %v889_v19  ;;  %v5479_v29 = vmax.f32 %v666_v18, 0.0  ;;  %v667_v8 = vadd.f32 %v4975_v40, %v630_v32  ;;  %v632_v10 = vmul.f32 %v4970_v39, %v595_v43  ;;  %3814 = vmatprep.mubr.f32.mxu0 %v3102_v34  ;;  %4097 = vmatprep.subr.bf16.mxu1 %v4096_v33  ;;  %vm6337_vm7 = vcmp.le.s32.totalorder %v4919_v21, 16  ;;  %v5547_v18 = vld [vmem:[%s4786_s19 + $0x79] sm:$0xff] }
  0x7c   : > { %v4100_v41 = vpack.c.bf16 %v952_v37, %v951_v31  ;;  %v4228_v16 = vpack.c.bf16 %v3153_v7, %v3152_v1  ;;  %v890_v12 = vsel %vm5455_vm2, %v5464_v24, 0.0  ;;  %vm5493_vm3 = vmand %vm5405_vm9, %vm6337_vm7  ;;  %v668_v32 = vadd.f32 %v4975_v40, %v631_v2  ;;  %v596_v31 = vld [vmem:[%s4786_s19 + $0xd0] sm:$0x3]  ;;  %3591 = vmatmul.mubr.f32.gmra.mrb[4].mxu1 %v3101_v26  ;;  %4225 = vmatprep.subr.bf16.mxu0 %v4224_v56  ;;  %v3104_v37 = vld [vmem:[%s4786_s19 + $0x61] sm:$0xff] }
  0x7d   : > { %v954_v1 = vld [vmem:[%s6247_s1 + $0x48] sm:$0xff]  ;;  %v891_v7 = vsel %vm5405_vm9, %v5479_v29, 0.0  ;;  %920 = vst [vmem:[%s4786_s19 + $0xa8] sm:$0xff] %v890_v12  ;;  %v697_v4 = vmax.f32 %v667_v8, 0.0  ;;  %v669_v19 = vadd.f32 %v4975_v40, %v632_v10  ;;  %vm6340_vm13 = vcmp.ge.s32.totalorder %v4894_v9, 1  ;;  %3815 = vmatmul.mubr.f32.gmra.mrb[4].mxu0 %v3103_v50  ;;  %4099 = vmatpush3.bf16.msra.mxu1 %v4096_v33  ;;  %v3154_v2 = vld [vmem:[%s6247_s1 + $0x2c0] sm:$0xff] }
  0x7e   : > { %vm5512_vm7 = vmand %vm5472_vm5, %vm6340_vm13  ;;  %v633_v43 = vmul.f32 %v4970_v39, %v596_v31  ;;  %v3155_v8 = vld [vmem:[%s6247_s1 + $0x2c8] sm:$0xff]  ;;  %921 = vst [vmem:[%s4786_s19 + $0xb0] sm:$0xff] %v891_v7  ;;  %v5524_v10 = vmax.f32 %v668_v32, 0.0  ;;  %4227 = vmatpush3.bf16.msra.mxu0 %v4224_v56  ;;  %3593 = vmatprep.mubr.f32.mxu1 %v3102_v34  ;;  %v4104_v5 = vpack.c.bf16 %v954_v1, %v953_v3  ;;  %vm6343_vm13 = vcmp.le.s32.totalorder %v4919_v21, 16  ;;  %v955_v32 = vld [vmem:[%s6247_s1 + $0x50] sm:$0xff] }
  0x7f   : > { %v5527_v12 = vld [vmem:[%s4786_s19 + $0x69] sm:$0xff]  ;;  %v892_v31 = vsel %vm5493_vm3, %v697_v4, 0.0  ;;  %v5531_v33 = vmax.f32 %v669_v19, 0.0  ;;  %3817 = vmatprep.mubr.f32.mxu0 %v3104_v37  ;;  %4101 = vmatprep.subr.bf16.mxu1 %v4100_v41  ;;  %vm5542_vm9 = vmand %vm5472_vm5, %vm6343_vm13  ;;  %v4232_v3 = vpack.c.bf16 %v3155_v8, %v3154_v2  ;;  %vm6357_vm3 = vnez %v6304_v11 }
  0x80   : > { %v670_v6 = vadd.f32 %v4975_v40, %v633_v43  ;;  %922 = vst [vmem:[%s4786_s19 + $0xb8] sm:$0x3] %v892_v31  ;;  %v893_v56 = vsel %vm5512_vm7, %v5524_v10, 0.0  ;;  %3594 = vmatmul.mubr.f32.gmra.mrb[6].mxu1 %v3103_v50  ;;  %4229 = vmatprep.subr.bf16.mxu0 %v4228_v16  ;;  %v956_v1 = vld [vmem:[%s6247_s1 + $0x58] sm:$0xff]  ;;  %v3156_v4 = vld [vmem:[%s6247_s1 + $0x2d0] sm:$0xff]  ;;  %v3158_v31 = vld [vmem:[%s6247_s1 + $0x2e0] sm:$0xff]  ;;  %vm6358_vm13 = vnez %v6314_v47 }
  0x81   : > { %v894_v7 = vsel %vm5472_vm5, %v5531_v33, 0.0  ;;  %923 = vst [vmem:[%s4786_s19 + $0xc0] sm:$0xff] %v893_v56  ;;  %3818 = vmatmul.mubr.f32.gmra.mrb[6].mxu0 %v5527_v12  ;;  %4103 = vmatpush3.bf16.msra.mxu1 %v4100_v41  ;;  %v3157_v19 = vld [vmem:[%s6247_s1 + $0x2d8] sm:$0xff]  ;;  %v4108_v41 = vpack.c.bf16 %v956_v1, %v955_v32  ;;  %v3159_v56 = vld [vmem:[%s6247_s1 + $0x2e8] sm:$0xff]  ;;  %v3182_v44 = vld [vmem:[%s6247_s1 + $0x320] sm:$0xff] }
  0x82   : > { %v700_v50 = vmax.f32 %v670_v6, 0.0  ;;  %924 = vst [vmem:[%s4786_s19 + $0xc8] sm:$0xff] %v894_v7  ;;  %4231 = vmatpush3.bf16.msra.mxu0 %v4228_v16  ;;  %3596 = vmatprep.mubr.f32.mxu1 %v3104_v37  ;;  %v5568_v43 = vld [vmem:[%s4786_s19 + $0x81] sm:$0xff]  ;;  %v5576_v2 = vld [vmem:[%s4786_s19 + $0x91] sm:$0xff]  ;;  %v4236_v8 = vpack.c.bf16 %v3157_v19, %v3156_v4  ;;  %v5593_v34 = vld [vmem:[%s4786_s19 + $0x99] sm:$0xff]  ;;  %v4240_v1 = vpack.c.bf16 %v3159_v56, %v3158_v31 }
  0x83   : > { %3820 = vmatprep.mubr.f32.mxu0 %v5547_v18  ;;  %4105 = vmatprep.subr.bf16.mxu1 %v4104_v5  ;;  %v957_v16 = vld [vmem:[%s6247_s1 + $0x60] sm:$0xff]  ;;  %v958_v37 = vld [vmem:[%s6247_s1 + $0x68] sm:$0xff]  ;;  %v960_v7 = vld [vmem:[%s6247_s1 + $0x78] sm:$0xff] }
  0x84   : > { %v895_v6 = vsel %vm5542_vm9, %v700_v50, 0.0  ;;  %3597 = vmatmul.mubr.f32.gmra.mrb[8].mxu1 %v5527_v12  ;;  %4233 = vmatprep.subr.bf16.mxu0 %v4232_v3  ;;  %v4112_v32 = vpack.c.bf16 %v958_v37, %v957_v16  ;;  %v3160_v50 = vld [vmem:[%s6247_s1 + $0x2f0] sm:$0xff]  ;;  %v3161_v4 = vld [vmem:[%s6247_s1 + $0x2f8] sm:$0xff]  ;;  %v3051_v37 = vld [vmem:[%s6247_s1 + $0x108] sm:$0xff] }
  0x85   : > { %925 = vst [vmem:[%s4786_s19 + $0xd0] sm:$0x3] %v895_v6  ;;  %3821 = vmatmul.mubr.f32.gmra.mrb[8].mxu0 %v5568_v43  ;;  %4107 = vmatpush3.bf16.msra.mxu1 %v4104_v5  ;;  %v5598_v5 = vld [vmem:[%s4786_s19 + $0xa9] sm:$0xff]  ;;  %v4244_v16 = vpack.c.bf16 %v3161_v4, %v3160_v50 }
  0x86   : > { %4235 = vmatpush3.bf16.msra.mxu0 %v4232_v3  ;;  %3599 = vmatprep.mubr.f32.mxu1 %v5547_v18  ;;  %6346 = vst [vmem:[#allocation10_spill] sm:$0xff] %v5598_v5  ;;  %v959_v3 = vld [vmem:[%s6247_s1 + $0x70] sm:$0xff]  ;;  %v3178_v31 = vld [vmem:[%s6247_s1 + $0x300] sm:$0xff]  ;;  %v3179_v56 = vld [vmem:[%s6247_s1 + $0x308] sm:$0xff] }
  0x87   : > { %3823 = vmatprep.mubr.f32.mxu0 %v5576_v2  ;;  %4109 = vmatprep.subr.bf16.mxu1 %v4108_v41  ;;  %v5615_v19 = vld [vmem:[%s4786_s19 + $0xb1] sm:$0xff]  ;;  %v4116_v6 = vpack.c.bf16 %v960_v7, %v959_v3  ;;  %v4248_v50 = vpack.c.bf16 %v3179_v56, %v3178_v31  ;;  %v5662_v31 = vld [vmem:[%s4786_s19 + $0x22] sm:$0xff] }
  0x88   : > { %3600 = vmatmul.mubr.f32.gmra.mrb[10].mxu1 %v5568_v43  ;;  %4237 = vmatprep.subr.bf16.mxu0 %v4236_v8  ;;  %6347 = vst [vmem:[#allocation11_spill] sm:$0xff] %v5615_v19  ;;  %v3053_v4 = vld [vmem:[%s6247_s1 + $0x118] sm:$0xff]  ;;  %v3183_v53 = vld [vmem:[%s6247_s1 + $0x328] sm:$0xff]  ;;  %v3184_v54 = vld [vmem:[%s6247_s1 + $0x330] sm:$0xff] }
  0x89   : > { %3824 = vmatmul.mubr.f32.gmra.mrb[10].mxu0 %v5593_v34  ;;  %4111 = vmatpush3.bf16.msra.mxu1 %v4108_v41  ;;  %v5620_v41 = vld [vmem:[%s4786_s19 + $0xc1] sm:$0xff]  ;;  %v5670_v56 = vld [vmem:[%s4786_s19 + $0x32] sm:$0xff]  ;;  %v4256_v60 = vpack.c.bf16 %v3183_v53, %v3182_v44 }
  0x8a   : > { %4239 = vmatpush3.bf16.msra.mxu0 %v4236_v8  ;;  %3602 = vmatprep.mubr.f32.mxu1 %v5576_v2  ;;  %6348 = vst [vmem:[#allocation12_spill] sm:$0xff] %v5620_v41  ;;  %v3050_v8 = vld [vmem:[%s6247_s1 + $0x100] sm:$0xff]  ;;  %v3216_v61 = vld [vmem:[%s6247_s1 + $0x3b0] sm:$0xff]  ;;  %v3257_v13 = vld [vmem:[%s6247_s1 + $0x478] sm:$0xff] }
  0x8b   : > { %3826 = vmatprep.mubr.f32.mxu0 %v5598_v5  ;;  %4113 = vmatprep.subr.bf16.mxu1 %v4112_v32  ;;  %v4120_v7 = vpack.c.bf16 %v3051_v37, %v3050_v8  ;;  %v3180_v8 = vld [vmem:[%s6247_s1 + $0x310] sm:$0xff]  ;;  %v3181_v37 = vld [vmem:[%s6247_s1 + $0x318] sm:$0xff]  ;;  %v3058_v53 = vld [vmem:[%s6247_s1 + $0x140] sm:$0xff] }
  0x8c   : > { %3603 = vmatmul.mubr.f32.gmra.mrb[12].mxu1 %v5593_v34  ;;  %4241 = vmatprep.subr.bf16.mxu0 %v4240_v1  ;;  %v5637_v3 = vld [vmem:[%s4786_s19 + $0xc9] sm:$0xff] }
  0x8d   : > { %3827 = vmatmul.mubr.f32.gmra.mrb[12].mxu0 %v5615_v19  ;;  %4115 = vmatpush3.bf16.msra.mxu1 %v4112_v32  ;;  %6349 = vst [vmem:[#allocation13_spill] sm:$0xff] %v5637_v3  ;;  %v5642_v32 = vld [vmem:[%s4786_s19 + $0x1a] sm:$0xff] }
  0x8e   : > { %4243 = vmatpush3.bf16.msra.mxu0 %v4240_v1  ;;  %3605 = vmatprep.mubr.f32.mxu1 %v5598_v5  ;;  %v3052_v1 = vld [vmem:[%s6247_s1 + $0x110] sm:$0xff]  ;;  %v3214_v30 = vld [vmem:[%s6247_s1 + $0x3a0] sm:$0xff] }
  0x8f   : > { %3829 = vmatprep.mubr.f32.mxu0 %v5620_v41  ;;  %4117 = vmatprep.subr.bf16.mxu1 %v4116_v6  ;;  %v3064_v5 = vld [vmem:[%s6247_s1 + $0x170] sm:$0xff]  ;;  %v3218_v27 = vld [vmem:[%s6247_s1 + $0x3c0] sm:$0xff] }
  0x90   : > { %3606 = vmatmul.mubr.f32.gmra.mrb[14].mxu1 %v5615_v19  ;;  %4245 = vmatprep.subr.bf16.mxu0 %v4244_v16  ;;  %v5844_v19 = vld [vmem:[%s4786_s19 + $0xaa] sm:$0xff] }
  0x91   : > { %3830 = vmatmul.mubr.f32.gmra.mrb[14].mxu0 %v5637_v3  ;;  %4119 = vmatpush3.bf16.msra.mxu1 %v4116_v6  ;;  %v4124_v6 = vpack.c.bf16 %v3053_v4, %v3052_v1  ;;  %v6351_v1 = vmax.f32 %v5030_v59, 0.0  ;;  %v3057_v4 = vld [vmem:[%s6247_s1 + $0x138] sm:$0xff]  ;;  %v6368_v47 = vld [vmem:[#allocation10_spill] sm:$0xff] }
  0x92   : > { %4247 = vmatpush3.bf16.msra.mxu0 %v4244_v16  ;;  %4529 = vmatprep.mubr.msk.f32.mxu1 %vm4999_vm10, %v674_v62  ;;  %v4252_v16 = vpack.c.bf16 %v3181_v37, %v3180_v8  ;;  %v6350_v62 = vmax.f32 %v5027_v58, 0.0  ;;  %vm732_vm10 = vcmp.gt.s32.totalorder %v4916_v20, 9  ;;  %v5700_v58 = vld [vmem:[%s4786_s19 + $0x4a] sm:$0xff]  ;;  %v597_v8 = vld [vmem:[%s4786_s19 + $0xd8] sm:$0xff]  ;;  %v5738_v20 = vld [vmem:[%s4786_s19 + $0x62] sm:$0xff] }
  0x93   : > { %3864 = vmatprep.mubr.f32.mxu0 %v5642_v32  ;;  %4121 = vmatprep.subr.bf16.mxu1 %v4120_v7  ;;  %v3185_v59 = vld [vmem:[%s6247_s1 + $0x338] sm:$0xff] }
  0x94   : > { %4530 = vmatmul.mubr.msk.f32.vlgmr.msra.gmra.mrb[0].mxu1 %vm4986_vm8, %v675_v63  ;;  %4249 = vmatprep.subr.bf16.mxu0 %v4248_v50  ;;  %v5690_v63 = vld [vmem:[%s4786_s19 + $0x3a] sm:$0xff]  ;;  %vm721_vm8 = vcmp.le.s32.totalorder %v4905_v15, 9  ;;  %v5720_v37 = vld [vmem:[%s4786_s19 + $0x52] sm:$0xff]  ;;  %v4260_v15 = vpack.c.bf16 %v3185_v59, %v3184_v54  ;;  %v6355_v54 = vmov 0 }
  0x95   : > { %3865 = vmatmul.mubr.f32.vlgmr.msra.gmra.mrb[0].mxu0 %v5662_v31  ;;  %4123 = vmatpush3.bf16.msra.mxu1 %v4120_v7  ;;  %v4128_v7 = vpack.c.bf16 %v3055_v52, %v3054_v48  ;;  %v634_v48 = vmul.f32 %v4970_v39, %v597_v8  ;;  %v598_v52 = vld [vmem:[%s4786_s19 + $0xe0] sm:$0xff] }
  0x96   : > { %4251 = vmatpush3.bf16.msra.mxu0 %v4248_v50  ;;  %4531 = vmatprep.mubr.msk.f32.mxu1 %vm5036_vm14, %v6350_v62  ;;  %v3056_v50 = vld [vmem:[%s6247_s1 + $0x130] sm:$0xff]  ;;  %v635_v44 = vmul.f32 %v4970_v39, %v598_v52  ;;  %v3059_v62 = vld [vmem:[%s6247_s1 + $0x148] sm:$0xff]  ;;  %vm6354_vm14 = vcmp.ge.s32.totalorder %v4894_v9, 1 }
  0x97   : > { %3867 = vmatprep.mubr.f32.mxu0 %v5670_v56  ;;  %4125 = vmatprep.subr.bf16.mxu1 %v4124_v6  ;;  %v4136_v9 = vpack.c.bf16 %v3059_v62, %v3058_v53  ;;  %v3061_v53 = vld [vmem:[%s6247_s1 + $0x158] sm:$0xff] }
  0x98   : > { %4532 = vmatmul.mubr.msk.f32.gmra.mrb[2].mxu1 %vm5017_vm12, %v6351_v1  ;;  %4253 = vmatprep.subr.bf16.mxu0 %v4252_v16  ;;  %vm5727_vm12 = vmand %vm721_vm8, %vm732_vm10  ;;  %v5747_v1 = vadd.f32 %v4975_v40, %v634_v48  ;;  %v5765_v59 = vadd.f32 %v4975_v40, %v635_v44  ;;  %v3060_v44 = vld [vmem:[%s6247_s1 + $0x150] sm:$0xff]  ;;  %vm6359_vm8 = vnez %v6310_v57  ;;  %vm6360_vm10 = vcmp.le.s32.totalorder %v4919_v21, 16 }
  0x99   : > { %3868 = vmatmul.mubr.f32.gmra.mrb[2].mxu0 %v5690_v63  ;;  %4127 = vmatpush3.bf16.msra.mxu1 %v4124_v6  ;;  %vm5760_vm9 = vmand %vm5727_vm12, %vm6354_vm14  ;;  %v5875_v21 = vld [vmem:[%s4786_s19 + $0xc2] sm:$0xff] }
  0x9a   : > { %4255 = vmatpush3.bf16.msra.mxu0 %v4252_v16  ;;  %4533 = vmatprep.mubr.msk.f32.mxu1 %vm5122_vm6, %v5136_v35  ;;  %v4132_v16 = vpack.c.bf16 %v3057_v4, %v3056_v50  ;;  %v3186_v50 = vld [vmem:[%s6247_s1 + $0x340] sm:$0xff]  ;;  %v3187_v4 = vld [vmem:[%s6247_s1 + $0x348] sm:$0xff]  ;;  %v6356_v54 = vsel %vm5760_vm9, 4294967295, %v6355_v54  ;;  %v6270_v8 = vmax.f32 %v5747_v1, 0.0  ;;  %v6271_v48 = vmax.f32 %v5765_v59, 0.0  ;;  %vm808_vm14 = vmand %vm5727_vm12, %vm6360_vm10  ;;  %6362 = vst [vmem:[#allocation14_spill] sm:$0xff] %v5875_v21 }
  0x9b   : > { %3870 = vmatprep.mubr.f32.mxu0 %v5700_v58  ;;  %4129 = vmatprep.subr.bf16.mxu1 %v4128_v7  ;;  %v4264_v52 = vpack.c.bf16 %v3187_v4, %v3186_v50  ;;  %v3188_v50 = vld [vmem:[%s6247_s1 + $0x350] sm:$0xff]  ;;  %v3189_v4 = vld [vmem:[%s6247_s1 + $0x358] sm:$0xff]  ;;  %vm6364_vm10 = vnez %v6327_v51  ;;  %v3246_v6 = vld [vmem:[%s6247_s1 + $0x420] sm:$0xff] }
  0x9c   : > { %4534 = vmatmul.mubr.msk.f32.gmra.mrb[4].mxu1 %vm5089_vm4, %v5158_v46  ;;  %4257 = vmatprep.subr.bf16.mxu0 %v4256_v60  ;;  %v896_v62 = vsel %vm5760_vm9, %v6270_v8, 0.0  ;;  %v897_v3 = vsel %vm5727_vm12, %v6271_v48, 0.0  ;;  %v4140_v8 = vpack.c.bf16 %v3061_v53, %v3060_v44  ;;  %v3062_v48 = vld [vmem:[%s6247_s1 + $0x160] sm:$0xff]  ;;  %v3191_v53 = vld [vmem:[%s6247_s1 + $0x368] sm:$0xff]  ;;  %vm6361_vm9 = vnez %v6318_v42  ;;  %v6370_v42 = vld [vmem:[#allocation12_spill] sm:$0xff] }
  0x9d   : > { %3871 = vmatmul.mubr.f32.gmra.mrb[4].mxu0 %v5720_v37  ;;  %4131 = vmatpush3.bf16.msra.mxu1 %v4128_v7  ;;  %v5771_v7 = vld [vmem:[%s4786_s19 + $0x6a] sm:$0xff]  ;;  %926 = vst [vmem:[%s4786_s19 + $0xd8] sm:$0xff] %v896_v62  ;;  %927 = vst [vmem:[%s4786_s19 + $0xe0] sm:$0xff] %v897_v3  ;;  %v5816_v62 = vld [vmem:[%s4786_s19 + $0x92] sm:$0xff] }
  0x9e   : > { %4259 = vmatpush3.bf16.msra.mxu0 %v4256_v60  ;;  %4535 = vmatprep.mubr.msk.f32.mxu1 %vm5178_vm11, %v5215_v14  ;;  %v5780_v60 = vld [vmem:[%s4786_s19 + $0x7a] sm:$0xff] }
  0x9f   : > { %3873 = vmatprep.mubr.f32.mxu0 %v5738_v20  ;;  %4133 = vmatprep.subr.bf16.mxu1 %v4132_v16  ;;  %v3063_v3 = vld [vmem:[%s6247_s1 + $0x168] sm:$0xff]  ;;  %v3190_v44 = vld [vmem:[%s6247_s1 + $0x360] sm:$0xff] }
  0xa0   : > { %4536 = vmatmul.mubr.msk.f32.gmra.mrb[6].mxu1 %vm5143_vm15, %v5235_v25  ;;  %4261 = vmatprep.subr.bf16.mxu0 %v4260_v15 }
  0xa1   : > { %3874 = vmatmul.mubr.f32.gmra.mrb[6].mxu0 %v5771_v7  ;;  %4135 = vmatpush3.bf16.msra.mxu1 %v4132_v16  ;;  %v5808_v16 = vld [vmem:[%s4786_s19 + $0x82] sm:$0xff] }
  0xa2   : > { %4263 = vmatpush3.bf16.msra.mxu0 %v4260_v15  ;;  %4537 = vmatprep.mubr.msk.f32.mxu1 %vm5242_vm0, %v5264_v45  ;;  %v4268_v15 = vpack.c.bf16 %v3189_v4, %v3188_v50  ;;  %v599_v50 = vld [vmem:[%s4786_s19 + $0xe8] sm:$0x3]  ;;  %v5836_v4 = vld [vmem:[%s4786_s19 + $0x9a] sm:$0xff] }
  0xa3   : > { %3876 = vmatprep.mubr.f32.mxu0 %v5780_v60  ;;  %4137 = vmatprep.subr.bf16.mxu1 %v4136_v9  ;;  %v636_v41 = vmul.f32 %v4970_v39, %v599_v50  ;;  %v3065_v39 = vld [vmem:[%s6247_s1 + $0x178] sm:$0xff]  ;;  %v6372_v51 = vld [vmem:[#allocation14_spill] sm:$0xff] }
  0xa4   : > { %4538 = vmatmul.mubr.msk.f32.gmra.mrb[8].mxu1 %vm6357_vm3, %v5284_v0  ;;  %4265 = vmatprep.subr.bf16.mxu0 %v4264_v52 }
  0xa5   : > { %3877 = vmatmul.mubr.f32.gmra.mrb[8].mxu0 %v5808_v16  ;;  %4139 = vmatpush3.bf16.msra.mxu1 %v4136_v9  ;;  %v4144_v9 = vpack.c.bf16 %v3063_v3, %v3062_v48  ;;  %v673_v50 = vadd.f32 %v4975_v40, %v636_v41  ;;  %v3192_v48 = vld [vmem:[%s6247_s1 + $0x370] sm:$0xff]  ;;  %v3193_v3 = vld [vmem:[%s6247_s1 + $0x378] sm:$0xff] }
  0xa6   : > { %4267 = vmatpush3.bf16.msra.mxu0 %v4264_v52  ;;  %4539 = vmatprep.mubr.msk.f32.mxu1 %vm6358_vm13, %v5332_v28  ;;  %v4272_v52 = vpack.c.bf16 %v3191_v53, %v3190_v44  ;;  %v5868_v40 = vld [vmem:[%s4786_s19 + $0xb2] sm:$0xff] }
  0xa7   : > { %3879 = vmatprep.mubr.f32.mxu0 %v5816_v62  ;;  %4141 = vmatprep.subr.bf16.mxu1 %v4140_v8  ;;  %v703_v41 = vmax.f32 %v673_v50, 0.0  ;;  %v3082_v44 = vld [vmem:[%s6247_s1 + $0x180] sm:$0xff]  ;;  %v3083_v53 = vld [vmem:[%s6247_s1 + $0x188] sm:$0xff] }
  0xa8   : > { %4540 = vmatmul.mubr.msk.f32.gmra.mrb[10].mxu1 %vm6359_vm8, %v5350_v36  ;;  %4269 = vmatprep.subr.bf16.mxu0 %v4268_v15 }
  0xa9   : > { %3880 = vmatmul.mubr.f32.gmra.mrb[10].mxu0 %v5836_v4  ;;  %4143 = vmatpush3.bf16.msra.mxu1 %v4140_v8  ;;  %v4148_v8 = vpack.c.bf16 %v3065_v39, %v3064_v5  ;;  %v898_v50 = vsel %vm808_vm14, %v703_v41, 0.0  ;;  %v3210_v5 = vld [vmem:[%s6247_s1 + $0x380] sm:$0xff]  ;;  %v3211_v39 = vld [vmem:[%s6247_s1 + $0x388] sm:$0xff] }
  0xaa   : > { %4271 = vmatpush3.bf16.msra.mxu0 %v4268_v15  ;;  %4541 = vmatprep.mubr.msk.f32.mxu1 %vm5384_vm1, %v5397_v22  ;;  %v4276_v15 = vpack.c.bf16 %v3193_v3, %v3192_v48  ;;  %928 = vst [vmem:[%s4786_s19 + $0xe8] sm:$0x3] %v898_v50  ;;  %v5895_v48 = vld [vmem:[%s4786_s19 + $0xca] sm:$0xff]  ;;  %v4152_v3 = vpack.c.bf16 %v3083_v53, %v3082_v44 }
  0xab   : > { %3882 = vmatprep.mubr.f32.mxu0 %v5844_v19  ;;  %4145 = vmatprep.subr.bf16.mxu1 %v4144_v9  ;;  %6363 = vst [vmem:[#allocation15_spill] sm:$0xff] %v5895_v48  ;;  %v4280_v41 = vpack.c.bf16 %v3211_v39, %v3210_v5  ;;  %v3085_v50 = vld [vmem:[%s6247_s1 + $0x198] sm:$0xff]  ;;  %v3212_v44 = vld [vmem:[%s6247_s1 + $0x390] sm:$0xff]  ;;  %v3086_v39 = vld [vmem:[%s6247_s1 + $0x1a0] sm:$0xff] }
  0xac   : > { %4542 = vmatmul.mubr.msk.f32.gmra.mrb[12].mxu1 %vm6361_vm9, %v5420_v49  ;;  %4273 = vmatprep.subr.bf16.mxu0 %v4272_v52  ;;  %v3213_v53 = vld [vmem:[%s6247_s1 + $0x398] sm:$0xff] }
  0xad   : > { %3883 = vmatmul.mubr.f32.gmra.mrb[12].mxu0 %v5868_v40  ;;  %4147 = vmatpush3.bf16.msra.mxu1 %v4144_v9  ;;  %v1284_v9 = vld [vmem:[%s4786_s19 + $0x2] sm:$0xff] }
  0xae   : > { %4275 = vmatpush3.bf16.msra.mxu0 %v4272_v52  ;;  %4543 = vmatprep.mubr.msk.f32.mxu1 %vm5455_vm2, %v5464_v24  ;;  %v3084_v52 = vld [vmem:[%s6247_s1 + $0x190] sm:$0xff] }
  0xaf   : > { %3885 = vmatprep.mubr.f32.mxu0 %v5875_v21  ;;  %4149 = vmatprep.subr.bf16.mxu1 %v4148_v8  ;;  %v1285_v21 = vld [vmem:[%s4786_s19 + $0xa] sm:$0xff]  ;;  %v4156_v5 = vpack.c.bf16 %v3085_v50, %v3084_v52 }
  0xb0   : > { %4544 = vmatmul.mubr.msk.f32.gmra.mrb[14].mxu1 %vm6364_vm10, %v5479_v29  ;;  %4277 = vmatprep.subr.bf16.mxu0 %v4276_v15  ;;  %v3095_v50 = vld [vmem:[%s6247_s1 + $0x1e8] sm:$0xff] }
  0xb1   : > { %3886 = vmatmul.mubr.f32.gmra.mrb[14].mxu0 %v5895_v48  ;;  %4151 = vmatpush3.bf16.msra.mxu1 %v4148_v8  ;;  %v4284_v8 = vpack.c.bf16 %v3213_v53, %v3212_v44  ;;  %v3087_v48 = vld [vmem:[%s6247_s1 + $0x1a8] sm:$0xff]  ;;  %v3222_v44 = vld [vmem:[%s6247_s1 + $0x3e0] sm:$0xff] }
  0xb2   : > { %4279 = vmatpush3.bf16.msra.mxu0 %v4276_v15  ;;  %3696 = vmatprep.mubr.f32.mxu1 %v1284_v9  ;;  %v3089_v15 = vld [vmem:[%s6247_s1 + $0x1b8] sm:$0xff]  ;;  %v3223_v53 = vld [vmem:[%s6247_s1 + $0x3e8] sm:$0xff] }
  0xb3   : > { %4545 = vmatprep.mubr.msk.f32.mxu0 %vm5122_vm6, %v5136_v35  ;;  %4153 = vmatprep.subr.bf16.mxu1 %v4152_v3  ;;  %v3215_v35 = vld [vmem:[%s6247_s1 + $0x3a8] sm:$0xff]  ;;  %v3093_v9 = vld [vmem:[%s6247_s1 + $0x1d8] sm:$0xff] }
  0xb4   : > { %3697 = vmatmul.mubr.f32.vlgmr.msra.gmra.mrb[0].mxu1 %v1285_v21  ;;  %4281 = vmatprep.subr.bf16.mxu0 %v4280_v41  ;;  %v4160_v21 = vpack.c.bf16 %v3087_v48, %v3086_v39  ;;  %v4288_v17 = vpack.c.bf16 %v3215_v35, %v3214_v30  ;;  %v3096_v39 = vld [vmem:[%s6247_s1 + $0x1f0] sm:$0xff]  ;;  %v3097_v30 = vld [vmem:[%s6247_s1 + $0x1f8] sm:$0xff]  ;;  %v6373_v55 = vld [vmem:[#allocation15_spill] sm:$0xff] }
  0xb5   : > { %4546 = vmatmul.mubr.msk.f32.vlgmr.msra.gmra.mrb[0].mxu0 %vm5089_vm4, %v5158_v46  ;;  %4155 = vmatpush3.bf16.msra.mxu1 %v4152_v3  ;;  %v3088_v46 = vld [vmem:[%s6247_s1 + $0x1b0] sm:$0xff]  ;;  %vm6366_vm4 = vnez %v6356_v54  ;;  %v6367_v54 = vmax.f32 %v5765_v59, 0.0  ;;  %v3247_v59 = vld [vmem:[%s6247_s1 + $0x428] sm:$0xff] }
  0xb6   : > { %4283 = vmatpush3.bf16.msra.mxu0 %v4280_v41  ;;  %3699 = vmatprep.mubr.f32.mxu1 %v5642_v32  ;;  %v4164_v32 = vpack.c.bf16 %v3089_v15, %v3088_v46  ;;  %v3220_v3 = vld [vmem:[%s6247_s1 + $0x3d0] sm:$0xff]  ;;  %v3221_v41 = vld [vmem:[%s6247_s1 + $0x3d8] sm:$0xff]  ;;  %v3242_v15 = vld [vmem:[%s6247_s1 + $0x400] sm:$0xff] }
  0xb7   : > { %4547 = vmatprep.mubr.msk.f32.mxu0 %vm5178_vm11, %v5215_v14  ;;  %4157 = vmatprep.subr.bf16.mxu1 %v4156_v5  ;;  %v3217_v14 = vld [vmem:[%s6247_s1 + $0x3b8] sm:$0xff]  ;;  %v4300_v57 = vpack.c.bf16 %v3221_v41, %v3220_v3  ;;  %v3224_v35 = vld [vmem:[%s6247_s1 + $0x3f0] sm:$0xff] }
  0xb8   : > { %3700 = vmatmul.mubr.f32.gmra.mrb[2].mxu1 %v5662_v31  ;;  %4285 = vmatprep.subr.bf16.mxu0 %v4284_v8  ;;  %v4292_v38 = vpack.c.bf16 %v3217_v14, %v3216_v61  ;;  %v3091_v31 = vld [vmem:[%s6247_s1 + $0x1c8] sm:$0xff]  ;;  %v6365_v14 = vmax.f32 %v5747_v1, 0.0  ;;  %v3245_v1 = vld [vmem:[%s6247_s1 + $0x418] sm:$0xff] }
  0xb9   : > { %4548 = vmatmul.mubr.msk.f32.gmra.mrb[2].mxu0 %vm5143_vm15, %v5235_v25  ;;  %4159 = vmatpush3.bf16.msra.mxu1 %v4156_v5  ;;  %v3090_v25 = vld [vmem:[%s6247_s1 + $0x1c0] sm:$0xff]  ;;  %v3243_v61 = vld [vmem:[%s6247_s1 + $0x408] sm:$0xff] }
  0xba   : > { %4287 = vmatpush3.bf16.msra.mxu0 %v4284_v8  ;;  %3702 = vmatprep.mubr.f32.mxu1 %v5670_v56  ;;  %v4168_v48 = vpack.c.bf16 %v3091_v31, %v3090_v25  ;;  %v4304_v8 = vpack.c.bf16 %v3223_v53, %v3222_v44  ;;  %v3194_v25 = vld [vmem:[%s4786_s19 + $0x31] sm:$0xff]  ;;  %v3070_v41 = vld [vmem:[%s4786_s19 + $0x48] sm:$0xff]  ;;  %v3072_v53 = vld [vmem:[%s4786_s19 + $0x60] sm:$0xff] }
  0xbb   : > { %4549 = vmatprep.mubr.msk.f32.mxu0 %vm5242_vm0, %v5264_v45  ;;  %4161 = vmatprep.subr.bf16.mxu1 %v4160_v21  ;;  %v3219_v45 = vld [vmem:[%s6247_s1 + $0x3c8] sm:$0xff]  ;;  %v3244_v31 = vld [vmem:[%s6247_s1 + $0x410] sm:$0xff] }
  0xbc   : > { %3703 = vmatmul.mubr.f32.gmra.mrb[4].mxu1 %v5690_v63  ;;  %4289 = vmatprep.subr.bf16.mxu0 %v4288_v17  ;;  %v4296_v11 = vpack.c.bf16 %v3219_v45, %v3218_v27  ;;  %v3067_v27 = vld [vmem:[%s4786_s19 + $0x20] sm:$0xff]  ;;  %v3197_v3 = vld [vmem:[%s4786_s19 + $0x51] sm:$0xff] }
  0xbd   : > { %4550 = vmatmul.mubr.msk.f32.gmra.mrb[4].mxu0 %vm6357_vm3, %v5284_v0  ;;  %4163 = vmatpush3.bf16.msra.mxu1 %v4160_v21  ;;  %v3092_v0 = vld [vmem:[%s6247_s1 + $0x1d0] sm:$0xff]  ;;  %v3225_v21 = vld [vmem:[%s6247_s1 + $0x3f8] sm:$0xff] }
  0xbe   : > { %4291 = vmatpush3.bf16.msra.mxu0 %v4288_v17  ;;  %3705 = vmatprep.mubr.f32.mxu1 %v5700_v58  ;;  %v4172_v52 = vpack.c.bf16 %v3093_v9, %v3092_v0  ;;  %v4180_v17 = vpack.c.bf16 %v3097_v30, %v3096_v39  ;;  %v4308_v46 = vpack.c.bf16 %v3225_v21, %v3224_v35  ;;  %v3195_v45 = vld [vmem:[%s4786_s19 + $0x39] sm:$0xff]  ;;  %v3196_v0 = vld [vmem:[%s4786_s19 + $0x49] sm:$0xff]  ;;  %v3209_v23 = vld [vmem:[%s4786_s19 + $0xe1] sm:$0xff] }
  0xbf   : > { %4551 = vmatprep.mubr.msk.f32.mxu0 %vm6358_vm13, %v5332_v28  ;;  %4165 = vmatprep.subr.bf16.mxu1 %v4164_v32  ;;  %v3069_v9 = vld [vmem:[%s4786_s19 + $0x38] sm:$0xff]  ;;  %v3071_v44 = vld [vmem:[%s4786_s19 + $0x50] sm:$0xff]  ;;  %v3073_v30 = vld [vmem:[%s4786_s19 + $0x68] sm:$0xff] }
  0xc0   : > { %3706 = vmatmul.mubr.f32.gmra.mrb[6].mxu1 %v5720_v37  ;;  %4293 = vmatprep.subr.bf16.mxu0 %v4292_v38  ;;  %v3251_v39 = vld [vmem:[%s6247_s1 + $0x448] sm:$0xff]  ;;  %v3252_v21 = vld [vmem:[%s6247_s1 + $0x450] sm:$0xff] }
  0xc1   : > { %4552 = vmatmul.mubr.msk.f32.gmra.mrb[6].mxu0 %vm6359_vm8, %v5350_v36  ;;  %4167 = vmatpush3.bf16.msra.mxu1 %v4164_v32  ;;  %v3094_v36 = vld [vmem:[%s6247_s1 + $0x1e0] sm:$0xff]  ;;  %v3066_v32 = vld [vmem:[%s4786_s19 + $0x18] sm:$0xff] }
  0xc2   : > { %4295 = vmatpush3.bf16.msra.mxu0 %v4292_v38  ;;  %3708 = vmatprep.mubr.f32.mxu1 %v5738_v20  ;;  %v4176_v5 = vpack.c.bf16 %v3095_v50, %v3094_v36  ;;  %v4312_v38 = vpack.c.bf16 %v3243_v61, %v3242_v15  ;;  %v3248_v36 = vld [vmem:[%s6247_s1 + $0x430] sm:$0xff]  ;;  %v3249_v50 = vld [vmem:[%s6247_s1 + $0x438] sm:$0xff] }
  0xc3   : > { %4553 = vmatprep.mubr.msk.f32.mxu0 %vm5384_vm1, %v5397_v22  ;;  %4169 = vmatprep.subr.bf16.mxu1 %v4168_v48  ;;  %v6371_v15 = vld [vmem:[#allocation13_spill] sm:$0xff] }
  0xc4   : > { %3709 = vmatmul.mubr.f32.gmra.mrb[8].mxu1 %v5771_v7  ;;  %4297 = vmatprep.subr.bf16.mxu0 %v4296_v11 }
  0xc5   : > { %4554 = vmatmul.mubr.msk.f32.gmra.mrb[8].mxu0 %vm6361_vm9, %v5420_v49  ;;  %4171 = vmatpush3.bf16.msra.mxu1 %v4168_v48  ;;  %v3068_v48 = vld [vmem:[%s4786_s19 + $0x30] sm:$0xff] }
  0xc6   : > { %4299 = vmatpush3.bf16.msra.mxu0 %v4296_v11  ;;  %3711 = vmatprep.mubr.f32.mxu1 %v5780_v60  ;;  %v4316_v11 = vpack.c.bf16 %v3245_v1, %v3244_v31 }
  0xc7   : > { %4555 = vmatprep.mubr.msk.f32.mxu0 %vm5455_vm2, %v5464_v24  ;;  %4173 = vmatprep.subr.bf16.mxu1 %v4172_v52 }
  0xc8   : > { %3712 = vmatmul.mubr.f32.gmra.mrb[10].mxu1 %v5808_v16  ;;  %4301 = vmatprep.subr.bf16.mxu0 %v4300_v57 }
  0xc9   : > { %4556 = vmatmul.mubr.msk.f32.gmra.mrb[10].mxu0 %vm6364_vm10, %v5479_v29  ;;  %4175 = vmatpush3.bf16.msra.mxu1 %v4172_v52  ;;  %v4320_v52 = vpack.c.bf16 %v3247_v59, %v3246_v6 }
  0xca   : > { %4303 = vmatpush3.bf16.msra.mxu0 %v4300_v57  ;;  %3714 = vmatprep.mubr.f32.mxu1 %v5816_v62  ;;  %v3198_v57 = vld [vmem:[%s4786_s19 + $0x61] sm:$0xff] }
  0xcb   : > { %4557 = vmatprep.mubr.msk.f32.mxu0 %vm5512_vm7, %v5524_v10  ;;  %4177 = vmatprep.subr.bf16.mxu1 %v4176_v5 }
  0xcc   : > { %3715 = vmatmul.mubr.f32.gmra.mrb[12].mxu1 %v5836_v4  ;;  %4305 = vmatprep.subr.bf16.mxu0 %v4304_v8 }
  0xcd   : > { %4558 = vmatmul.mubr.msk.f32.gmra.mrb[12].mxu0 %vm5472_vm5, %v5531_v33  ;;  %4179 = vmatpush3.bf16.msra.mxu1 %v4176_v5  ;;  %v4324_v5 = vpack.c.bf16 %v3249_v50, %v3248_v36 }
  0xce   : > { %4307 = vmatpush3.bf16.msra.mxu0 %v4304_v8  ;;  %3717 = vmatprep.mubr.f32.mxu1 %v5844_v19  ;;  %v3250_v8 = vld [vmem:[%s6247_s1 + $0x440] sm:$0xff] }
  0xcf   : > { %4559 = vmatprep.mubr.msk.f32.mxu0 %vm6366_vm4, %v6365_v14  ;;  %4181 = vmatprep.subr.bf16.mxu1 %v4180_v17  ;;  %v4328_v35 = vpack.c.bf16 %v3251_v39, %v3250_v8 }
  0xd0   : > { %3718 = vmatmul.mubr.f32.gmra.mrb[14].mxu1 %v5868_v40  ;;  %4309 = vmatprep.subr.bf16.mxu0 %v4308_v46 }
  0xd1   : > { %4560 = vmatmul.mubr.msk.f32.gmra.mrb[14].mxu0 %vm5727_vm12, %v6367_v54  ;;  %4183 = vmatpush3.bf16.msra.mxu1 %v4180_v17  ;;  %v3253_v17 = vld [vmem:[%s6247_s1 + $0x458] sm:$0xff] }
  0xd2   : > { %4311 = vmatpush3.bf16.msra.mxu0 %v4308_v46  ;;  %3752 = vmatprep.mubr.f32.mxu1 %v3066_v32  ;;  %v3254_v46 = vld [vmem:[%s6247_s1 + $0x460] sm:$0xff] }
  0xd3   : > { %3976 = vmatprep.mubr.f32.mxu0 %v3194_v25  ;;  %4313 = vmatprep.subr.bf16.mxu0 %v4312_v38 }
  0xd4   : > { %3753 = vmatmul.mubr.f32.vlgmr.msra.gmra.mrb[0].mxu1 %v3067_v27  ;;  %4344 = vmatprep.subr.bf16.mxu1 %v4312_v38 }
  0xd5   : > { %3977 = vmatmul.mubr.f32.vlgmr.msra.gmra.mrb[0].mxu0 %v3195_v45  ;;  %4352 = vmatpush3.bf16.msra.mxu1 %v4312_v38 }
  0xd6   : > { %4315 = vmatpush3.bf16.msra.mxu0 %v4312_v38  ;;  %3755 = vmatprep.mubr.f32.mxu1 %v3068_v48 }
  0xd7   : > { %3979 = vmatprep.mubr.f32.mxu0 %v3196_v0  ;;  %4317 = vmatprep.subr.bf16.mxu0 %v4316_v11 }
  0xd8   : > { %3756 = vmatmul.mubr.f32.gmra.mrb[2].mxu1 %v3069_v9  ;;  %4345 = vmatprep.subr.bf16.mxu1 %v4316_v11 }
  0xd9   : > { %3980 = vmatmul.mubr.f32.gmra.mrb[2].mxu0 %v3197_v3  ;;  %4353 = vmatpush3.bf16.msra.mxu1 %v4316_v11 }
  0xda   : > { %4319 = vmatpush3.bf16.msra.mxu0 %v4316_v11  ;;  %3758 = vmatprep.mubr.f32.mxu1 %v3070_v41  ;;  %v3258_v41 = vld [vmem:[%s6248_s2] ss:$0 sm:$0xff] }
  0xdb   : > { %3982 = vmatprep.mubr.f32.mxu0 %v3198_v57  ;;  %4321 = vmatprep.subr.bf16.mxu0 %v4320_v52 }
  0xdc   : > { %3759 = vmatmul.mubr.f32.gmra.mrb[4].mxu1 %v3071_v44  ;;  %4346 = vmatprep.subr.bf16.mxu1 %v4320_v52 }
  0xdd   : > { %3983 = vmatmul.mubr.f32.gmra.mrb[4].mxu0 %v5527_v12  ;;  %4354 = vmatpush3.bf16.msra.mxu1 %v4320_v52  ;;  %v3075_v12 = vld [vmem:[%s4786_s19 + $0x80] sm:$0xff] }
  0xde   : > { %4323 = vmatpush3.bf16.msra.mxu0 %v4320_v52  ;;  %3761 = vmatprep.mubr.f32.mxu1 %v3072_v53 }
  0xdf   : > { %3985 = vmatprep.mubr.f32.mxu0 %v5547_v18  ;;  %4325 = vmatprep.subr.bf16.mxu0 %v4324_v5  ;;  %v4332_v18 = vpack.c.bf16 %v3253_v17, %v3252_v21 }
  0xe0   : > { %3762 = vmatmul.mubr.f32.gmra.mrb[6].mxu1 %v3073_v30  ;;  %4347 = vmatprep.subr.bf16.mxu1 %v4324_v5 }
  0xe1   : > { %3986 = vmatmul.mubr.f32.gmra.mrb[6].mxu0 %v5568_v43  ;;  %4355 = vmatpush3.bf16.msra.mxu1 %v4324_v5  ;;  %v3255_v43 = vld [vmem:[%s6247_s1 + $0x468] sm:$0xff] }
  0xe2   : > { %4327 = vmatpush3.bf16.msra.mxu0 %v4324_v5  ;;  %4561 = vmatprep.mubr.msk.f32.mxu1 %vm6358_vm13, %v5332_v28  ;;  %v4336_v28 = vpack.c.bf16 %v3255_v43, %v3254_v46 }
  0xe3   : > { %3988 = vmatprep.mubr.f32.mxu0 %v5576_v2  ;;  %4329 = vmatprep.subr.bf16.mxu0 %v4328_v35  ;;  %v3256_v2 = vld [vmem:[%s6247_s1 + $0x470] sm:$0xff] }
  0xe4   : > { %3765 = vmatmul.mubr.f32.gmra.mrb[8].mxu1 %v3075_v12  ;;  %4348 = vmatprep.subr.bf16.mxu1 %v4328_v35 }
  0xe5   : > { %3989 = vmatmul.mubr.f32.gmra.mrb[8].mxu0 %v5593_v34  ;;  %4356 = vmatpush3.bf16.msra.mxu1 %v4328_v35  ;;  %v3208_v34 = vld [vmem:[%s4786_s19 + $0xd9] sm:$0xff] }
  0xe6   : > { %4331 = vmatpush3.bf16.msra.mxu0 %v4328_v35  ;;  %4562 = vmatprep.mubr.msk.f32.mxu1 %vm5384_vm1, %v5397_v22  ;;  %v6369_v22 = vld [vmem:[#allocation11_spill] sm:$0xff] }
  0xe7   : > { %3991 = vmatprep.mubr.f32.mxu0 %v6368_v47  ;;  %4333 = vmatprep.subr.bf16.mxu0 %v4332_v18 }
  0xe8   : > { %4563 = vmatmul.mubr.msk.f32.gmra.mrb[10].mxu1 %vm6361_vm9, %v5420_v49  ;;  %4349 = vmatprep.subr.bf16.mxu1 %v4332_v18  ;;  %v4340_v49 = vpack.c.bf16 %v3257_v13, %v3256_v2 }
  0xe9   : > { %3992 = vmatmul.mubr.f32.gmra.mrb[10].mxu0 %v6369_v22  ;;  %4357 = vmatpush3.bf16.msra.mxu1 %v4332_v18 }
  0xea   : > { %4335 = vmatpush3.bf16.msra.mxu0 %v4332_v18  ;;  %4564 = vmatprep.mubr.msk.f32.mxu1 %vm5455_vm2, %v5464_v24  ;;  %v3240_v24 = vld [vmem:[%s4786_s19 + $0xda] sm:$0xff] }
  0xeb   : > { %3994 = vmatprep.mubr.f32.mxu0 %v6370_v42  ;;  %4337 = vmatprep.subr.bf16.mxu0 %v4336_v28 }
  0xec   : > { %4565 = vmatmul.mubr.msk.f32.gmra.mrb[12].mxu1 %vm6364_vm10, %v5479_v29  ;;  %4350 = vmatprep.subr.bf16.mxu1 %v4336_v28  ;;  %v3241_v29 = vld [vmem:[%s4786_s19 + $0xe2] sm:$0xff] }
  0xed   : > { %3995 = vmatmul.mubr.f32.gmra.mrb[12].mxu0 %v6371_v15  ;;  %4358 = vmatpush3.bf16.msra.mxu1 %v4336_v28 }
  0xee   : > { %4339 = vmatpush3.bf16.msra.mxu0 %v4336_v28  ;;  %4566 = vmatprep.mubr.msk.f32.mxu1 %vm5512_vm7, %v5524_v10 }
  0xef   : > { %3997 = vmatprep.mubr.f32.mxu0 %v3208_v34  ;;  %4341 = vmatprep.subr.bf16.mxu0 %v4340_v49 }
  0xf0   : > { %4567 = vmatmul.mubr.msk.f32.gmra.mrb[14].mxu1 %vm5472_vm5, %v5531_v33  ;;  %4351 = vmatprep.subr.bf16.mxu1 %v4340_v49 }
  0xf1   : > { %3998 = vmatmul.mubr.f32.gmra.mrb[14].mxu0 %v3209_v23  ;;  %4359 = vmatpush3.bf16.msra.mxu1 %v4340_v49 }
  0xf2   : > { %4343 = vmatpush3.bf16.msra.mxu0 %v4340_v49  ;;  %4032 = vmatprep.mubr.f32.mxu0 %v5670_v56 }
  0xf3   : > { %4044 = vmatprep.mubr.f32.mxu1 %v5816_v62 }
  0xf4   : > { %4045 = vmatmul.mubr.f32.vlgmr.msra.gmra.mrb[16].mxu1 %v5836_v4 }
  0xf5   : > { %4033 = vmatmul.mubr.f32.vlgmr.msra.gmra.mrb[0].mxu0 %v5690_v63  ;;  %4047 = vmatprep.mubr.f32.mxu1 %v5844_v19 }
  0xf6   : > { %4035 = vmatprep.mubr.f32.mxu0 %v5700_v58 }
  0xf8   : > { %4048 = vmatmul.mubr.f32.gmra.mrb[18].mxu1 %v5868_v40 }
  0xf9   : > { %4036 = vmatmul.mubr.f32.gmra.mrb[2].mxu0 %v5720_v37  ;;  %4050 = vmatprep.mubr.f32.mxu1 %v6372_v51 }
  0xfa   : > { %4038 = vmatprep.mubr.f32.mxu0 %v5738_v20 }
  0xfc   : > { %4051 = vmatmul.mubr.f32.gmra.mrb[20].mxu1 %v6373_v55 }
  0xfd   : > { %4039 = vmatmul.mubr.f32.gmra.mrb[4].mxu0 %v5771_v7  ;;  %4053 = vmatprep.mubr.f32.mxu1 %v3240_v24 }
  0xfe   : > { %4041 = vmatprep.mubr.f32.mxu0 %v5780_v60 }
 0x100   : > { %4054 = vmatmul.mubr.f32.gmra.mrb[22].mxu1 %v3241_v29 }
 0x101   : > { %4042 = vmatmul.mubr.f32.gmra.mrb[6].mxu0 %v5808_v16 }
 0x1a7   : > { %v3754_v26 = vpop.f32.mrb[0].mxu1 }
 0x1a8   : > { %v1579_v10 = vpop.f32.mrb[1].mxu1 }
 0x1ab   : > { %v3757_v33 = vpop.f32.mrb[2].mxu1 }
 0x1ac   : > { %v1589_v19 = vpop.f32.mrb[3].mxu1 }
 0x1af   : > { %v6162_v56 = vpop.f32.mrb[4].mxu1 }
 0x1b0   : > { %v6164_v63 = vpop.f32.mrb[5].mxu1 }
 0x1b3   : > { %v6166_v58 = vpop.f32.mrb[6].mxu1 }
 0x1b4   : > { %v6168_v37 = vpop.f32.mrb[7].mxu1 }
 0x1b7   : > { %v3766_v20 = vpop.f32.mrb[8].mxu1 }
 0x1b8   : > { %v3990_v7 = vpop.f32.mrb[8].mxu0  ;;  %v1619_v62 = vpop.f32.mrb[9].mxu1 }
 0x1b9   : > { %v4368_v4 = vadd.f32 %v3990_v7, %v3766_v20  ;;  %v2397_v60 = vpop.f32.mrb[9].mxu0 }
 0x1ba   : > { %v4370_v40 = vadd.f32 %v2397_v60, %v1619_v62 }
 0x1bb   : > { %v3769_v61 = vpop.f32.mrb[10].mxu1 }
 0x1bc   : > { %v3993_v16 = vpop.f32.mrb[10].mxu0  ;;  %v1629_v14 = vpop.f32.mrb[11].mxu1 }
 0x1bd   : > { %v4372_v32 = vadd.f32 %v3993_v16, %v3769_v61  ;;  %v2407_v38 = vpop.f32.mrb[11].mxu0 }
 0x1be   : > { %v4374_v25 = vadd.f32 %v2407_v38, %v1629_v14 }
 0x1bf   : > { %v3772_v31 = vpop.f32.mrb[12].mxu1 }
 0x1c0   : > { %v3996_v1 = vpop.f32.mrb[12].mxu0  ;;  %v1639_v54 = vpop.f32.mrb[13].mxu1 }
 0x1c1   : > { %v4376_v27 = vadd.f32 %v3996_v1, %v3772_v31  ;;  %v2417_v45 = vpop.f32.mrb[13].mxu0 }
 0x1c2   : > { %v4378_v48 = vadd.f32 %v2417_v45, %v1639_v54 }
 0x1c3   : > { %v3775_v11 = vpop.f32.mrb[14].mxu1 }
 0x1c4   : > { %v3999_v0 = vpop.f32.mrb[14].mxu0  ;;  %v1649_v6 = vpop.f32.mrb[15].mxu1 }
 0x1c5   : > { %v4380_v59 = vadd.f32 %v3999_v0, %v3775_v11  ;;  %v2427_v9 = vpop.f32.mrb[15].mxu0 }
 0x1c6   : > { %v4382_v3 = vadd.f32 %v2427_v9, %v1649_v6 }
 0x1c7   : > { %v4046_v52 = vpop.f32.mrb[16].mxu1 }
 0x1c8   : > { %v4034_v57 = vpop.f32.mrb[0].mxu0  ;;  %v4369_v36 = vadd.f32 %v4368_v4, %v4046_v52  ;;  %v2591_v50 = vpop.f32.mrb[17].mxu1 }
 0x1c9   : > { %v4360_v44 = vadd.f32 %v4034_v57, %v3754_v26  ;;  %v2551_v53 = vpop.f32.mrb[1].mxu0  ;;  %v4371_v5 = vadd.f32 %v4370_v40, %v2591_v50 }
 0x1ca   : > { %v6173_v8 = vadd.f32 %v4369_v36, %v3258_v41  ;;  %v4361_v39 = vadd.f32 %v2551_v53, %v1579_v10 }
 0x1cb   : > { %v2654_v30 = vadd.f32 %v4360_v44, %v3258_v41  ;;  %v6175_v35 = vadd.f32 %v4371_v5, %v3258_v41  ;;  %v4049_v21 = vpop.f32.mrb[18].mxu1 }
 0x1cc   : > { %2678 = vst [vmem:[%s4704_s30 + $0x48] sm:$0xff] %v6173_v8  ;;  %v2653_v17 = vadd.f32 %v4361_v39, %v3258_v41  ;;  %v4037_v12 = vpop.f32.mrb[2].mxu0  ;;  %v4373_v18 = vadd.f32 %v4372_v32, %v4049_v21  ;;  %v2601_v46 = vpop.f32.mrb[19].mxu1 }
 0x1cd   : > { %2670 = vst [vmem:[%s4704_s30 + $0x8] sm:$0xff] %v2654_v30  ;;  %2677 = vst [vmem:[%s4704_s30 + $0x40] sm:$0xff] %v6175_v35  ;;  %v4362_v43 = vadd.f32 %v4037_v12, %v3757_v33  ;;  %v2561_v47 = vpop.f32.mrb[3].mxu0  ;;  %v4375_v28 = vadd.f32 %v4374_v25, %v2601_v46  ;;  %v4610_v25 = vmov (!%p2957_p9), 0.0  }
 0x1ce   : > { %2669 = vst [vmem:[%s4704_s30] sm:$0xff] %v2653_v17  ;;  %v6183_v2 = vadd.f32 %v4373_v18, %v3258_v41  ;;  %v4363_v13 = vadd.f32 %v2561_v47, %v1589_v19  ;;  %2688 = vst [vmem:[%s4692_s13] sm:$0x1] (!%p2957_p9), %v4610_v25 }
 0x1cf   : > { %v2656_v22 = vadd.f32 %v4362_v43, %v3258_v41  ;;  %v6185_v42 = vadd.f32 %v4375_v28, %v3258_v41  ;;  %v4052_v49 = vpop.f32.mrb[20].mxu1  ;;  %2689 = vst [vmem:[%s4697_s17] sm:$0x1] (!%p2957_p9), %v4610_v25 }
 0x1d0   : > { %2680 = vst [vmem:[%s4704_s30 + $0x58] sm:$0xff] %v6183_v2  ;;  %v2655_v34 = vadd.f32 %v4363_v13, %v3258_v41  ;;  %v4040_v15 = vpop.f32.mrb[4].mxu0  ;;  %v4377_v23 = vadd.f32 %v4376_v27, %v4052_v49  ;;  %v2611_v51 = vpop.f32.mrb[21].mxu1 }
 0x1d1   : > { %2672 = vst [vmem:[%s4704_s30 + $0x18] sm:$0xff] %v2656_v22  ;;  %2679 = vst [vmem:[%s4704_s30 + $0x50] sm:$0xff] %v6185_v42  ;;  %v4364_v24 = vadd.f32 %v4040_v15, %v6162_v56  ;;  %v2571_v55 = vpop.f32.mrb[5].mxu0  ;;  %v4379_v29 = vadd.f32 %v4378_v48, %v2611_v51 }
 0x1d2   : > { %2671 = vst [vmem:[%s4704_s30 + $0x10] sm:$0xff] %v2655_v34  ;;  %v6194_v26 = vadd.f32 %v4377_v23, %v3258_v41  ;;  %v4365_v10 = vadd.f32 %v2571_v55, %v6164_v63 }
 0x1d3   : > { %v2658_v33 = vadd.f32 %v4364_v24, %v3258_v41  ;;  %v2665_v19 = vadd.f32 %v4379_v29, %v3258_v41  ;;  %v4055_v20 = vpop.f32.mrb[22].mxu1 }
 0x1d4   : > { %2682 = vst [vmem:[%s4704_s30 + $0x68] sm:$0xff] %v6194_v26  ;;  %v2657_v7 = vadd.f32 %v4365_v10, %v3258_v41  ;;  %v4043_v62 = vpop.f32.mrb[6].mxu0  ;;  %v4381_v4 = vadd.f32 %v4380_v59, %v4055_v20  ;;  %v2621_v56 = vpop.f32.mrb[23].mxu1  ;;  %2687 = sbr.rel (%p2957_p9) target bundleno = 475 (0x1db), region = 122 }
 0x1d5   : > { %2674 = vst [vmem:[%s4704_s30 + $0x28] sm:$0xff] %v2658_v33  ;;  %2681 = vst [vmem:[%s4704_s30 + $0x60] sm:$0xff] %v2665_v19  ;;  %v4366_v60 = vadd.f32 %v4043_v62, %v6166_v58  ;;  %v2581_v40 = vpop.f32.mrb[7].mxu0  ;;  %v4383_v61 = vadd.f32 %v4382_v3, %v2621_v56 }
 0x1d6   : > { %2673 = vst [vmem:[%s4704_s30 + $0x20] sm:$0xff] %v2657_v7  ;;  %v2668_v63 = vadd.f32 %v4381_v4, %v3258_v41  ;;  %v4367_v16 = vadd.f32 %v2581_v40, %v6168_v37 }
 0x1d7   : > { %v2660_v14 = vadd.f32 %v4366_v60, %v3258_v41  ;;  %v2667_v32 = vadd.f32 %v4383_v61, %v3258_v41 }
 0x1d8   : > { %2684 = vst [vmem:[%s4704_s30 + $0x78] sm:$0xff] %v2668_v63  ;;  %v2659_v38 = vadd.f32 %v4367_v16, %v3258_v41 }
 0x1d9   : > { %2676 = vst [vmem:[%s4704_s30 + $0x38] sm:$0xff] %v2660_v14  ;;  %2683 = vst [vmem:[%s4704_s30 + $0x70] sm:$0xff] %v2667_v32 }
 0x1da   : > { %2675 = vst [vmem:[%s4704_s30 + $0x30] sm:$0xff] %v2659_v38 }
 0x1db PF: > { %v2691_v58 = vadd.f32 %v2654_v30, %v2653_v17  ;;  %v2715_v31 = vmul.f32 %v2653_v17, %v2653_v17  ;;  %v2716_v1 = vmul.f32 %v2654_v30, %v2654_v30  ;;  %v2717_v54 = vmul.f32 %v2655_v34, %v2655_v34  ;;  %v2690_v56 = vld [vmem:[%s4692_s13] sm:$0x1] }
 0x1dc   : > { %v2718_v45 = vmul.f32 %v2656_v22, %v2656_v22  ;;  %v2719_v0 = vmul.f32 %v2657_v7, %v2657_v7  ;;  %v2720_v9 = vmul.f32 %v2658_v33, %v2658_v33  ;;  %v2721_v52 = vmul.f32 %v2659_v38, %v2659_v38 }
 0x1dd   : > { %v2692_v37 = vadd.f32 %v2691_v58, %v2655_v34  ;;  %v2731_v48 = vadd.f32 %v2716_v1, %v2715_v31  ;;  %v2722_v50 = vmul.f32 %v2660_v14, %v2660_v14  ;;  %v2723_v5 = vmul.f32 %v6175_v35, %v6175_v35 }
 0x1de   : > { %v2724_v21 = vmul.f32 %v6173_v8, %v6173_v8  ;;  %v2725_v18 = vmul.f32 %v6185_v42, %v6185_v42  ;;  %v2726_v47 = vmul.f32 %v6183_v2, %v6183_v2  ;;  %v2727_v13 = vmul.f32 %v2665_v19, %v2665_v19 }
 0x1df   : > { %v2693_v27 = vadd.f32 %v2692_v37, %v2656_v22  ;;  %v2732_v6 = vadd.f32 %v2731_v48, %v2717_v54  ;;  %v2729_v23 = vmul.f32 %v2667_v32, %v2667_v32  ;;  %v2730_v24 = vmul.f32 %v2668_v63, %v2668_v63 }
 0x1e1   : > { %v2694_v11 = vadd.f32 %v2693_v27, %v2657_v7  ;;  %v2733_v3 = vadd.f32 %v2732_v6, %v2718_v45 }
 0x1e3   : > { %v2695_v59 = vadd.f32 %v2694_v11, %v2658_v33  ;;  %v2734_v57 = vadd.f32 %v2733_v3, %v2719_v0 }
 0x1e5   : > { %v2696_v41 = vadd.f32 %v2695_v59, %v2659_v38  ;;  %v2735_v44 = vadd.f32 %v2734_v57, %v2720_v9 }
 0x1e7   : > { %v2697_v36 = vadd.f32 %v2696_v41, %v2660_v14  ;;  %v2736_v39 = vadd.f32 %v2735_v44, %v2721_v52 }
 0x1e9   : > { %v2698_v53 = vadd.f32 %v2697_v36, %v6175_v35  ;;  %v2737_v17 = vadd.f32 %v2736_v39, %v2722_v50 }
 0x1eb   : > { %v2699_v30 = vadd.f32 %v2698_v53, %v6173_v8  ;;  %v2738_v46 = vadd.f32 %v2737_v17, %v2723_v5  ;;  %v2728_v8 = vmul.f32 %v6194_v26, %v6194_v26 }
 0x1ed   : > { %v2700_v12 = vadd.f32 %v2699_v30, %v6185_v42  ;;  %v2739_v28 = vadd.f32 %v2738_v46, %v2724_v21 }
 0x1ef   : > { %v2701_v43 = vadd.f32 %v2700_v12, %v6183_v2  ;;  %v2740_v22 = vadd.f32 %v2739_v28, %v2725_v18 }
 0x1f1   : > { %v2702_v35 = vadd.f32 %v2701_v43, %v2665_v19  ;;  %v2741_v34 = vadd.f32 %v2740_v22, %v2726_v47 }
 0x1f3   : > { %v2703_v49 = vadd.f32 %v2702_v35, %v6194_v26  ;;  %v2742_v42 = vadd.f32 %v2741_v34, %v2727_v13 }
 0x1f5   : > { %v2704_v15 = vadd.f32 %v2703_v49, %v2667_v32  ;;  %v2743_v55 = vadd.f32 %v2742_v42, %v2728_v8 }
 0x1f7   : > { %v2705_v51 = vadd.f32 %v2704_v15, %v2668_v63  ;;  %v2744_v2 = vadd.f32 %v2743_v55, %v2729_v23  ;;  %v2714_v63 = vld [vmem:[%s4697_s17] sm:$0x1] }
 0x1f9   : > { %v2706_v29 = vrot.slane %v2705_v51, 4  ;;  %v2745_v33 = vadd.f32 %v2744_v2, %v2730_v24 }
 0x1fb   : > { %v2707_v10 = vadd.f32 %v2706_v29, %v2705_v51  ;;  %v2746_v20 = vrot.slane %v2745_v33, 4 }
 0x1fd   : > { %v2708_v19 = vrot.slane %v2707_v10, 2  ;;  %v2747_v62 = vadd.f32 %v2746_v20, %v2745_v33 }
 0x1ff   : > { %v2709_v7 = vadd.f32 %v2708_v19, %v2707_v10  ;;  %v2748_v4 = vrot.slane %v2747_v62, 2 }
 0x201   : > { %v2710_v26 = vrot.slane %v2709_v7, 1  ;;  %v2749_v40 = vadd.f32 %v2748_v4, %v2747_v62 }
 0x203   : > { %v2711_v60 = vadd.f32 %v2710_v26, %v2709_v7  ;;  %v2750_v16 = vrot.slane %v2749_v40, 1 }
 0x205   : > { %v2712_v61 = vadd.f32 %v2711_v60, %v2690_v56  ;;  %v2751_v14 = vadd.f32 %v2750_v16, %v2749_v40 }
 0x207   : > { %2713 = vst [vmem:[%s4692_s13] sm:$0x1] %v2712_v61  ;;  %v2752_v32 = vadd.f32 %v2751_v14, %v2714_v63 }
 0x209   : > { %2753 = vst [vmem:[%s4697_s17] sm:$0x1] %v2752_v32 }
 0x20a PF: > { %s18_s28 = sadd.s32 1, %s4608_s28   ;;  %s6374_s25 = sld [smem:[#allocation7_spill]] }
 0x20b   : > { %p15_p12 = scmp.ge.s32.totalorder %s18_s28, 6   ;;  %s6375_s30 = sld [smem:[#allocation8_spill]] }
 0x20c   : > { %s6376_s27 = sld [smem:[#allocation9_spill]]  ;;  %s6377_s24 = smov %s4600_s26 }
 0x20d   :  { %17 = sbr.rel (!%p15_p12) target bundleno = 3 (0x3), region = 220 }
 0x211   : > { %s6378_s26 = smov %s6375_s30 }
 0x214   :  { %2810 = vsyncmov [#allocation3] }
 0x217   :  { %s2811_s13 = vpop.sfrf %2810 }
 0x218   :  { %p3262_p13 = scmp.ne.s32.totalorder %s2811_s13, 0 }
 0x21a   :  { %2815 = shalt.err (%p3262_p13)  }
 0x21b   :  { %2817 = vsyncmov [#allocation3 + $0x1] }
 0x21e   :  { %s2818_s17 = vpop.sfrf %2817 }
 0x21f   :  { %p3263_p0 = scmp.ne.s32.totalorder %s2818_s17, 0 }
 0x221   :  { %2822 = shalt.err (%p3263_p0)  }

</bundles_post_ra>
